<compile_context>
chip_gen: v7x
topology: tpu7x:2x2x1
jax: 0.10.0
libtpu: 0.0.40
codegen_flags: <defaults>
</compile_context>

<pallas_src>
import math
from functools import partial

import jax
import jax.numpy as jnp
from jax.experimental import pallas as pl
from jax.experimental.pallas import tpu as pltpu


# -----------------------------------------------------------------------------
# Fused kernel: feature/key/value projections + multi-head spotlight attention
#               + spotlight aggregation + diversity partials + all MLP heads.
# Grid: (ceil(B / BT),) -- BT batch elements per grid step, axis is "parallel".
# -----------------------------------------------------------------------------
def spotlight_fused_kernel(
        x_ref, wf_ref, bns_ref, bnb_ref, wkf_ref, wvf_ref,
        kbase_ref, vbase_ref, qexp_ref,
        bw1, bb1, bg, bbe, bw2, bb2, bw3, bb3,
        cw1, cb1, cg, cbe, cw2, cb2, cw3, cb3,
        tw, tb,
        attn_ref, spot_ref, div_ref, boxes_ref, scores_ref, logits_ref,
        *, num_heads):
    bt, hw, c = x_ref.shape
    hd = wvf_ref.shape[1]                       # hidden_dim
    n = qexp_ref.shape[0] // num_heads          # num_spotlights
    nc = tw.shape[1]

    # ---- pixel-side projections on BT*HW rows (fills MXU sublanes) ----------
    x = x_ref[...].reshape(bt * hw, c)
    feat = jnp.dot(x, wf_ref[...], preferred_element_type=jnp.float32)
    feat = jnp.maximum(feat * bns_ref[...] + bnb_ref[...], 0.0)    # (BT*HW, hd2)

    keys = jnp.dot(feat, wkf_ref[...], preferred_element_type=jnp.float32)
    vals = jnp.dot(feat, wvf_ref[...], preferred_element_type=jnp.float32)

    qexp = qexp_ref[...]          # (h*N, sd) block-diagonal queries, pre-scaled
    kbase = kbase_ref[...]        # (HW, sd)  batch-invariant pos contribution
    vbase = vbase_ref[...]        # (HW, hd)

    dn = (((1,), (1,)), ((), ()))                 # contract last dims
    inv_heads = 1.0 / num_heads

    spots = []
    for b in range(bt):                           # static, small batch tile
        k_b = keys[b * hw:(b + 1) * hw] + kbase   # (HW, sd)
        v_b = vals[b * hw:(b + 1) * hw] + vbase   # (HW, hd)

        # all heads in one MXU matmul via block-diagonal query matrix
        logits = jax.lax.dot_general(
            qexp, k_b, dn, preferred_element_type=jnp.float32)     # (h*N, HW)
        m = jnp.max(logits, axis=-1, keepdims=True)
        e = jnp.exp(logits - m)
        p = e * pl.reciprocal(jnp.sum(e, axis=-1, keepdims=True))  # per-row softmax

        acc = p[0:n]
        for hh in range(1, num_heads):
            acc = acc + p[hh * n:(hh + 1) * n]
        attn_b = acc * inv_heads                                   # (N, HW)

        spot_b = jnp.dot(attn_b, v_b,
                         preferred_element_type=jnp.float32)       # (N, hd)
        attn_ref[b] = attn_b
        spots.append(spot_b)

        # diversity partial: off-diagonal cosine-sim sum = sum(sim) - trace(sim)
        sumsq = jnp.sum(attn_b * attn_b, axis=1, keepdims=True)
        anorm = attn_b * jax.lax.rsqrt(jnp.maximum(sumsq, 1e-24))  # == /max(||.||,1e-12)
        sim = jax.lax.dot_general(anorm, anorm, dn,
                                  preferred_element_type=jnp.float32)   # (N, N)
        div_ref[b] = (jnp.sum(sim, keepdims=True)
                      - jnp.sum(anorm * anorm, keepdims=True))

    # ---- heads fused, batched over BT*N rows --------------------------------
    s_all = jnp.concatenate(spots, axis=0)                         # (BT*N, hd)
    spot_ref[...] = s_all.reshape(bt, n, hd)

    def mlp(w1, b1, g, be, w2, b2, w3, b3):
        h1 = jnp.dot(s_all, w1[...], preferred_element_type=jnp.float32) + b1[...]
        mu = jnp.mean(h1, axis=-1, keepdims=True)
        var = jnp.mean((h1 - mu) ** 2, axis=-1, keepdims=True)
        h1 = (h1 - mu) * jax.lax.rsqrt(var + 1e-5) * g[...] + be[...]
        h1 = jnp.maximum(h1, 0.0)
        h2 = jnp.maximum(
            jnp.dot(h1, w2[...], preferred_element_type=jnp.float32) + b2[...], 0.0)
        return jnp.dot(h2, w3[...], preferred_element_type=jnp.float32) + b3[...]

    boxes = mlp(bw1, bb1, bg, bbe, bw2, bb2, bw3, bb3)             # (BT*N, 4)
    score_logits = mlp(cw1, cb1, cg, cbe, cw2, cb2, cw3, cb3)      # (BT*N, 1)
    cls_logits = jnp.dot(s_all, tw[...],
                         preferred_element_type=jnp.float32) + tb[...]  # (BT*N, nc)

    boxes_ref[...] = boxes.reshape(bt, n, 4)
    scores_ref[...] = jax.nn.sigmoid(score_logits).reshape(bt, n, 1)
    logits_ref[...] = cls_logits.reshape(bt, n, nc)


# -----------------------------------------------------------------------------
# Wrapper
# -----------------------------------------------------------------------------
def spotlight_attention_forward(x, params, *, num_spotlights, hidden_dim,
                                spotlight_dim, num_heads, num_classes,
                                batch_tile=8):
    B, C, H, W = x.shape
    HW = H * W
    N = num_spotlights
    head_dim = spotlight_dim // num_heads
    hd2 = hidden_dim // 2

    BT = int(min(batch_tile, B))
    n_steps = -(-B // BT)
    B_pad = n_steps * BT

    # NCHW -> (B, HW, C) pixel-major layout.
    x_pix = jnp.transpose(x, (0, 2, 3, 1)).reshape(B, HW, C).astype(jnp.float32)
    if B_pad != B:
        x_pix = jnp.concatenate(
            [x_pix, jnp.zeros((B_pad - B, HW, C), jnp.float32)], axis=0)

    # position encoding pixels (HW, 2), channel order [y, x] (matches reference)
    y = jnp.linspace(-1.0, 1.0, H)
    xl = jnp.linspace(-1.0, 1.0, W)
    yy = jnp.repeat(y[:, None], W, axis=1)
    xx = jnp.repeat(xl[None, :], H, axis=0)
    pos = jnp.stack([yy, xx], axis=-1).reshape(HW, 2).astype(jnp.float32)

    # fold conv bias + eval-mode BatchNorm into per-channel scale/shift; keep
    # only the first hidden_dim//2 channels (the rest is never consumed).
    eps = 1e-5
    bn_scale = params['bn_gamma'] / jnp.sqrt(params['bn_var'] + eps)
    bn_shift = params['bn_beta'] + (params['feat_b'] - params['bn_mean']) * bn_scale
    wf_half = params['feat_w'][:, :hd2]
    bns_half = bn_scale[:hd2].reshape(1, hd2)
    bnb_half = bn_shift[:hd2].reshape(1, hd2)

    # split key/value weights over [feature-half | pos-half]; the pos-half
    # contribution is batch-invariant -> hoist it out of the grid entirely.
    pos_feat = pos @ params['pos_w'] + params['pos_b'][None, :]          # (HW, hd2)
    wk_feat = params['key_w'][:hd2, :]
    wv_feat = params['val_w'][:hd2, :]
    kbase = pos_feat @ params['key_w'][hd2:, :] + params['key_b'][None, :]   # (HW, sd)
    vbase = pos_feat @ params['val_w'][hd2:, :] + params['val_b'][None, :]   # (HW, hd)

    # block-diagonal multi-head query matrix (h*N, sd), 1/sqrt(d) folded in.
    q = params['spotlight_sources']                                      # (N, sd)
    head_ids = jnp.arange(spotlight_dim) // head_dim
    head_mask = (head_ids[None, :] == jnp.arange(num_heads)[:, None]).astype(jnp.float32)
    q_exp = (q[None, :, :] * head_mask[:, None, :]) / math.sqrt(head_dim)
    q_exp = q_exp.reshape(num_heads * N, spotlight_dim)

    def row(v):
        return jnp.asarray(v, jnp.float32).reshape(1, -1)

    const = lambda shape: pl.BlockSpec(shape, lambda i: (0,) * len(shape))
    batched3 = lambda shape: pl.BlockSpec(shape, lambda i: (i, 0, 0))

    outs = pl.pallas_call(
        partial(spotlight_fused_kernel, num_heads=num_heads),
        grid=(n_steps,),
        in_specs=[
            batched3((BT, HW, C)),
            const((C, hd2)), const((1, hd2)), const((1, hd2)),
            const((hd2, spotlight_dim)), const((hd2, hidden_dim)),
            const((HW, spotlight_dim)), const((HW, hidden_dim)),
            const((num_heads * N, spotlight_dim)),
            const((hidden_dim, hidden_dim)), const((1, hidden_dim)),
            const((1, hidden_dim)), const((1, hidden_dim)),
            const((hidden_dim, hd2)), const((1, hd2)),
            const((hd2, 4)), const((1, 4)),
            const((hidden_dim, hidden_dim)), const((1, hidden_dim)),
            const((1, hidden_dim)), const((1, hidden_dim)),
            const((hidden_dim, hd2)), const((1, hd2)),
            const((hd2, 1)), const((1, 1)),
            const((hidden_dim, num_classes)), const((1, num_classes)),
        ],
        out_specs=[
            batched3((BT, N, HW)),
            batched3((BT, N, hidden_dim)),
            batched3((BT, 1, 1)),
            batched3((BT, N, 4)),
            batched3((BT, N, 1)),
            batched3((BT, N, num_classes)),
        ],
        out_shape=(
            jax.ShapeDtypeStruct((B_pad, N, HW), jnp.float32),
            jax.ShapeDtypeStruct((B_pad, N, hidden_dim), jnp.float32),
            jax.ShapeDtypeStruct((B_pad, 1, 1), jnp.float32),
            jax.ShapeDtypeStruct((B_pad, N, 4), jnp.float32),
            jax.ShapeDtypeStruct((B_pad, N, 1), jnp.float32),
            jax.ShapeDtypeStruct((B_pad, N, num_classes), jnp.float32),
        ),
        compiler_params=pltpu.CompilerParams(
            dimension_semantics=("parallel",)),
    )(x_pix,
      wf_half, bns_half, bnb_half,
      wk_feat, wv_feat, kbase, vbase, q_exp,
      params['bbox_w1'], row(params['bbox_b1']),
      row(params['bbox_ln_g']), row(params['bbox_ln_b']),
      params['bbox_w2'], row(params['bbox_b2']),
      params['bbox_w3'], row(params['bbox_b3']),
      params['cls_w1'], row(params['cls_b1']),
      row(params['cls_ln_g']), row(params['cls_ln_b']),
      params['cls_w2'], row(params['cls_b2']),
      params['cls_w3'], row(params['cls_b3']),
      params['ctp_w'], row(params['ctp_b']))

    attn_w, spot_feat, div_part, boxes, scores, class_logits = outs
    attn_w = attn_w[:B]
    spot_feat = spot_feat[:B]
    boxes = boxes[:B]
    scores = scores[:B]
    class_logits = class_logits[:B]

    # reference sums over the whole batch, normalizes by N*(N-1), weight 0.1
    diversity_loss = jnp.sum(div_part[:B]) / (N * (N - 1)) * 0.1

    return {
        'pred_boxes': boxes,                                 # (B, N, 4)
        'pred_scores': scores,                               # (B, N, 1), sigmoid
        'pred_logits': class_logits,                         # (B, N, num_classes)
        'attention_maps': attn_w.reshape(B, N, H, W),        # (B, N, H, W)
        'diversity_loss': diversity_loss,                    # scalar
        'spotlight_features': spot_feat,                     # (B, N, hidden_dim)
    }


# -----------------------------------------------------------------------------
# Deterministic parameter initialization (synthetic; shapes from __init__)
# -----------------------------------------------------------------------------
def init_params(key, in_channels, num_spotlights, hidden_dim, spotlight_dim,
                num_classes):
    hd2 = hidden_dim // 2
    keys = iter(jax.random.split(key, 32))

    def w(shape, scale=0.05):
        return jax.random.normal(next(keys), shape, jnp.float32) * scale

    p = {}
    p['spotlight_sources'] = jax.random.normal(
        next(keys), (num_spotlights, spotlight_dim), jnp.float32) * 0.02
    p['pos_w'] = w((2, hd2)); p['pos_b'] = w((hd2,))
    p['feat_w'] = w((in_channels, hidden_dim)); p['feat_b'] = w((hidden_dim,))
    p['bn_gamma'] = jnp.ones((hidden_dim,), jnp.float32)
    p['bn_beta'] = jnp.zeros((hidden_dim,), jnp.float32)
    p['bn_mean'] = jnp.zeros((hidden_dim,), jnp.float32)
    p['bn_var'] = jnp.ones((hidden_dim,), jnp.float32)
    p['key_w'] = w((hidden_dim, spotlight_dim)); p['key_b'] = w((spotlight_dim,))
    p['val_w'] = w((hidden_dim, hidden_dim)); p['val_b'] = w((hidden_dim,))
    p['ctp_w'] = w((hidden_dim, num_classes))
    p['ctp_b'] = jnp.zeros((num_classes,), jnp.float32)
    p['bbox_w1'] = w((hidden_dim, hidden_dim)); p['bbox_b1'] = w((hidden_dim,))
    p['bbox_ln_g'] = jnp.ones((hidden_dim,), jnp.float32)
    p['bbox_ln_b'] = jnp.zeros((hidden_dim,), jnp.float32)
    p['bbox_w2'] = w((hidden_dim, hd2)); p['bbox_b2'] = w((hd2,))
    p['bbox_w3'] = w((hd2, 4)); p['bbox_b3'] = jnp.zeros((4,), jnp.float32)
    p['cls_w1'] = w((hidden_dim, hidden_dim)); p['cls_b1'] = w((hidden_dim,))
    p['cls_ln_g'] = jnp.ones((hidden_dim,), jnp.float32)
    p['cls_ln_b'] = jnp.zeros((hidden_dim,), jnp.float32)
    p['cls_w2'] = w((hidden_dim, hd2)); p['cls_b2'] = w((hd2,))
    p['cls_w3'] = w((hd2, 1)); p['cls_b3'] = jnp.zeros((1,), jnp.float32)
    return p


if __name__ == "__main__":
    # small config consistent with the module
    B, C, H, W = 2, 8, 16, 16
    num_spotlights = 8
    hidden_dim = 32
    spotlight_dim = 16
    num_heads = 4
    num_classes = 8

    key = jax.random.PRNGKey(0)
    kx, kp = jax.random.split(key)
    x = jax.random.normal(kx, (B, C, H, W), jnp.float32)
    params = init_params(kp, C, num_spotlights, hidden_dim, spotlight_dim,
                         num_classes)

    out = spotlight_attention_forward(
        x, params,
        num_spotlights=num_spotlights, hidden_dim=hidden_dim,
        spotlight_dim=spotlight_dim, num_heads=num_heads,
        num_classes=num_classes)
    out = jax.block_until_ready(out)

    assert out['pred_boxes'].shape == (B, num_spotlights, 4)
    assert out['pred_scores'].shape == (B, num_spotlights, 1)
    assert out['pred_logits'].shape == (B, num_spotlights, num_classes)
    assert out['attention_maps'].shape == (B, num_spotlights, H, W)
    assert out['spotlight_features'].shape == (B, num_spotlights, hidden_dim)
    for v in jax.tree_util.tree_leaves(out):
        assert bool(jnp.all(jnp.isfinite(v)))

    print("KERNEL_OK")
</pallas_src>

<mosaic_0001>
module attributes {stable_mosaic.version = 11 : i64} {
  func.func @spotlight_fused_kernel(%arg0: i32, %arg1: memref<2x256x8xf32, #tpu.memory_space<vmem>>, %arg2: memref<8x16xf32, #tpu.memory_space<vmem>>, %arg3: memref<1x16xf32, #tpu.memory_space<vmem>>, %arg4: memref<1x16xf32, #tpu.memory_space<vmem>>, %arg5: memref<16x16xf32, #tpu.memory_space<vmem>>, %arg6: memref<16x32xf32, #tpu.memory_space<vmem>>, %arg7: memref<256x16xf32, #tpu.memory_space<vmem>>, %arg8: memref<256x32xf32, #tpu.memory_space<vmem>>, %arg9: memref<32x16xf32, #tpu.memory_space<vmem>>, %arg10: memref<32x32xf32, #tpu.memory_space<vmem>>, %arg11: memref<1x32xf32, #tpu.memory_space<vmem>>, %arg12: memref<1x32xf32, #tpu.memory_space<vmem>>, %arg13: memref<1x32xf32, #tpu.memory_space<vmem>>, %arg14: memref<32x16xf32, #tpu.memory_space<vmem>>, %arg15: memref<1x16xf32, #tpu.memory_space<vmem>>, %arg16: memref<16x4xf32, #tpu.memory_space<vmem>>, %arg17: memref<1x4xf32, #tpu.memory_space<vmem>>, %arg18: memref<32x32xf32, #tpu.memory_space<vmem>>, %arg19: memref<1x32xf32, #tpu.memory_space<vmem>>, %arg20: memref<1x32xf32, #tpu.memory_space<vmem>>, %arg21: memref<1x32xf32, #tpu.memory_space<vmem>>, %arg22: memref<32x16xf32, #tpu.memory_space<vmem>>, %arg23: memref<1x16xf32, #tpu.memory_space<vmem>>, %arg24: memref<16x1xf32, #tpu.memory_space<vmem>>, %arg25: memref<1x1xf32, #tpu.memory_space<vmem>>, %arg26: memref<32x8xf32, #tpu.memory_space<vmem>>, %arg27: memref<1x8xf32, #tpu.memory_space<vmem>>, %arg28: memref<2x8x256xf32, #tpu.memory_space<vmem>>, %arg29: memref<2x8x32xf32, #tpu.memory_space<vmem>>, %arg30: memref<2x1x1xf32, #tpu.memory_space<vmem>>, %arg31: memref<2x8x4xf32, #tpu.memory_space<vmem>>, %arg32: memref<2x8x1xf32, #tpu.memory_space<vmem>>, %arg33: memref<2x8x8xf32, #tpu.memory_space<vmem>>) attributes {dimension_semantics = [#tpu.dimension_semantics<parallel>], iteration_bounds = array<i64: 1>, scalar_prefetch = 0 : i64, scratch_operands = 0 : i64, tpu.core_type = #tpu.core_type<tc>, window_params = [{transform_indices = @transform_0, window_bounds = array<i64: 2, 256, 8>}, {pipeline_mode = #tpu.pipeline_mode<synchronous>, transform_indices = @transform_1, window_bounds = array<i64: 8, 16>}, {pipeline_mode = #tpu.pipeline_mode<synchronous>, transform_indices = @transform_2, window_bounds = array<i64: 1, 16>}, {pipeline_mode = #tpu.pipeline_mode<synchronous>, transform_indices = @transform_3, window_bounds = array<i64: 1, 16>}, {pipeline_mode = #tpu.pipeline_mode<synchronous>, transform_indices = @transform_4, window_bounds = array<i64: 16, 16>}, {pipeline_mode = #tpu.pipeline_mode<synchronous>, transform_indices = @transform_5, window_bounds = array<i64: 16, 32>}, {pipeline_mode = #tpu.pipeline_mode<synchronous>, transform_indices = @transform_6, window_bounds = array<i64: 256, 16>}, {pipeline_mode = #tpu.pipeline_mode<synchronous>, transform_indices = @transform_7, window_bounds = array<i64: 256, 32>}, {pipeline_mode = #tpu.pipeline_mode<synchronous>, transform_indices = @transform_8, window_bounds = array<i64: 32, 16>}, {pipeline_mode = #tpu.pipeline_mode<synchronous>, transform_indices = @transform_9, window_bounds = array<i64: 32, 32>}, {pipeline_mode = #tpu.pipeline_mode<synchronous>, transform_indices = @transform_10, window_bounds = array<i64: 1, 32>}, {pipeline_mode = #tpu.pipeline_mode<synchronous>, transform_indices = @transform_11, window_bounds = array<i64: 1, 32>}, {pipeline_mode = #tpu.pipeline_mode<synchronous>, transform_indices = @transform_12, window_bounds = array<i64: 1, 32>}, {pipeline_mode = #tpu.pipeline_mode<synchronous>, transform_indices = @transform_13, window_bounds = array<i64: 32, 16>}, {pipeline_mode = #tpu.pipeline_mode<synchronous>, transform_indices = @transform_14, window_bounds = array<i64: 1, 16>}, {pipeline_mode = #tpu.pipeline_mode<synchronous>, transform_indices = @transform_15, window_bounds = array<i64: 16, 4>}, {pipeline_mode = #tpu.pipeline_mode<synchronous>, transform_indices = @transform_16, window_bounds = array<i64: 1, 4>}, {pipeline_mode = #tpu.pipeline_mode<synchronous>, transform_indices = @transform_17, window_bounds = array<i64: 32, 32>}, {pipeline_mode = #tpu.pipeline_mode<synchronous>, transform_indices = @transform_18, window_bounds = array<i64: 1, 32>}, {pipeline_mode = #tpu.pipeline_mode<synchronous>, transform_indices = @transform_19, window_bounds = array<i64: 1, 32>}, {pipeline_mode = #tpu.pipeline_mode<synchronous>, transform_indices = @transform_20, window_bounds = array<i64: 1, 32>}, {pipeline_mode = #tpu.pipeline_mode<synchronous>, transform_indices = @transform_21, window_bounds = array<i64: 32, 16>}, {pipeline_mode = #tpu.pipeline_mode<synchronous>, transform_indices = @transform_22, window_bounds = array<i64: 1, 16>}, {pipeline_mode = #tpu.pipeline_mode<synchronous>, transform_indices = @transform_23, window_bounds = array<i64: 16, 1>}, {pipeline_mode = #tpu.pipeline_mode<synchronous>, transform_indices = @transform_24, window_bounds = array<i64: 1, 1>}, {pipeline_mode = #tpu.pipeline_mode<synchronous>, transform_indices = @transform_25, window_bounds = array<i64: 32, 8>}, {pipeline_mode = #tpu.pipeline_mode<synchronous>, transform_indices = @transform_26, window_bounds = array<i64: 1, 8>}, {transform_indices = @transform_27, window_bounds = array<i64: 2, 8, 256>}, {transform_indices = @transform_28, window_bounds = array<i64: 2, 8, 32>}, {transform_indices = @transform_29, window_bounds = array<i64: 2, 1, 1>}, {transform_indices = @transform_30, window_bounds = array<i64: 2, 8, 4>}, {transform_indices = @transform_31, window_bounds = array<i64: 2, 8, 1>}, {transform_indices = @transform_32, window_bounds = array<i64: 2, 8, 8>}]} {
    %c0 = arith.constant 0 : index
    %c0_0 = arith.constant 0 : index
    %c0_1 = arith.constant 0 : index
    %0 = vector.load %arg1[%c0, %c0_0, %c0_1] : memref<2x256x8xf32, #tpu.memory_space<vmem>>, vector<2x256x8xf32>
    %1 = vector.shape_cast %0 : vector<2x256x8xf32> to vector<512x8xf32>
    %c0_2 = arith.constant 0 : index
    %c0_3 = arith.constant 0 : index
    %2 = vector.load %arg2[%c0_2, %c0_3] : memref<8x16xf32, #tpu.memory_space<vmem>>, vector<8x16xf32>
    %cst = arith.constant dense<0.000000e+00> : vector<512x16xf32>
    %3 = tpu.matmul %1, %2, %cst {dimension_numbers = #tpu.dot_dimension_numbers<[1], [0], [0], [1], [0, 0, 1, 1], [], []>} : vector<512x8xf32>, vector<8x16xf32>, vector<512x16xf32> -> vector<512x16xf32>
    %c0_4 = arith.constant 0 : index
    %c0_5 = arith.constant 0 : index
    %4 = vector.load %arg3[%c0_4, %c0_5] : memref<1x16xf32, #tpu.memory_space<vmem>>, vector<1x16xf32>
    %5 = vector.broadcast %4 : vector<1x16xf32> to vector<512x16xf32>
    %6 = arith.mulf %3, %5 : vector<512x16xf32>
    %c0_6 = arith.constant 0 : index
    %c0_7 = arith.constant 0 : index
    %7 = vector.load %arg4[%c0_6, %c0_7] : memref<1x16xf32, #tpu.memory_space<vmem>>, vector<1x16xf32>
    %8 = vector.broadcast %7 : vector<1x16xf32> to vector<512x16xf32>
    %9 = arith.addf %6, %8 : vector<512x16xf32>
    %cst_8 = arith.constant 0.000000e+00 : f32
    %10 = vector.broadcast %cst_8 : f32 to vector<512x16xf32>
    %11 = arith.maximumf %9, %10 : vector<512x16xf32>
    %c0_9 = arith.constant 0 : index
    %c0_10 = arith.constant 0 : index
    %12 = vector.load %arg5[%c0_9, %c0_10] : memref<16x16xf32, #tpu.memory_space<vmem>>, vector<16x16xf32>
    %cst_11 = arith.constant dense<0.000000e+00> : vector<512x16xf32>
    %13 = tpu.matmul %11, %12, %cst_11 {dimension_numbers = #tpu.dot_dimension_numbers<[1], [0], [0], [1], [0, 0, 1, 1], [], []>} : vector<512x16xf32>, vector<16x16xf32>, vector<512x16xf32> -> vector<512x16xf32>
    %c0_12 = arith.constant 0 : index
    %c0_13 = arith.constant 0 : index
    %14 = vector.load %arg6[%c0_12, %c0_13] : memref<16x32xf32, #tpu.memory_space<vmem>>, vector<16x32xf32>
    %cst_14 = arith.constant dense<0.000000e+00> : vector<512x32xf32>
    %15 = tpu.matmul %11, %14, %cst_14 {dimension_numbers = #tpu.dot_dimension_numbers<[1], [0], [0], [1], [0, 0, 1, 1], [], []>} : vector<512x16xf32>, vector<16x32xf32>, vector<512x32xf32> -> vector<512x32xf32>
    %c0_15 = arith.constant 0 : index
    %c0_16 = arith.constant 0 : index
    %16 = vector.load %arg9[%c0_15, %c0_16] : memref<32x16xf32, #tpu.memory_space<vmem>>, vector<32x16xf32>
    %c0_17 = arith.constant 0 : index
    %c0_18 = arith.constant 0 : index
    %17 = vector.load %arg7[%c0_17, %c0_18] : memref<256x16xf32, #tpu.memory_space<vmem>>, vector<256x16xf32>
    %c0_19 = arith.constant 0 : index
    %c0_20 = arith.constant 0 : index
    %18 = vector.load %arg8[%c0_19, %c0_20] : memref<256x32xf32, #tpu.memory_space<vmem>>, vector<256x32xf32>
    %19 = vector.extract_strided_slice %13 {offsets = [0, 0], sizes = [256, 16], strides = [1, 1]} : vector<512x16xf32> to vector<256x16xf32>
    %20 = arith.addf %19, %17 : vector<256x16xf32>
    %21 = vector.extract_strided_slice %15 {offsets = [0, 0], sizes = [256, 32], strides = [1, 1]} : vector<512x32xf32> to vector<256x32xf32>
    %22 = arith.addf %21, %18 : vector<256x32xf32>
    %cst_21 = arith.constant dense<0.000000e+00> : vector<32x256xf32>
    %23 = tpu.matmul %16, %20, %cst_21 {dimension_numbers = #tpu.dot_dimension_numbers<[1], [1], [0], [0], [0, 0, 1, 0], [], []>} : vector<32x16xf32>, vector<256x16xf32>, vector<32x256xf32> -> vector<32x256xf32>
    %cst_22 = arith.constant dense<0xFF800000> : vector<32xf32>
    %24 = vector.multi_reduction <maximumf>, %23, %cst_22 [1] : vector<32x256xf32> to vector<32xf32>
    %25 = vector.shape_cast %24 : vector<32xf32> to vector<32x1xf32>
    %26 = vector.broadcast %25 : vector<32x1xf32> to vector<32x256xf32>
    %27 = arith.subf %23, %26 : vector<32x256xf32>
    %28 = math.exp %27 : vector<32x256xf32>
    %cst_23 = arith.constant dense<0.000000e+00> : vector<32xf32>
    %29 = vector.multi_reduction <add>, %28, %cst_23 [1] : vector<32x256xf32> to vector<32xf32>
    %30 = vector.shape_cast %29 : vector<32xf32> to vector<32x1xf32>
    %31 = tpu.reciprocal %30 : vector<32x1xf32> -> vector<32x1xf32>
    %32 = vector.broadcast %31 : vector<32x1xf32> to vector<32x256xf32>
    %33 = arith.mulf %28, %32 : vector<32x256xf32>
    %34 = vector.extract_strided_slice %33 {offsets = [0, 0], sizes = [8, 256], strides = [1, 1]} : vector<32x256xf32> to vector<8x256xf32>
    %35 = vector.extract_strided_slice %33 {offsets = [8, 0], sizes = [8, 256], strides = [1, 1]} : vector<32x256xf32> to vector<8x256xf32>
    %36 = arith.addf %34, %35 : vector<8x256xf32>
    %37 = vector.extract_strided_slice %33 {offsets = [16, 0], sizes = [8, 256], strides = [1, 1]} : vector<32x256xf32> to vector<8x256xf32>
    %38 = arith.addf %36, %37 : vector<8x256xf32>
    %39 = vector.extract_strided_slice %33 {offsets = [24, 0], sizes = [8, 256], strides = [1, 1]} : vector<32x256xf32> to vector<8x256xf32>
    %40 = arith.addf %38, %39 : vector<8x256xf32>
    %cst_24 = arith.constant 2.500000e-01 : f32
    %41 = vector.broadcast %cst_24 : f32 to vector<8x256xf32>
    %42 = arith.mulf %40, %41 : vector<8x256xf32>
    %cst_25 = arith.constant dense<0.000000e+00> : vector<8x32xf32>
    %43 = tpu.matmul %42, %22, %cst_25 {dimension_numbers = #tpu.dot_dimension_numbers<[1], [0], [0], [1], [0, 0, 1, 1], [], []>} : vector<8x256xf32>, vector<256x32xf32>, vector<8x32xf32> -> vector<8x32xf32>
    %c0_26 = arith.constant 0 : index
    %c0_27 = arith.constant 0 : index
    %c0_28 = arith.constant 0 : index
    %44 = vector.load %arg28[%c0_26, %c0_27, %c0_28] : memref<2x8x256xf32, #tpu.memory_space<vmem>>, vector<1x8x256xf32>
    %45 = vector.shape_cast %44 : vector<1x8x256xf32> to vector<8x256xf32>
    %46 = vector.shape_cast %42 : vector<8x256xf32> to vector<1x8x256xf32>
    tpu.vector_store %arg28[%c0_26, %c0_27, %c0_28], %46 {strides = array<i32>} : memref<2x8x256xf32, #tpu.memory_space<vmem>>, vector<1x8x256xf32>,
    %47 = arith.mulf %42, %42 : vector<8x256xf32>
    %cst_29 = arith.constant dense<0.000000e+00> : vector<8xf32>
    %48 = vector.multi_reduction <add>, %47, %cst_29 [1] : vector<8x256xf32> to vector<8xf32>
    %49 = vector.shape_cast %48 : vector<8xf32> to vector<8x1xf32>
    %cst_30 = arith.constant 1.000000e-24 : f32
    %50 = vector.broadcast %cst_30 : f32 to vector<8x1xf32>
    %51 = arith.maximumf %49, %50 : vector<8x1xf32>
    %52 = math.rsqrt %51 : vector<8x1xf32>
    %53 = vector.broadcast %52 : vector<8x1xf32> to vector<8x256xf32>
    %54 = arith.mulf %42, %53 : vector<8x256xf32>
    %cst_31 = arith.constant dense<0.000000e+00> : vector<8x8xf32>
    %55 = tpu.matmul %54, %54, %cst_31 {dimension_numbers = #tpu.dot_dimension_numbers<[1], [1], [0], [0], [0, 0, 1, 0], [], []>} : vector<8x256xf32>, vector<8x256xf32>, vector<8x8xf32> -> vector<8x8xf32>
    %56 = vector.shape_cast %55 : vector<8x8xf32> to vector<1x8x8xf32>
    %cst_32 = arith.constant dense<0.000000e+00> : vector<1xf32>
    %57 = vector.multi_reduction <add>, %56, %cst_32 [1, 2] : vector<1x8x8xf32> to vector<1xf32>
    %58 = vector.shape_cast %57 : vector<1xf32> to vector<1x1x1xf32>
    %59 = vector.extract %58[0, 0, 0] : f32 from vector<1x1x1xf32>
    %60 = vector.broadcast %59 : f32 to vector<1x1xf32>
    %61 = arith.mulf %54, %54 : vector<8x256xf32>
    %62 = vector.shape_cast %61 : vector<8x256xf32> to vector<1x8x256xf32>
    %cst_33 = arith.constant dense<0.000000e+00> : vector<1xf32>
    %63 = vector.multi_reduction <add>, %62, %cst_33 [1, 2] : vector<1x8x256xf32> to vector<1xf32>
    %64 = vector.shape_cast %63 : vector<1xf32> to vector<1x1x1xf32>
    %65 = vector.extract %64[0, 0, 0] : f32 from vector<1x1x1xf32>
    %66 = vector.broadcast %65 : f32 to vector<1x1xf32>
    %67 = arith.subf %60, %66 : vector<1x1xf32>
    %c0_34 = arith.constant 0 : index
    %c0_35 = arith.constant 0 : index
    %c0_36 = arith.constant 0 : index
    %68 = vector.load %arg30[%c0_34, %c0_35, %c0_36] : memref<2x1x1xf32, #tpu.memory_space<vmem>>, vector<1x1x1xf32>
    %69 = vector.shape_cast %68 : vector<1x1x1xf32> to vector<1x1xf32>
    %70 = vector.shape_cast %67 : vector<1x1xf32> to vector<1x1x1xf32>
    tpu.vector_store %arg30[%c0_34, %c0_35, %c0_36], %70 {strides = array<i32>} : memref<2x1x1xf32, #tpu.memory_space<vmem>>, vector<1x1x1xf32>,
    %71 = vector.extract_strided_slice %13 {offsets = [256, 0], sizes = [256, 16], strides = [1, 1]} : vector<512x16xf32> to vector<256x16xf32>
    %72 = arith.addf %71, %17 : vector<256x16xf32>
    %73 = vector.extract_strided_slice %15 {offsets = [256, 0], sizes = [256, 32], strides = [1, 1]} : vector<512x32xf32> to vector<256x32xf32>
    %74 = arith.addf %73, %18 : vector<256x32xf32>
    %cst_37 = arith.constant dense<0.000000e+00> : vector<32x256xf32>
    %75 = tpu.matmul %16, %72, %cst_37 {dimension_numbers = #tpu.dot_dimension_numbers<[1], [1], [0], [0], [0, 0, 1, 0], [], []>} : vector<32x16xf32>, vector<256x16xf32>, vector<32x256xf32> -> vector<32x256xf32>
    %cst_38 = arith.constant dense<0xFF800000> : vector<32xf32>
    %76 = vector.multi_reduction <maximumf>, %75, %cst_38 [1] : vector<32x256xf32> to vector<32xf32>
    %77 = vector.shape_cast %76 : vector<32xf32> to vector<32x1xf32>
    %78 = vector.broadcast %77 : vector<32x1xf32> to vector<32x256xf32>
    %79 = arith.subf %75, %78 : vector<32x256xf32>
    %80 = math.exp %79 : vector<32x256xf32>
    %cst_39 = arith.constant dense<0.000000e+00> : vector<32xf32>
    %81 = vector.multi_reduction <add>, %80, %cst_39 [1] : vector<32x256xf32> to vector<32xf32>
    %82 = vector.shape_cast %81 : vector<32xf32> to vector<32x1xf32>
    %83 = tpu.reciprocal %82 : vector<32x1xf32> -> vector<32x1xf32>
    %84 = vector.broadcast %83 : vector<32x1xf32> to vector<32x256xf32>
    %85 = arith.mulf %80, %84 : vector<32x256xf32>
    %86 = vector.extract_strided_slice %85 {offsets = [0, 0], sizes = [8, 256], strides = [1, 1]} : vector<32x256xf32> to vector<8x256xf32>
    %87 = vector.extract_strided_slice %85 {offsets = [8, 0], sizes = [8, 256], strides = [1, 1]} : vector<32x256xf32> to vector<8x256xf32>
    %88 = arith.addf %86, %87 : vector<8x256xf32>
    %89 = vector.extract_strided_slice %85 {offsets = [16, 0], sizes = [8, 256], strides = [1, 1]} : vector<32x256xf32> to vector<8x256xf32>
    %90 = arith.addf %88, %89 : vector<8x256xf32>
    %91 = vector.extract_strided_slice %85 {offsets = [24, 0], sizes = [8, 256], strides = [1, 1]} : vector<32x256xf32> to vector<8x256xf32>
    %92 = arith.addf %90, %91 : vector<8x256xf32>
    %cst_40 = arith.constant 2.500000e-01 : f32
    %93 = vector.broadcast %cst_40 : f32 to vector<8x256xf32>
    %94 = arith.mulf %92, %93 : vector<8x256xf32>
    %cst_41 = arith.constant dense<0.000000e+00> : vector<8x32xf32>
    %95 = tpu.matmul %94, %74, %cst_41 {dimension_numbers = #tpu.dot_dimension_numbers<[1], [0], [0], [1], [0, 0, 1, 1], [], []>} : vector<8x256xf32>, vector<256x32xf32>, vector<8x32xf32> -> vector<8x32xf32>
    %c1 = arith.constant 1 : index
    %c0_42 = arith.constant 0 : index
    %c0_43 = arith.constant 0 : index
    %96 = vector.load %arg28[%c1, %c0_42, %c0_43] : memref<2x8x256xf32, #tpu.memory_space<vmem>>, vector<1x8x256xf32>
    %97 = vector.shape_cast %96 : vector<1x8x256xf32> to vector<8x256xf32>
    %98 = vector.shape_cast %94 : vector<8x256xf32> to vector<1x8x256xf32>
    tpu.vector_store %arg28[%c1, %c0_42, %c0_43], %98 {strides = array<i32>} : memref<2x8x256xf32, #tpu.memory_space<vmem>>, vector<1x8x256xf32>,
    %99 = arith.mulf %94, %94 : vector<8x256xf32>
    %cst_44 = arith.constant dense<0.000000e+00> : vector<8xf32>
    %100 = vector.multi_reduction <add>, %99, %cst_44 [1] : vector<8x256xf32> to vector<8xf32>
    %101 = vector.shape_cast %100 : vector<8xf32> to vector<8x1xf32>
    %cst_45 = arith.constant 1.000000e-24 : f32
    %102 = vector.broadcast %cst_45 : f32 to vector<8x1xf32>
    %103 = arith.maximumf %101, %102 : vector<8x1xf32>
    %104 = math.rsqrt %103 : vector<8x1xf32>
    %105 = vector.broadcast %104 : vector<8x1xf32> to vector<8x256xf32>
    %106 = arith.mulf %94, %105 : vector<8x256xf32>
    %cst_46 = arith.constant dense<0.000000e+00> : vector<8x8xf32>
    %107 = tpu.matmul %106, %106, %cst_46 {dimension_numbers = #tpu.dot_dimension_numbers<[1], [1], [0], [0], [0, 0, 1, 0], [], []>} : vector<8x256xf32>, vector<8x256xf32>, vector<8x8xf32> -> vector<8x8xf32>
    %108 = vector.shape_cast %107 : vector<8x8xf32> to vector<1x8x8xf32>
    %cst_47 = arith.constant dense<0.000000e+00> : vector<1xf32>
    %109 = vector.multi_reduction <add>, %108, %cst_47 [1, 2] : vector<1x8x8xf32> to vector<1xf32>
    %110 = vector.shape_cast %109 : vector<1xf32> to vector<1x1x1xf32>
    %111 = vector.extract %110[0, 0, 0] : f32 from vector<1x1x1xf32>
    %112 = vector.broadcast %111 : f32 to vector<1x1xf32>
    %113 = arith.mulf %106, %106 : vector<8x256xf32>
    %114 = vector.shape_cast %113 : vector<8x256xf32> to vector<1x8x256xf32>
    %cst_48 = arith.constant dense<0.000000e+00> : vector<1xf32>
    %115 = vector.multi_reduction <add>, %114, %cst_48 [1, 2] : vector<1x8x256xf32> to vector<1xf32>
    %116 = vector.shape_cast %115 : vector<1xf32> to vector<1x1x1xf32>
    %117 = vector.extract %116[0, 0, 0] : f32 from vector<1x1x1xf32>
    %118 = vector.broadcast %117 : f32 to vector<1x1xf32>
    %119 = arith.subf %112, %118 : vector<1x1xf32>
    %c1_49 = arith.constant 1 : index
    %c0_50 = arith.constant 0 : index
    %c0_51 = arith.constant 0 : index
    %120 = vector.load %arg30[%c1_49, %c0_50, %c0_51] : memref<2x1x1xf32, #tpu.memory_space<vmem>>, vector<1x1x1xf32>
    %121 = vector.shape_cast %120 : vector<1x1x1xf32> to vector<1x1xf32>
    %122 = vector.shape_cast %119 : vector<1x1xf32> to vector<1x1x1xf32>
    tpu.vector_store %arg30[%c1_49, %c0_50, %c0_51], %122 {strides = array<i32>} : memref<2x1x1xf32, #tpu.memory_space<vmem>>, vector<1x1x1xf32>,
    %123 = tpu.concatenate %43, %95 in 0 : vector<8x32xf32>, vector<8x32xf32> -> vector<16x32xf32>
    %124 = vector.shape_cast %123 : vector<16x32xf32> to vector<2x8x32xf32>
    %c0_52 = arith.constant 0 : index
    %c0_53 = arith.constant 0 : index
    %c0_54 = arith.constant 0 : index
    %125 = vector.load %arg29[%c0_52, %c0_53, %c0_54] : memref<2x8x32xf32, #tpu.memory_space<vmem>>, vector<2x8x32xf32>
    tpu.vector_store %arg29[%c0_52, %c0_53, %c0_54], %124 {strides = array<i32>} : memref<2x8x32xf32, #tpu.memory_space<vmem>>, vector<2x8x32xf32>,
    %c0_55 = arith.constant 0 : index
    %c0_56 = arith.constant 0 : index
    %126 = vector.load %arg10[%c0_55, %c0_56] : memref<32x32xf32, #tpu.memory_space<vmem>>, vector<32x32xf32>
    %cst_57 = arith.constant dense<0.000000e+00> : vector<16x32xf32>
    %127 = tpu.matmul %123, %126, %cst_57 {dimension_numbers = #tpu.dot_dimension_numbers<[1], [0], [0], [1], [0, 0, 1, 1], [], []>} : vector<16x32xf32>, vector<32x32xf32>, vector<16x32xf32> -> vector<16x32xf32>
    %c0_58 = arith.constant 0 : index
    %c0_59 = arith.constant 0 : index
    %128 = vector.load %arg11[%c0_58, %c0_59] : memref<1x32xf32, #tpu.memory_space<vmem>>, vector<1x32xf32>
    %129 = vector.broadcast %128 : vector<1x32xf32> to vector<16x32xf32>
    %130 = arith.addf %127, %129 : vector<16x32xf32>
    %cst_60 = arith.constant dense<0.000000e+00> : vector<16xf32>
    %131 = vector.multi_reduction <add>, %130, %cst_60 [1] : vector<16x32xf32> to vector<16xf32>
    %132 = vector.shape_cast %131 : vector<16xf32> to vector<16x1xf32>
    %cst_61 = arith.constant 3.200000e+01 : f32
    %133 = vector.broadcast %cst_61 : f32 to vector<16x1xf32>
    %134 = arith.divf %132, %133 : vector<16x1xf32>
    %135 = vector.broadcast %134 : vector<16x1xf32> to vector<16x32xf32>
    %136 = arith.subf %130, %135 : vector<16x32xf32>
    %137 = arith.mulf %136, %136 : vector<16x32xf32>
    %cst_62 = arith.constant dense<0.000000e+00> : vector<16xf32>
    %138 = vector.multi_reduction <add>, %137, %cst_62 [1] : vector<16x32xf32> to vector<16xf32>
    %139 = vector.shape_cast %138 : vector<16xf32> to vector<16x1xf32>
    %cst_63 = arith.constant 3.200000e+01 : f32
    %140 = vector.broadcast %cst_63 : f32 to vector<16x1xf32>
    %141 = arith.divf %139, %140 : vector<16x1xf32>
    %142 = vector.broadcast %134 : vector<16x1xf32> to vector<16x32xf32>
    %143 = arith.subf %130, %142 : vector<16x32xf32>
    %cst_64 = arith.constant 9.99999974E-6 : f32
    %144 = vector.broadcast %cst_64 : f32 to vector<16x1xf32>
    %145 = arith.addf %141, %144 : vector<16x1xf32>
    %146 = math.rsqrt %145 : vector<16x1xf32>
    %147 = vector.broadcast %146 : vector<16x1xf32> to vector<16x32xf32>
    %148 = arith.mulf %143, %147 : vector<16x32xf32>
    %c0_65 = arith.constant 0 : index
    %c0_66 = arith.constant 0 : index
    %149 = vector.load %arg12[%c0_65, %c0_66] : memref<1x32xf32, #tpu.memory_space<vmem>>, vector<1x32xf32>
    %150 = vector.broadcast %149 : vector<1x32xf32> to vector<16x32xf32>
    %151 = arith.mulf %148, %150 : vector<16x32xf32>
    %c0_67 = arith.constant 0 : index
    %c0_68 = arith.constant 0 : index
    %152 = vector.load %arg13[%c0_67, %c0_68] : memref<1x32xf32, #tpu.memory_space<vmem>>, vector<1x32xf32>
    %153 = vector.broadcast %152 : vector<1x32xf32> to vector<16x32xf32>
    %154 = arith.addf %151, %153 : vector<16x32xf32>
    %cst_69 = arith.constant 0.000000e+00 : f32
    %155 = vector.broadcast %cst_69 : f32 to vector<16x32xf32>
    %156 = arith.maximumf %154, %155 : vector<16x32xf32>
    %c0_70 = arith.constant 0 : index
    %c0_71 = arith.constant 0 : index
    %157 = vector.load %arg14[%c0_70, %c0_71] : memref<32x16xf32, #tpu.memory_space<vmem>>, vector<32x16xf32>
    %cst_72 = arith.constant dense<0.000000e+00> : vector<16x16xf32>
    %158 = tpu.matmul %156, %157, %cst_72 {dimension_numbers = #tpu.dot_dimension_numbers<[1], [0], [0], [1], [0, 0, 1, 1], [], []>} : vector<16x32xf32>, vector<32x16xf32>, vector<16x16xf32> -> vector<16x16xf32>
    %c0_73 = arith.constant 0 : index
    %c0_74 = arith.constant 0 : index
    %159 = vector.load %arg15[%c0_73, %c0_74] : memref<1x16xf32, #tpu.memory_space<vmem>>, vector<1x16xf32>
    %160 = vector.broadcast %159 : vector<1x16xf32> to vector<16x16xf32>
    %161 = arith.addf %158, %160 : vector<16x16xf32>
    %cst_75 = arith.constant 0.000000e+00 : f32
    %162 = vector.broadcast %cst_75 : f32 to vector<16x16xf32>
    %163 = arith.maximumf %161, %162 : vector<16x16xf32>
    %c0_76 = arith.constant 0 : index
    %c0_77 = arith.constant 0 : index
    %164 = vector.load %arg16[%c0_76, %c0_77] : memref<16x4xf32, #tpu.memory_space<vmem>>, vector<16x4xf32>
    %cst_78 = arith.constant dense<0.000000e+00> : vector<16x4xf32>
    %165 = tpu.matmul %163, %164, %cst_78 {dimension_numbers = #tpu.dot_dimension_numbers<[1], [0], [0], [1], [0, 0, 1, 1], [], []>} : vector<16x16xf32>, vector<16x4xf32>, vector<16x4xf32> -> vector<16x4xf32>
    %c0_79 = arith.constant 0 : index
    %c0_80 = arith.constant 0 : index
    %166 = vector.load %arg17[%c0_79, %c0_80] : memref<1x4xf32, #tpu.memory_space<vmem>>, vector<1x4xf32>
    %167 = vector.broadcast %166 : vector<1x4xf32> to vector<16x4xf32>
    %168 = arith.addf %165, %167 : vector<16x4xf32>
    %c0_81 = arith.constant 0 : index
    %c0_82 = arith.constant 0 : index
    %169 = vector.load %arg18[%c0_81, %c0_82] : memref<32x32xf32, #tpu.memory_space<vmem>>, vector<32x32xf32>
    %cst_83 = arith.constant dense<0.000000e+00> : vector<16x32xf32>
    %170 = tpu.matmul %123, %169, %cst_83 {dimension_numbers = #tpu.dot_dimension_numbers<[1], [0], [0], [1], [0, 0, 1, 1], [], []>} : vector<16x32xf32>, vector<32x32xf32>, vector<16x32xf32> -> vector<16x32xf32>
    %c0_84 = arith.constant 0 : index
    %c0_85 = arith.constant 0 : index
    %171 = vector.load %arg19[%c0_84, %c0_85] : memref<1x32xf32, #tpu.memory_space<vmem>>, vector<1x32xf32>
    %172 = vector.broadcast %171 : vector<1x32xf32> to vector<16x32xf32>
    %173 = arith.addf %170, %172 : vector<16x32xf32>
    %cst_86 = arith.constant dense<0.000000e+00> : vector<16xf32>
    %174 = vector.multi_reduction <add>, %173, %cst_86 [1] : vector<16x32xf32> to vector<16xf32>
    %175 = vector.shape_cast %174 : vector<16xf32> to vector<16x1xf32>
    %cst_87 = arith.constant 3.200000e+01 : f32
    %176 = vector.broadcast %cst_87 : f32 to vector<16x1xf32>
    %177 = arith.divf %175, %176 : vector<16x1xf32>
    %178 = vector.broadcast %177 : vector<16x1xf32> to vector<16x32xf32>
    %179 = arith.subf %173, %178 : vector<16x32xf32>
    %180 = arith.mulf %179, %179 : vector<16x32xf32>
    %cst_88 = arith.constant dense<0.000000e+00> : vector<16xf32>
    %181 = vector.multi_reduction <add>, %180, %cst_88 [1] : vector<16x32xf32> to vector<16xf32>
    %182 = vector.shape_cast %181 : vector<16xf32> to vector<16x1xf32>
    %cst_89 = arith.constant 3.200000e+01 : f32
    %183 = vector.broadcast %cst_89 : f32 to vector<16x1xf32>
    %184 = arith.divf %182, %183 : vector<16x1xf32>
    %185 = vector.broadcast %177 : vector<16x1xf32> to vector<16x32xf32>
    %186 = arith.subf %173, %185 : vector<16x32xf32>
    %cst_90 = arith.constant 9.99999974E-6 : f32
    %187 = vector.broadcast %cst_90 : f32 to vector<16x1xf32>
    %188 = arith.addf %184, %187 : vector<16x1xf32>
    %189 = math.rsqrt %188 : vector<16x1xf32>
    %190 = vector.broadcast %189 : vector<16x1xf32> to vector<16x32xf32>
    %191 = arith.mulf %186, %190 : vector<16x32xf32>
    %c0_91 = arith.constant 0 : index
    %c0_92 = arith.constant 0 : index
    %192 = vector.load %arg20[%c0_91, %c0_92] : memref<1x32xf32, #tpu.memory_space<vmem>>, vector<1x32xf32>
    %193 = vector.broadcast %192 : vector<1x32xf32> to vector<16x32xf32>
    %194 = arith.mulf %191, %193 : vector<16x32xf32>
    %c0_93 = arith.constant 0 : index
    %c0_94 = arith.constant 0 : index
    %195 = vector.load %arg21[%c0_93, %c0_94] : memref<1x32xf32, #tpu.memory_space<vmem>>, vector<1x32xf32>
    %196 = vector.broadcast %195 : vector<1x32xf32> to vector<16x32xf32>
    %197 = arith.addf %194, %196 : vector<16x32xf32>
    %cst_95 = arith.constant 0.000000e+00 : f32
    %198 = vector.broadcast %cst_95 : f32 to vector<16x32xf32>
    %199 = arith.maximumf %197, %198 : vector<16x32xf32>
    %c0_96 = arith.constant 0 : index
    %c0_97 = arith.constant 0 : index
    %200 = vector.load %arg22[%c0_96, %c0_97] : memref<32x16xf32, #tpu.memory_space<vmem>>, vector<32x16xf32>
    %cst_98 = arith.constant dense<0.000000e+00> : vector<16x16xf32>
    %201 = tpu.matmul %199, %200, %cst_98 {dimension_numbers = #tpu.dot_dimension_numbers<[1], [0], [0], [1], [0, 0, 1, 1], [], []>} : vector<16x32xf32>, vector<32x16xf32>, vector<16x16xf32> -> vector<16x16xf32>
    %c0_99 = arith.constant 0 : index
    %c0_100 = arith.constant 0 : index
    %202 = vector.load %arg23[%c0_99, %c0_100] : memref<1x16xf32, #tpu.memory_space<vmem>>, vector<1x16xf32>
    %203 = vector.broadcast %202 : vector<1x16xf32> to vector<16x16xf32>
    %204 = arith.addf %201, %203 : vector<16x16xf32>
    %cst_101 = arith.constant 0.000000e+00 : f32
    %205 = vector.broadcast %cst_101 : f32 to vector<16x16xf32>
    %206 = arith.maximumf %204, %205 : vector<16x16xf32>
    %c0_102 = arith.constant 0 : index
    %c0_103 = arith.constant 0 : index
    %207 = vector.load %arg24[%c0_102, %c0_103] : memref<16x1xf32, #tpu.memory_space<vmem>>, vector<16x1xf32>
    %cst_104 = arith.constant dense<0.000000e+00> : vector<16x1xf32>
    %208 = tpu.matmul %206, %207, %cst_104 {dimension_numbers = #tpu.dot_dimension_numbers<[1], [0], [0], [1], [0, 0, 1, 1], [], []>} : vector<16x16xf32>, vector<16x1xf32>, vector<16x1xf32> -> vector<16x1xf32>
    %c0_105 = arith.constant 0 : index
    %c0_106 = arith.constant 0 : index
    %209 = vector.load %arg25[%c0_105, %c0_106] : memref<1x1xf32, #tpu.memory_space<vmem>>, vector<1x1xf32>
    %210 = vector.broadcast %209 : vector<1x1xf32> to vector<16x1xf32>
    %211 = arith.addf %208, %210 : vector<16x1xf32>
    %c0_107 = arith.constant 0 : index
    %c0_108 = arith.constant 0 : index
    %212 = vector.load %arg26[%c0_107, %c0_108] : memref<32x8xf32, #tpu.memory_space<vmem>>, vector<32x8xf32>
    %cst_109 = arith.constant dense<0.000000e+00> : vector<16x8xf32>
    %213 = tpu.matmul %123, %212, %cst_109 {dimension_numbers = #tpu.dot_dimension_numbers<[1], [0], [0], [1], [0, 0, 1, 1], [], []>} : vector<16x32xf32>, vector<32x8xf32>, vector<16x8xf32> -> vector<16x8xf32>
    %c0_110 = arith.constant 0 : index
    %c0_111 = arith.constant 0 : index
    %214 = vector.load %arg27[%c0_110, %c0_111] : memref<1x8xf32, #tpu.memory_space<vmem>>, vector<1x8xf32>
    %215 = vector.broadcast %214 : vector<1x8xf32> to vector<16x8xf32>
    %216 = arith.addf %213, %215 : vector<16x8xf32>
    %217 = vector.shape_cast %168 : vector<16x4xf32> to vector<2x8x4xf32>
    %c0_112 = arith.constant 0 : index
    %c0_113 = arith.constant 0 : index
    %c0_114 = arith.constant 0 : index
    %218 = vector.load %arg31[%c0_112, %c0_113, %c0_114] : memref<2x8x4xf32, #tpu.memory_space<vmem>>, vector<2x8x4xf32>
    tpu.vector_store %arg31[%c0_112, %c0_113, %c0_114], %217 {strides = array<i32>} : memref<2x8x4xf32, #tpu.memory_space<vmem>>, vector<2x8x4xf32>,
    %219 = arith.negf %211 : vector<16x1xf32>
    %220 = math.exp %219 : vector<16x1xf32>
    %cst_115 = arith.constant 1.000000e+00 : f32
    %221 = vector.broadcast %cst_115 : f32 to vector<16x1xf32>
    %222 = arith.addf %221, %220 : vector<16x1xf32>
    %223 = arith.divf %221, %222 : vector<16x1xf32>
    %224 = vector.shape_cast %223 : vector<16x1xf32> to vector<2x8x1xf32>
    %c0_116 = arith.constant 0 : index
    %c0_117 = arith.constant 0 : index
    %c0_118 = arith.constant 0 : index
    %225 = vector.load %arg32[%c0_116, %c0_117, %c0_118] : memref<2x8x1xf32, #tpu.memory_space<vmem>>, vector<2x8x1xf32>
    tpu.vector_store %arg32[%c0_116, %c0_117, %c0_118], %224 {strides = array<i32>} : memref<2x8x1xf32, #tpu.memory_space<vmem>>, vector<2x8x1xf32>,
    %226 = vector.shape_cast %216 : vector<16x8xf32> to vector<2x8x8xf32>
    %c0_119 = arith.constant 0 : index
    %c0_120 = arith.constant 0 : index
    %c0_121 = arith.constant 0 : index
    %227 = vector.load %arg33[%c0_119, %c0_120, %c0_121] : memref<2x8x8xf32, #tpu.memory_space<vmem>>, vector<2x8x8xf32>
    tpu.vector_store %arg33[%c0_119, %c0_120, %c0_121], %226 {strides = array<i32>} : memref<2x8x8xf32, #tpu.memory_space<vmem>>, vector<2x8x8xf32>,
    return
  }
  func.func @transform_0(%arg0: i32) -> (i32, i32, i32) {
    %c0_i32 = arith.constant 0 : i32
    %c0_i32_0 = arith.constant 0 : i32
    %c0_i32_1 = arith.constant 0 : i32
    return %arg0, %c0_i32, %c0_i32_0 : i32, i32, i32
  }
  func.func @transform_1(%arg0: i32) -> (i32, i32) {
    %c0_i32 = arith.constant 0 : i32
    %c0_i32_0 = arith.constant 0 : i32
    %c0_i32_1 = arith.constant 0 : i32
    return %c0_i32, %c0_i32_0 : i32, i32
  }
  func.func @transform_2(%arg0: i32) -> (i32, i32) {
    %c0_i32 = arith.constant 0 : i32
    %c0_i32_0 = arith.constant 0 : i32
    %c0_i32_1 = arith.constant 0 : i32
    return %c0_i32, %c0_i32_0 : i32, i32
  }
  func.func @transform_3(%arg0: i32) -> (i32, i32) {
    %c0_i32 = arith.constant 0 : i32
    %c0_i32_0 = arith.constant 0 : i32
    %c0_i32_1 = arith.constant 0 : i32
    return %c0_i32, %c0_i32_0 : i32, i32
  }
  func.func @transform_4(%arg0: i32) -> (i32, i32) {
    %c0_i32 = arith.constant 0 : i32
    %c0_i32_0 = arith.constant 0 : i32
    %c0_i32_1 = arith.constant 0 : i32
    return %c0_i32, %c0_i32_0 : i32, i32
  }
  func.func @transform_5(%arg0: i32) -> (i32, i32) {
    %c0_i32 = arith.constant 0 : i32
    %c0_i32_0 = arith.constant 0 : i32
    %c0_i32_1 = arith.constant 0 : i32
    return %c0_i32, %c0_i32_0 : i32, i32
  }
  func.func @transform_6(%arg0: i32) -> (i32, i32) {
    %c0_i32 = arith.constant 0 : i32
    %c0_i32_0 = arith.constant 0 : i32
    %c0_i32_1 = arith.constant 0 : i32
    return %c0_i32, %c0_i32_0 : i32, i32
  }
  func.func @transform_7(%arg0: i32) -> (i32, i32) {
    %c0_i32 = arith.constant 0 : i32
    %c0_i32_0 = arith.constant 0 : i32
    %c0_i32_1 = arith.constant 0 : i32
    return %c0_i32, %c0_i32_0 : i32, i32
  }
  func.func @transform_8(%arg0: i32) -> (i32, i32) {
    %c0_i32 = arith.constant 0 : i32
    %c0_i32_0 = arith.constant 0 : i32
    %c0_i32_1 = arith.constant 0 : i32
    return %c0_i32, %c0_i32_0 : i32, i32
  }
  func.func @transform_9(%arg0: i32) -> (i32, i32) {
    %c0_i32 = arith.constant 0 : i32
    %c0_i32_0 = arith.constant 0 : i32
    %c0_i32_1 = arith.constant 0 : i32
    return %c0_i32, %c0_i32_0 : i32, i32
  }
  func.func @transform_10(%arg0: i32) -> (i32, i32) {
    %c0_i32 = arith.constant 0 : i32
    %c0_i32_0 = arith.constant 0 : i32
    %c0_i32_1 = arith.constant 0 : i32
    return %c0_i32, %c0_i32_0 : i32, i32
  }
  func.func @transform_11(%arg0: i32) -> (i32, i32) {
    %c0_i32 = arith.constant 0 : i32
    %c0_i32_0 = arith.constant 0 : i32
    %c0_i32_1 = arith.constant 0 : i32
    return %c0_i32, %c0_i32_0 : i32, i32
  }
  func.func @transform_12(%arg0: i32) -> (i32, i32) {
    %c0_i32 = arith.constant 0 : i32
    %c0_i32_0 = arith.constant 0 : i32
    %c0_i32_1 = arith.constant 0 : i32
    return %c0_i32, %c0_i32_0 : i32, i32
  }
  func.func @transform_13(%arg0: i32) -> (i32, i32) {
    %c0_i32 = arith.constant 0 : i32
    %c0_i32_0 = arith.constant 0 : i32
    %c0_i32_1 = arith.constant 0 : i32
    return %c0_i32, %c0_i32_0 : i32, i32
  }
  func.func @transform_14(%arg0: i32) -> (i32, i32) {
    %c0_i32 = arith.constant 0 : i32
    %c0_i32_0 = arith.constant 0 : i32
    %c0_i32_1 = arith.constant 0 : i32
    return %c0_i32, %c0_i32_0 : i32, i32
  }
  func.func @transform_15(%arg0: i32) -> (i32, i32) {
    %c0_i32 = arith.constant 0 : i32
    %c0_i32_0 = arith.constant 0 : i32
    %c0_i32_1 = arith.constant 0 : i32
    return %c0_i32, %c0_i32_0 : i32, i32
  }
  func.func @transform_16(%arg0: i32) -> (i32, i32) {
    %c0_i32 = arith.constant 0 : i32
    %c0_i32_0 = arith.constant 0 : i32
    %c0_i32_1 = arith.constant 0 : i32
    return %c0_i32, %c0_i32_0 : i32, i32
  }
  func.func @transform_17(%arg0: i32) -> (i32, i32) {
    %c0_i32 = arith.constant 0 : i32
    %c0_i32_0 = arith.constant 0 : i32
    %c0_i32_1 = arith.constant 0 : i32
    return %c0_i32, %c0_i32_0 : i32, i32
  }
  func.func @transform_18(%arg0: i32) -> (i32, i32) {
    %c0_i32 = arith.constant 0 : i32
    %c0_i32_0 = arith.constant 0 : i32
    %c0_i32_1 = arith.constant 0 : i32
    return %c0_i32, %c0_i32_0 : i32, i32
  }
  func.func @transform_19(%arg0: i32) -> (i32, i32) {
    %c0_i32 = arith.constant 0 : i32
    %c0_i32_0 = arith.constant 0 : i32
    %c0_i32_1 = arith.constant 0 : i32
    return %c0_i32, %c0_i32_0 : i32, i32
  }
  func.func @transform_20(%arg0: i32) -> (i32, i32) {
    %c0_i32 = arith.constant 0 : i32
    %c0_i32_0 = arith.constant 0 : i32
    %c0_i32_1 = arith.constant 0 : i32
    return %c0_i32, %c0_i32_0 : i32, i32
  }
  func.func @transform_21(%arg0: i32) -> (i32, i32) {
    %c0_i32 = arith.constant 0 : i32
    %c0_i32_0 = arith.constant 0 : i32
    %c0_i32_1 = arith.constant 0 : i32
    return %c0_i32, %c0_i32_0 : i32, i32
  }
  func.func @transform_22(%arg0: i32) -> (i32, i32) {
    %c0_i32 = arith.constant 0 : i32
    %c0_i32_0 = arith.constant 0 : i32
    %c0_i32_1 = arith.constant 0 : i32
    return %c0_i32, %c0_i32_0 : i32, i32
  }
  func.func @transform_23(%arg0: i32) -> (i32, i32) {
    %c0_i32 = arith.constant 0 : i32
    %c0_i32_0 = arith.constant 0 : i32
    %c0_i32_1 = arith.constant 0 : i32
    return %c0_i32, %c0_i32_0 : i32, i32
  }
  func.func @transform_24(%arg0: i32) -> (i32, i32) {
    %c0_i32 = arith.constant 0 : i32
    %c0_i32_0 = arith.constant 0 : i32
    %c0_i32_1 = arith.constant 0 : i32
    return %c0_i32, %c0_i32_0 : i32, i32
  }
  func.func @transform_25(%arg0: i32) -> (i32, i32) {
    %c0_i32 = arith.constant 0 : i32
    %c0_i32_0 = arith.constant 0 : i32
    %c0_i32_1 = arith.constant 0 : i32
    return %c0_i32, %c0_i32_0 : i32, i32
  }
  func.func @transform_26(%arg0: i32) -> (i32, i32) {
    %c0_i32 = arith.constant 0 : i32
    %c0_i32_0 = arith.constant 0 : i32
    %c0_i32_1 = arith.constant 0 : i32
    return %c0_i32, %c0_i32_0 : i32, i32
  }
  func.func @transform_27(%arg0: i32) -> (i32, i32, i32) {
    %c0_i32 = arith.constant 0 : i32
    %c0_i32_0 = arith.constant 0 : i32
    %c0_i32_1 = arith.constant 0 : i32
    return %arg0, %c0_i32, %c0_i32_0 : i32, i32, i32
  }
  func.func @transform_28(%arg0: i32) -> (i32, i32, i32) {
    %c0_i32 = arith.constant 0 : i32
    %c0_i32_0 = arith.constant 0 : i32
    %c0_i32_1 = arith.constant 0 : i32
    return %arg0, %c0_i32, %c0_i32_0 : i32, i32, i32
  }
  func.func @transform_29(%arg0: i32) -> (i32, i32, i32) {
    %c0_i32 = arith.constant 0 : i32
    %c0_i32_0 = arith.constant 0 : i32
    %c0_i32_1 = arith.constant 0 : i32
    return %arg0, %c0_i32, %c0_i32_0 : i32, i32, i32
  }
  func.func @transform_30(%arg0: i32) -> (i32, i32, i32) {
    %c0_i32 = arith.constant 0 : i32
    %c0_i32_0 = arith.constant 0 : i32
    %c0_i32_1 = arith.constant 0 : i32
    return %arg0, %c0_i32, %c0_i32_0 : i32, i32, i32
  }
  func.func @transform_31(%arg0: i32) -> (i32, i32, i32) {
    %c0_i32 = arith.constant 0 : i32
    %c0_i32_0 = arith.constant 0 : i32
    %c0_i32_1 = arith.constant 0 : i32
    return %arg0, %c0_i32, %c0_i32_0 : i32, i32, i32
  }
  func.func @transform_32(%arg0: i32) -> (i32, i32, i32) {
    %c0_i32 = arith.constant 0 : i32
    %c0_i32_0 = arith.constant 0 : i32
    %c0_i32_1 = arith.constant 0 : i32
    return %arg0, %c0_i32, %c0_i32_0 : i32, i32, i32
  }
}

</mosaic_0001>

<bundles_post_ra>
// kernel: tpu_custom_call.1
= control target key start
LH: loop header
LB: loop body
LE: loop exit
PB: predicated region body
PF: predicated region fallthrough
CT: control target
= control target key end

     0   :  { %s5305_s6 = smov 1   ;;  %s5306_s10 = smov 2   ;;  %s6916_s0 = inlined_call_operand.smem [shape: u32[33], index: -1, kind: input, shape index: {}] }
   0x1   :  { %s5352_s5 = sld [smem:[%s6916_s0]]   ;;  %s5307_s14 = smov 3  }
   0x2   :  { %s5357_s9 = sld [smem:[%s6916_s0 + %s5305_s6]]   ;;  %s5308_s18 = smov 4  }
   0x3   :  { %s5362_s13 = sld [smem:[%s6916_s0 + %s5306_s10]]   ;;  %s5309_s22 = smov 5  }
   0x4   :  { %s5367_s17 = sld [smem:[%s6916_s0 + %s5307_s14]]   ;;  %s5310_s26 = smov 6  }
   0x5   :  { %s5372_s21 = sld [smem:[%s6916_s0 + %s5308_s18]]   ;;  %s5311_s30 = smov 7  }
   0x6   :  { %s5377_s25 = sld [smem:[%s6916_s0 + %s5309_s22]]   ;;  %s5312_s4 = smov 8  }
   0x7   :  { %s5382_s29 = sld [smem:[%s6916_s0 + %s5310_s26]]   ;;  %s5313_s10 = smov 9  }
   0x8   :  { %s5387_s3 = sld [smem:[%s6916_s0 + %s5311_s30]]   ;;  %s5314_s15 = smov 10  }
   0x9   :  { %s5392_s8 = sld [smem:[%s6916_s0 + %s5312_s4]]   ;;  %s5315_s20 = smov 11  }
   0xa   :  { %s5397_s14 = sld [smem:[%s6916_s0 + %s5313_s10]]   ;;  %s5316_s26 = smov 12  }
   0xb   :  { %s5402_s19 = sld [smem:[%s6916_s0 + %s5314_s15]]   ;;  %s5317_s1 = smov 13  }
   0xc   :  { %s5407_s24 = sld [smem:[%s6916_s0 + %s5315_s20]]   ;;  %s5318_s7 = smov 14  }
   0xd   :  { %s5412_s30 = sld [smem:[%s6916_s0 + %s5316_s26]]   ;;  %s5319_s15 = smov 15  }
   0xe   :  { %s5417_s6 = sld [smem:[%s6916_s0 + %s5317_s1]]   ;;  %s5320_s22 = smov 16  }
   0xf   :  { %s5422_s12 = sld [smem:[%s6916_s0 + %s5318_s7]]   ;;  %s5321_s28 = smov 17  }
  0x10   :  { %s5427_s20 = sld [smem:[%s6916_s0 + %s5319_s15]]   ;;  %s5322_s7 = smov 18  }
  0x11   :  { %s5432_s27 = sld [smem:[%s6916_s0 + %s5320_s22]]   ;;  %s5323_s15 = smov 19  }
  0x12   :  { %s5437_s4 = sld [smem:[%s6916_s0 + %s5321_s28]]   ;;  %s5324_s22 = smov 20  }
  0x13   :  { %6982 = sst [smem:[#allocation10_spill]] %s5412_s30  ;;  %s5325_s28 = smov 21  }
  0x14   :  { %s5329_s1 = smov 25   ;;  %s5330_s10 = smov 26  }
  0x15   :  { %6983 = sst [smem:[#allocation11_spill]] %s5422_s12  ;;  %s5331_s16 = smov 27  }
  0x16   :  { %6984 = sst [smem:[#allocation12_spill]] %s5427_s20  ;;  %s5332_s23 = smov 28  }
  0x17   :  { %6985 = sst [smem:[#allocation13_spill]] %s5432_s27 }
  0x18   :  { %6986 = sst [smem:[#allocation14_spill]] %s5437_s4 }
  0x19   :  { %s5442_s12 = sld [smem:[%s6916_s0 + %s5322_s7]]   ;;  %s5326_s7 = smov 22  }
  0x1a   :  { %s5447_s20 = sld [smem:[%s6916_s0 + %s5323_s15]]   ;;  %s5327_s15 = smov 23  }
  0x1b   :  { %s5452_s27 = sld [smem:[%s6916_s0 + %s5324_s22]]   ;;  %s5328_s22 = smov 24  }
  0x1c   :  { %s5457_s4 = sld [smem:[%s6916_s0 + %s5325_s28]]  }
  0x1d   :  { %s5490_s30 = sld [smem:[%s6916_s0 + %s5332_s23]]   ;;  %s5336_s23 = smov 32  }
  0x1f   :  { %6987 = sst [smem:[#allocation15_spill]] %s5442_s12 }
  0x20   :  { %6988 = sst [smem:[#allocation16_spill]] %s5447_s20 }
  0x21   :  { %6989 = sst [smem:[#allocation17_spill]] %s5452_s27 }
  0x22   :  { %6990 = sst [smem:[#allocation18_spill]] %s5457_s4 }
  0x23   :  { %s5462_s12 = sld [smem:[%s6916_s0 + %s5326_s7]]  }
  0x24   :  { %s5467_s20 = sld [smem:[%s6916_s0 + %s5327_s15]]  }
  0x25   :  { %s3846_s27 = sld [smem:[%s6916_s0 + %s5328_s22]]  }
  0x26   :  { %s5475_s4 = sld [smem:[%s6916_s0 + %s5329_s1]]   ;;  %s5333_s1 = smov 29  }
  0x29   :  { %6991 = sst [smem:[#allocation19_spill]] %s5462_s12 }
  0x2a   :  { %6992 = sst [smem:[#allocation20_spill]] %s5467_s20 }
  0x2b   :  { %s5480_s12 = sld [smem:[%s6916_s0 + %s5330_s10]]   ;;  %s5334_s10 = smov 30   ;;  %v71_v0 = vstv %s3846_s27 }
  0x2c   :  { %6993 = sst [smem:[#allocation21_spill]] %s5475_s4  ;;  %72 = vst [vmem:[#allocation2] sm:$0x1] %v71_v0 }
  0x2d   :  { %s5485_s20 = sld [smem:[%s6916_s0 + %s5331_s16]]   ;;  %s5335_s16 = smov 31  }
  0x2e   :  { %s5495_s4 = sld [smem:[%s6916_s0 + %s5333_s1]]  }
  0x2f   :  { %s5505_s22 = sld [smem:[%s6916_s0 + %s5335_s16]]  }
  0x30   :  { %s5510_s1 = sld [smem:[%s6916_s0 + %s5336_s23]]  }
  0x31   :  { %6994 = sst [smem:[#allocation22_spill]] %s5480_s12 }
  0x32   :  { %s5500_s12 = sld [smem:[%s6916_s0 + %s5334_s10]]  }
  0x33   :  { %6995 = sst [smem:[#allocation23_spill]] %s5485_s20 }
  0x34   :  { %73 = vsyncpa [#allocation4], 0  ;;  %v193_v1 = vld [vmem:[%s5357_s9] sm:$0xff]  ;;  %vm194_vm0 = vcmask 64512   ;;  %v130_v3 = vld [vmem:[%s5352_s5 + $0x8] sm:$0xff] }
  0x35   :  { %v129_v2 = vld [vmem:[%s5352_s5] sm:$0xff]  ;;  %4534 = vmatprep.subr.mxu0 %v193_v1  ;;  %v131_v4 = vld [vmem:[%s5352_s5 + $0x10] sm:$0xff]  ;;  %5117 = vmatprep.subr.mxu1 %v193_v1  ;;  %v132_v5 = vld [vmem:[%s5352_s5 + $0x18] sm:$0xff] }
  0x36   :  { %4536 = vmatprep.mubr.msk.f32.mxu0 %vm194_vm0, %v129_v2  ;;  %4535 = vmatpush3.msra.mxu0 %v193_v1  ;;  %v133_v6 = vld [vmem:[%s5352_s5 + $0x20] sm:$0xff]  ;;  %v134_v7 = vld [vmem:[%s5352_s5 + $0x28] sm:$0xff]  ;;  %v135_v8 = vld [vmem:[%s5352_s5 + $0x30] sm:$0xff] }
  0x37   :  { %4537 = vmatmul.mubr.msk.f32.vlgmr.msra.gmra.mrb[0].mxu0 %vm194_vm0, %v130_v3  ;;  %5118 = vmatpush3.msra.mxu1 %v193_v1  ;;  %v136_v9 = vld [vmem:[%s5352_s5 + $0x38] sm:$0xff]  ;;  %v137_v10 = vld [vmem:[%s5352_s5 + $0x40] sm:$0xff]  ;;  %v138_v11 = vld [vmem:[%s5352_s5 + $0x48] sm:$0xff] }
  0x38   :  { %4539 = vmatprep.mubr.msk.f32.mxu0 %vm194_vm0, %v131_v4  ;;  %v139_v12 = vld [vmem:[%s5352_s5 + $0x50] sm:$0xff]  ;;  %v140_v13 = vld [vmem:[%s5352_s5 + $0x58] sm:$0xff]  ;;  %v141_v14 = vld [vmem:[%s5352_s5 + $0x60] sm:$0xff] }
  0x3b   :  { %4540 = vmatmul.mubr.msk.f32.gmra.mrb[2].mxu0 %vm194_vm0, %v132_v5 }
  0x3c   :  { %4542 = vmatprep.mubr.msk.f32.mxu0 %vm194_vm0, %v133_v6 }
  0x3f   :  { %4543 = vmatmul.mubr.msk.f32.gmra.mrb[4].mxu0 %vm194_vm0, %v134_v7 }
  0x40   :  { %4545 = vmatprep.mubr.msk.f32.mxu0 %vm194_vm0, %v135_v8 }
  0x43   :  { %4546 = vmatmul.mubr.msk.f32.gmra.mrb[6].mxu0 %vm194_vm0, %v136_v9 }
  0x44   :  { %4548 = vmatprep.mubr.msk.f32.mxu0 %vm194_vm0, %v137_v10 }
  0x47   :  { %4549 = vmatmul.mubr.msk.f32.gmra.mrb[8].mxu0 %vm194_vm0, %v138_v11 }
  0x48   :  { %4551 = vmatprep.mubr.msk.f32.mxu0 %vm194_vm0, %v139_v12 }
  0x49   :  { %74 = vsyncpa [#allocation6], 0  ;;  %v142_v15 = vld [vmem:[%s5352_s5 + $0x68] sm:$0xff]  ;;  %v143_v16 = vld [vmem:[%s5352_s5 + $0x70] sm:$0xff]  ;;  %vm980_vm1 = vcmask 130048   ;;  %vm3016_vm3 = vcmask 261120  }
  0x4a   :  { %v144_v17 = vld [vmem:[%s5352_s5 + $0x78] sm:$0xff]  ;;  %v145_v18 = vld [vmem:[%s5352_s5 + $0x80] sm:$0xff]  ;;  %v146_v19 = vld [vmem:[%s5352_s5 + $0x88] sm:$0xff]  ;;  %s7161_s0 = sld [smem:[#allocation10_spill]]  ;;  %s7163_s9 = sld [smem:[#allocation14_spill]]  ;;  %vm3744_vm4 = vcmask 31744  }
  0x4b   :  { %4552 = vmatmul.mubr.msk.f32.gmra.mrb[10].mxu0 %vm194_vm0, %v140_v13  ;;  %v147_v20 = vld [vmem:[%s5352_s5 + $0x90] sm:$0xff]  ;;  %v148_v21 = vld [vmem:[%s5352_s5 + $0x98] sm:$0xff]  ;;  %v149_v22 = vld [vmem:[%s5352_s5 + $0xa0] sm:$0xff]  ;;  %vm2518_vm5 = vcmask 0   ;;  %s7173_s27 = sld [smem:[#allocation22_spill]]  ;;  %s5338_s2 = smov [#allocation3]  }
  0x4c   :  { %4554 = vmatprep.mubr.msk.f32.mxu0 %vm194_vm0, %v141_v14  ;;  %v150_v23 = vld [vmem:[%s5352_s5 + $0xa8] sm:$0xff]  ;;  %v151_v24 = vld [vmem:[%s5352_s5 + $0xb0] sm:$0xff]  ;;  %v152_v25 = vld [vmem:[%s5352_s5 + $0xb8] sm:$0xff]  ;;  %s3769_s10 = sshll.u32 %s5338_s2, 4  ;;  %s3770_s10 = int_to_ptr.vmem [resolvable:$true] %s3769_s10 }
  0x4d   :  { %v153_v26 = vld [vmem:[%s5352_s5 + $0xc0] sm:$0xff]  ;;  %v154_v27 = vld [vmem:[%s5352_s5 + $0xc8] sm:$0xff]  ;;  %v155_v28 = vld [vmem:[%s5352_s5 + $0xd0] sm:$0xff] }
  0x4e   :  { %v156_v29 = vld [vmem:[%s5352_s5 + $0xd8] sm:$0xff]  ;;  %v157_v30 = vld [vmem:[%s5352_s5 + $0xe0] sm:$0xff]  ;;  %v158_v31 = vld [vmem:[%s5352_s5 + $0xe8] sm:$0xff] }
  0x4f   :  { %4555 = vmatmul.mubr.msk.f32.gmra.mrb[12].mxu0 %vm194_vm0, %v142_v15  ;;  %v159_v32 = vld [vmem:[%s5352_s5 + $0xf0] sm:$0xff]  ;;  %v160_v33 = vld [vmem:[%s5352_s5 + $0xf8] sm:$0xff]  ;;  %v161_v34 = vld [vmem:[%s5352_s5 + $0x100] sm:$0xff] }
  0x50   :  { %4557 = vmatprep.mubr.msk.f32.mxu0 %vm194_vm0, %v143_v16  ;;  %v162_v35 = vld [vmem:[%s5352_s5 + $0x108] sm:$0xff]  ;;  %v163_v36 = vld [vmem:[%s5352_s5 + $0x110] sm:$0xff]  ;;  %v164_v37 = vld [vmem:[%s5352_s5 + $0x118] sm:$0xff] }
  0x51   :  { %v165_v38 = vld [vmem:[%s5352_s5 + $0x120] sm:$0xff]  ;;  %v166_v39 = vld [vmem:[%s5352_s5 + $0x128] sm:$0xff]  ;;  %v167_v40 = vld [vmem:[%s5352_s5 + $0x130] sm:$0xff] }
  0x52   :  { %v168_v41 = vld [vmem:[%s5352_s5 + $0x138] sm:$0xff]  ;;  %v169_v42 = vld [vmem:[%s5352_s5 + $0x140] sm:$0xff]  ;;  %v170_v43 = vld [vmem:[%s5352_s5 + $0x148] sm:$0xff] }
  0x53   :  { %4558 = vmatmul.mubr.msk.f32.gmra.mrb[14].mxu0 %vm194_vm0, %v144_v17  ;;  %v171_v44 = vld [vmem:[%s5352_s5 + $0x150] sm:$0xff]  ;;  %v172_v45 = vld [vmem:[%s5352_s5 + $0x158] sm:$0xff]  ;;  %v173_v46 = vld [vmem:[%s5352_s5 + $0x160] sm:$0xff] }
  0x54   :  { %4560 = vmatprep.mubr.msk.f32.mxu0 %vm194_vm0, %v145_v18  ;;  %v191_v47 = vld [vmem:[%s5352_s5 + $0x1f0] sm:$0xff]  ;;  %v174_v48 = vld [vmem:[%s5352_s5 + $0x168] sm:$0xff]  ;;  %v192_v49 = vld [vmem:[%s5352_s5 + $0x1f8] sm:$0xff] }
  0x55   :  { %4629 = vmatprep.mubr.msk.f32.mxu1 %vm194_vm0, %v191_v47  ;;  %v978_v50 = vld [vmem:[%s5372_s21] sm:$0xff]  ;;  %v979_v51 = vld [vmem:[%s5372_s21 + $0x8] sm:$0xff]  ;;  %v175_v53 = vld [vmem:[%s5352_s5 + $0x170] sm:$0xff]  ;;  %s7166_s21 = sld [smem:[#allocation15_spill]] }
  0x56   :  { %4630 = vmatmul.mubr.msk.f32.vlgmr.msra.gmra.mrb[0].mxu1 %vm194_vm0, %v192_v49  ;;  %v1558_v52 = vld [vmem:[%s5377_s25] sm:$0xff]  ;;  %v4901_v54 = vpack.c.bf16 %v979_v51, %v978_v50  ;;  %v1559_v55 = vld [vmem:[%s5377_s25 + $0x8] sm:$0xff]  ;;  %v176_v57 = vld [vmem:[%s5352_s5 + $0x178] sm:$0xff]  ;;  %s7167_s25 = sld [smem:[#allocation18_spill]] }
  0x57   :  { %4561 = vmatmul.mubr.msk.f32.gmra.mrb[16].mxu0 %vm194_vm0, %v146_v19  ;;  %v4905_v56 = vpack.c.bf16 %v1559_v55, %v1558_v52  ;;  %v177_v58 = vld [vmem:[%s5352_s5 + $0x180] sm:$0xff]  ;;  %v178_v59 = vld [vmem:[%s5352_s5 + $0x188] sm:$0xff]  ;;  %v179_v60 = vld [vmem:[%s5352_s5 + $0x190] sm:$0xff] }
  0x58   :  { %4563 = vmatprep.mubr.msk.f32.mxu0 %vm194_vm0, %v147_v20  ;;  %4902 = vmatprep.subr.bf16.mxu1 %v4901_v54  ;;  %v180_v61 = vld [vmem:[%s5352_s5 + $0x198] sm:$0xff]  ;;  %v181_v62 = vld [vmem:[%s5352_s5 + $0x1a0] sm:$0xff]  ;;  %v182_v63 = vld [vmem:[%s5352_s5 + $0x1a8] sm:$0xff] }
  0x59   :  { %4906 = vmatprep.subr.bf16.mxu0 %v4905_v56  ;;  %4904 = vmatpush3.bf16.msra.mxu1 %v4901_v54  ;;  %v183_v0 = vld [vmem:[%s5352_s5 + $0x1b0] sm:$0xff]  ;;  %v184_v1 = vld [vmem:[%s5352_s5 + $0x1b8] sm:$0xff]  ;;  %v185_v2 = vld [vmem:[%s5352_s5 + $0x1c0] sm:$0xff] }
  0x5a   :  { %4908 = vmatpush3.bf16.msra.mxu0 %v4905_v56  ;;  %v186_v3 = vld [vmem:[%s5352_s5 + $0x1c8] sm:$0xff]  ;;  %v187_v4 = vld [vmem:[%s5352_s5 + $0x1d0] sm:$0xff]  ;;  %v188_v5 = vld [vmem:[%s5352_s5 + $0x1d8] sm:$0xff] }
  0x5b   :  { %4564 = vmatmul.mubr.msk.f32.gmra.mrb[18].mxu0 %vm194_vm0, %v148_v21  ;;  %v189_v6 = vld [vmem:[%s5352_s5 + $0x1e0] sm:$0xff]  ;;  %v190_v7 = vld [vmem:[%s5352_s5 + $0x1e8] sm:$0xff]  ;;  %vm6170_vm2 = vmpackc.low %vm980_vm1, %vm980_vm1  ;;  %s7162_s5 = sld [smem:[#allocation12_spill]] }
  0x5c   :  { %4566 = vmatprep.mubr.msk.f32.mxu0 %vm194_vm0, %v149_v22  ;;  %v5646_v8 = vld [vmem:[%s5362_s13] ss:$0 sm:$0xff]  ;;  %s7164_s13 = sld [smem:[#allocation11_spill]] }
  0x5d   :  { %v5649_v10 = vld [vmem:[%s5367_s17] ss:$0 sm:$0xff]  ;;  %s7165_s17 = sld [smem:[#allocation13_spill]] }
  0x5f   :  { %4567 = vmatmul.mubr.msk.f32.gmra.mrb[20].mxu0 %vm194_vm0, %v150_v23 }
  0x60   :  { %4569 = vmatprep.mubr.msk.f32.mxu0 %vm194_vm0, %v151_v24 }
  0x63   :  { %4570 = vmatmul.mubr.msk.f32.gmra.mrb[22].mxu0 %vm194_vm0, %v152_v25 }
  0x64   :  { %4572 = vmatprep.mubr.msk.f32.mxu0 %vm194_vm0, %v153_v26 }
  0x67   :  { %4573 = vmatmul.mubr.msk.f32.gmra.mrb[24].mxu0 %vm194_vm0, %v154_v27 }
  0x68   :  { %4575 = vmatprep.mubr.msk.f32.mxu0 %vm194_vm0, %v155_v28 }
  0x6b   :  { %4576 = vmatmul.mubr.msk.f32.gmra.mrb[26].mxu0 %vm194_vm0, %v156_v29 }
  0x6c   :  { %4578 = vmatprep.mubr.msk.f32.mxu0 %vm194_vm0, %v157_v30 }
  0x6f   :  { %4579 = vmatmul.mubr.msk.f32.gmra.mrb[28].mxu0 %vm194_vm0, %v158_v31 }
  0x70   :  { %4581 = vmatprep.mubr.msk.f32.mxu0 %vm194_vm0, %v159_v32 }
  0x73   :  { %4582 = vmatmul.mubr.msk.f32.gmra.mrb[30].mxu0 %vm194_vm0, %v160_v33 }
  0x74   :  { %4584 = vmatprep.mubr.msk.f32.mxu0 %vm194_vm0, %v161_v34 }
  0x77   :  { %4585 = vmatmul.mubr.msk.f32.gmra.mrb[32].mxu0 %vm194_vm0, %v162_v35 }
  0x78   :  { %4587 = vmatprep.mubr.msk.f32.mxu0 %vm194_vm0, %v163_v36 }
  0x7b   :  { %4588 = vmatmul.mubr.msk.f32.gmra.mrb[34].mxu0 %vm194_vm0, %v164_v37 }
  0x7c   :  { %4590 = vmatprep.mubr.msk.f32.mxu0 %vm194_vm0, %v165_v38 }
  0x7f   :  { %4591 = vmatmul.mubr.msk.f32.gmra.mrb[36].mxu0 %vm194_vm0, %v166_v39 }
  0x80   :  { %4593 = vmatprep.mubr.msk.f32.mxu0 %vm194_vm0, %v167_v40 }
  0x83   :  { %4594 = vmatmul.mubr.msk.f32.gmra.mrb[38].mxu0 %vm194_vm0, %v168_v41 }
  0x84   :  { %4596 = vmatprep.mubr.msk.f32.mxu0 %vm194_vm0, %v169_v42 }
  0x87   :  { %4597 = vmatmul.mubr.msk.f32.gmra.mrb[40].mxu0 %vm194_vm0, %v170_v43 }
  0x88   :  { %4599 = vmatprep.mubr.msk.f32.mxu0 %vm194_vm0, %v171_v44 }
  0x8b   :  { %4600 = vmatmul.mubr.msk.f32.gmra.mrb[42].mxu0 %vm194_vm0, %v172_v45 }
  0x8c   :  { %4602 = vmatprep.mubr.msk.f32.mxu0 %vm194_vm0, %v173_v46 }
  0x8f   :  { %4603 = vmatmul.mubr.msk.f32.gmra.mrb[44].mxu0 %vm194_vm0, %v174_v48 }
  0x90   :  { %4605 = vmatprep.mubr.msk.f32.mxu0 %vm194_vm0, %v175_v53 }
  0x93   :  { %4606 = vmatmul.mubr.msk.f32.gmra.mrb[46].mxu0 %vm194_vm0, %v176_v57 }
  0x94   :  { %4608 = vmatprep.mubr.msk.f32.mxu0 %vm194_vm0, %v177_v58 }
  0x97   :  { %4609 = vmatmul.mubr.msk.f32.gmra.mrb[48].mxu0 %vm194_vm0, %v178_v59 }
  0x98   :  { %4611 = vmatprep.mubr.msk.f32.mxu0 %vm194_vm0, %v179_v60 }
  0x9b   :  { %4612 = vmatmul.mubr.msk.f32.gmra.mrb[50].mxu0 %vm194_vm0, %v180_v61 }
  0x9c   :  { %4614 = vmatprep.mubr.msk.f32.mxu0 %vm194_vm0, %v181_v62 }
  0x9f   :  { %4615 = vmatmul.mubr.msk.f32.gmra.mrb[52].mxu0 %vm194_vm0, %v182_v63 }
  0xa0   :  { %4617 = vmatprep.mubr.msk.f32.mxu0 %vm194_vm0, %v183_v0 }
  0xa3   :  { %4618 = vmatmul.mubr.msk.f32.gmra.mrb[54].mxu0 %vm194_vm0, %v184_v1 }
  0xa4   :  { %4620 = vmatprep.mubr.msk.f32.mxu0 %vm194_vm0, %v185_v2 }
  0xa7   :  { %4621 = vmatmul.mubr.msk.f32.gmra.mrb[56].mxu0 %vm194_vm0, %v186_v3 }
  0xa8   :  { %4623 = vmatprep.mubr.msk.f32.mxu0 %vm194_vm0, %v187_v4 }
  0xab   :  { %4624 = vmatmul.mubr.msk.f32.gmra.mrb[58].mxu0 %vm194_vm0, %v188_v5 }
  0xac   :  { %4626 = vmatprep.mubr.msk.f32.mxu0 %vm194_vm0, %v189_v6 }
  0xaf   :  { %4627 = vmatmul.mubr.msk.f32.gmra.mrb[60].mxu0 %vm194_vm0, %v190_v7 }
 0x10a   :  { %v4538_v9 = vpop.f32.mrb[0].mxu0 }
 0x10b   :  { %v780_v11 = vmul.f32 %v4538_v9, %v5646_v8  ;;  %v453_v12 = vpop.f32.mrb[1].mxu0 }
 0x10c   :  { %v779_v13 = vmul.f32 %v5646_v8, %v453_v12 }
 0x10d   :  { %v851_v14 = vadd.f32 %v5649_v10, %v780_v11 }
 0x10e   :  { %v850_v15 = vadd.f32 %v5649_v10, %v779_v13  ;;  %v4541_v16 = vpop.f32.mrb[2].mxu0 }
 0x10f   :  { %v782_v17 = vmul.f32 %v4541_v16, %v5646_v8  ;;  %v463_v18 = vpop.f32.mrb[3].mxu0  ;;  %v915_v21 = vmax.f32 %v851_v14, 0.0 }
 0x110   :  { %v914_v19 = vmax.f32 %v850_v15, 0.0  ;;  %v781_v20 = vmul.f32 %v5646_v8, %v463_v18 }
 0x111   :  { %v853_v22 = vadd.f32 %v5649_v10, %v782_v17 }
 0x112   :  { %v852_v23 = vadd.f32 %v5649_v10, %v781_v20  ;;  %v4544_v24 = vpop.f32.mrb[4].mxu0  ;;  %4636 = vmatprep.mubr.msk.f32.mxu1 %vm980_vm1, %v914_v19  ;;  %4736 = vmatprep.mubr.msk.f32.mxu0 %vm980_vm1, %v914_v19 }
 0x113   :  { %v784_v25 = vmul.f32 %v4544_v24, %v5646_v8  ;;  %v473_v26 = vpop.f32.mrb[5].mxu0  ;;  %4637 = vmatmul.mubr.msk.f32.vlgmr.msra.gmra.mrb[2].mxu1 %vm980_vm1, %v915_v21  ;;  %4737 = vmatmul.mubr.msk.f32.vlgmr.msra.gmra.mrb[62].mxu0 %vm980_vm1, %v915_v21  ;;  %v917_v29 = vmax.f32 %v853_v22, 0.0 }
 0x114   :  { %v916_v27 = vmax.f32 %v852_v23, 0.0  ;;  %v783_v28 = vmul.f32 %v5646_v8, %v473_v26 }
 0x115   :  { %v855_v30 = vadd.f32 %v5649_v10, %v784_v25 }
 0x116   :  { %v854_v31 = vadd.f32 %v5649_v10, %v783_v28  ;;  %v4547_v32 = vpop.f32.mrb[6].mxu0  ;;  %4639 = vmatprep.mubr.msk.f32.mxu1 %vm980_vm1, %v916_v27  ;;  %4739 = vmatprep.mubr.msk.f32.mxu0 %vm980_vm1, %v916_v27 }
 0x117   :  { %v786_v33 = vmul.f32 %v4547_v32, %v5646_v8  ;;  %v483_v34 = vpop.f32.mrb[7].mxu0  ;;  %4640 = vmatmul.mubr.msk.f32.gmra.mrb[4].mxu1 %vm980_vm1, %v917_v29  ;;  %4740 = vmatmul.mubr.msk.f32.gmra.mrb[64].mxu0 %vm980_vm1, %v917_v29  ;;  %v919_v37 = vmax.f32 %v855_v30, 0.0 }
 0x118   :  { %v918_v35 = vmax.f32 %v854_v31, 0.0  ;;  %v785_v36 = vmul.f32 %v5646_v8, %v483_v34 }
 0x119   :  { %v857_v38 = vadd.f32 %v5649_v10, %v786_v33 }
 0x11a   :  { %v856_v39 = vadd.f32 %v5649_v10, %v785_v36  ;;  %v4550_v40 = vpop.f32.mrb[8].mxu0  ;;  %4642 = vmatprep.mubr.msk.f32.mxu1 %vm980_vm1, %v918_v35  ;;  %4742 = vmatprep.mubr.msk.f32.mxu0 %vm980_vm1, %v918_v35 }
 0x11b   :  { %v788_v41 = vmul.f32 %v4550_v40, %v5646_v8  ;;  %v493_v42 = vpop.f32.mrb[9].mxu0  ;;  %4643 = vmatmul.mubr.msk.f32.gmra.mrb[6].mxu1 %vm980_vm1, %v919_v37  ;;  %4743 = vmatmul.mubr.msk.f32.gmra.mrb[66].mxu0 %vm980_vm1, %v919_v37  ;;  %v921_v45 = vmax.f32 %v857_v38, 0.0 }
 0x11c   :  { %v920_v43 = vmax.f32 %v856_v39, 0.0  ;;  %v787_v44 = vmul.f32 %v5646_v8, %v493_v42 }
 0x11d   :  { %v859_v46 = vadd.f32 %v5649_v10, %v788_v41 }
 0x11e   :  { %v858_v47 = vadd.f32 %v5649_v10, %v787_v44  ;;  %v4553_v48 = vpop.f32.mrb[10].mxu0  ;;  %4645 = vmatprep.mubr.msk.f32.mxu1 %vm980_vm1, %v920_v43  ;;  %4745 = vmatprep.mubr.msk.f32.mxu0 %vm980_vm1, %v920_v43 }
 0x11f   :  { %v790_v49 = vmul.f32 %v4553_v48, %v5646_v8  ;;  %v503_v50 = vpop.f32.mrb[11].mxu0  ;;  %4646 = vmatmul.mubr.msk.f32.gmra.mrb[8].mxu1 %vm980_vm1, %v921_v45  ;;  %4746 = vmatmul.mubr.msk.f32.gmra.mrb[68].mxu0 %vm980_vm1, %v921_v45  ;;  %v923_v53 = vmax.f32 %v859_v46, 0.0 }
 0x120   :  { %v922_v51 = vmax.f32 %v858_v47, 0.0  ;;  %v789_v52 = vmul.f32 %v5646_v8, %v503_v50 }
 0x121   :  { %v861_v54 = vadd.f32 %v5649_v10, %v790_v49 }
 0x122   :  { %v860_v55 = vadd.f32 %v5649_v10, %v789_v52  ;;  %v4556_v56 = vpop.f32.mrb[12].mxu0  ;;  %4648 = vmatprep.mubr.msk.f32.mxu1 %vm980_vm1, %v922_v51  ;;  %4748 = vmatprep.mubr.msk.f32.mxu0 %vm980_vm1, %v922_v51 }
 0x123   :  { %v792_v57 = vmul.f32 %v4556_v56, %v5646_v8  ;;  %v513_v58 = vpop.f32.mrb[13].mxu0  ;;  %4649 = vmatmul.mubr.msk.f32.gmra.mrb[10].mxu1 %vm980_vm1, %v923_v53  ;;  %4749 = vmatmul.mubr.msk.f32.gmra.mrb[70].mxu0 %vm980_vm1, %v923_v53  ;;  %v925_v61 = vmax.f32 %v861_v54, 0.0 }
 0x124   :  { %v924_v59 = vmax.f32 %v860_v55, 0.0  ;;  %v791_v60 = vmul.f32 %v5646_v8, %v513_v58 }
 0x125   :  { %v863_v62 = vadd.f32 %v5649_v10, %v792_v57 }
 0x126   :  { %v862_v63 = vadd.f32 %v5649_v10, %v791_v60  ;;  %v4559_v0 = vpop.f32.mrb[14].mxu0  ;;  %4651 = vmatprep.mubr.msk.f32.mxu1 %vm980_vm1, %v924_v59  ;;  %4751 = vmatprep.mubr.msk.f32.mxu0 %vm980_vm1, %v924_v59 }
 0x127   :  { %v794_v1 = vmul.f32 %v4559_v0, %v5646_v8  ;;  %v523_v2 = vpop.f32.mrb[15].mxu0  ;;  %4652 = vmatmul.mubr.msk.f32.gmra.mrb[12].mxu1 %vm980_vm1, %v925_v61  ;;  %4752 = vmatmul.mubr.msk.f32.gmra.mrb[72].mxu0 %vm980_vm1, %v925_v61  ;;  %v927_v5 = vmax.f32 %v863_v62, 0.0 }
 0x128   :  { %v926_v3 = vmax.f32 %v862_v63, 0.0  ;;  %v793_v4 = vmul.f32 %v5646_v8, %v523_v2 }
 0x129   :  { %v865_v6 = vadd.f32 %v5649_v10, %v794_v1 }
 0x12a   :  { %v864_v7 = vadd.f32 %v5649_v10, %v793_v4  ;;  %v4562_v9 = vpop.f32.mrb[16].mxu0  ;;  %4654 = vmatprep.mubr.msk.f32.mxu1 %vm980_vm1, %v926_v3  ;;  %4754 = vmatprep.mubr.msk.f32.mxu0 %vm980_vm1, %v926_v3 }
 0x12b   :  { %v796_v11 = vmul.f32 %v4562_v9, %v5646_v8  ;;  %v533_v12 = vpop.f32.mrb[17].mxu0  ;;  %4655 = vmatmul.mubr.msk.f32.gmra.mrb[14].mxu1 %vm980_vm1, %v927_v5  ;;  %4755 = vmatmul.mubr.msk.f32.gmra.mrb[74].mxu0 %vm980_vm1, %v927_v5  ;;  %v929_v15 = vmax.f32 %v865_v6, 0.0 }
 0x12c   :  { %v928_v13 = vmax.f32 %v864_v7, 0.0  ;;  %v795_v14 = vmul.f32 %v5646_v8, %v533_v12 }
 0x12d   :  { %v867_v16 = vadd.f32 %v5649_v10, %v796_v11 }
 0x12e   :  { %v866_v17 = vadd.f32 %v5649_v10, %v795_v14  ;;  %4657 = vmatprep.mubr.msk.f32.mxu1 %vm980_vm1, %v928_v13  ;;  %4757 = vmatprep.mubr.msk.f32.mxu0 %vm980_vm1, %v928_v13  ;;  %v4565_v18 = vpop.f32.mrb[18].mxu0 }
 0x12f   :  { %4658 = vmatmul.mubr.msk.f32.gmra.mrb[16].mxu1 %vm980_vm1, %v929_v15  ;;  %4758 = vmatmul.mubr.msk.f32.gmra.mrb[76].mxu0 %vm980_vm1, %v929_v15  ;;  %v798_v19 = vmul.f32 %v4565_v18, %v5646_v8  ;;  %v543_v20 = vpop.f32.mrb[19].mxu0  ;;  %v931_v23 = vmax.f32 %v867_v16, 0.0 }
 0x130   :  { %v930_v21 = vmax.f32 %v866_v17, 0.0  ;;  %v797_v22 = vmul.f32 %v5646_v8, %v543_v20 }
 0x131   :  { %v869_v24 = vadd.f32 %v5649_v10, %v798_v19 }
 0x132   :  { %4660 = vmatprep.mubr.msk.f32.mxu1 %vm980_vm1, %v930_v21  ;;  %4760 = vmatprep.mubr.msk.f32.mxu0 %vm980_vm1, %v930_v21  ;;  %v868_v25 = vadd.f32 %v5649_v10, %v797_v22  ;;  %v4568_v26 = vpop.f32.mrb[20].mxu0 }
 0x133   :  { %v933_v27 = vmax.f32 %v869_v24, 0.0  ;;  %4661 = vmatmul.mubr.msk.f32.gmra.mrb[18].mxu1 %vm980_vm1, %v931_v23  ;;  %4761 = vmatmul.mubr.msk.f32.gmra.mrb[78].mxu0 %vm980_vm1, %v931_v23  ;;  %v800_v28 = vmul.f32 %v4568_v26, %v5646_v8  ;;  %v553_v29 = vpop.f32.mrb[21].mxu0 }
 0x134   :  { %v932_v30 = vmax.f32 %v868_v25, 0.0  ;;  %v799_v31 = vmul.f32 %v5646_v8, %v553_v29 }
 0x135   :  { %v871_v32 = vadd.f32 %v5649_v10, %v800_v28 }
 0x136   :  { %4663 = vmatprep.mubr.msk.f32.mxu1 %vm980_vm1, %v932_v30  ;;  %v870_v33 = vadd.f32 %v5649_v10, %v799_v31  ;;  %4763 = vmatprep.mubr.msk.f32.mxu0 %vm980_vm1, %v932_v30  ;;  %v4571_v34 = vpop.f32.mrb[22].mxu0 }
 0x137   :  { %v935_v35 = vmax.f32 %v871_v32, 0.0  ;;  %4664 = vmatmul.mubr.msk.f32.gmra.mrb[20].mxu1 %vm980_vm1, %v933_v27  ;;  %4764 = vmatmul.mubr.msk.f32.gmra.mrb[80].mxu0 %vm980_vm1, %v933_v27  ;;  %v802_v36 = vmul.f32 %v4571_v34, %v5646_v8  ;;  %v563_v37 = vpop.f32.mrb[23].mxu0 }
 0x138   :  { %v934_v38 = vmax.f32 %v870_v33, 0.0  ;;  %v801_v39 = vmul.f32 %v5646_v8, %v563_v37 }
 0x139   :  { %v873_v40 = vadd.f32 %v5649_v10, %v802_v36 }
 0x13a   :  { %4666 = vmatprep.mubr.msk.f32.mxu1 %vm980_vm1, %v934_v38  ;;  %v872_v41 = vadd.f32 %v5649_v10, %v801_v39  ;;  %v4574_v42 = vpop.f32.mrb[24].mxu0  ;;  %4766 = vmatprep.mubr.msk.f32.mxu0 %vm980_vm1, %v934_v38 }
 0x13b   :  { %v937_v43 = vmax.f32 %v873_v40, 0.0  ;;  %4667 = vmatmul.mubr.msk.f32.gmra.mrb[22].mxu1 %vm980_vm1, %v935_v35  ;;  %v804_v44 = vmul.f32 %v4574_v42, %v5646_v8  ;;  %v573_v45 = vpop.f32.mrb[25].mxu0  ;;  %4767 = vmatmul.mubr.msk.f32.gmra.mrb[82].mxu0 %vm980_vm1, %v935_v35 }
 0x13c   :  { %v936_v46 = vmax.f32 %v872_v41, 0.0  ;;  %v803_v47 = vmul.f32 %v5646_v8, %v573_v45 }
 0x13d   :  { %v875_v48 = vadd.f32 %v5649_v10, %v804_v44 }
 0x13e   :  { %4669 = vmatprep.mubr.msk.f32.mxu1 %vm980_vm1, %v936_v46  ;;  %v874_v49 = vadd.f32 %v5649_v10, %v803_v47  ;;  %v4577_v50 = vpop.f32.mrb[26].mxu0  ;;  %4769 = vmatprep.mubr.msk.f32.mxu0 %vm980_vm1, %v936_v46 }
 0x13f   :  { %v939_v51 = vmax.f32 %v875_v48, 0.0  ;;  %4670 = vmatmul.mubr.msk.f32.gmra.mrb[24].mxu1 %vm980_vm1, %v937_v43  ;;  %v806_v52 = vmul.f32 %v4577_v50, %v5646_v8  ;;  %v583_v53 = vpop.f32.mrb[27].mxu0  ;;  %4770 = vmatmul.mubr.msk.f32.gmra.mrb[84].mxu0 %vm980_vm1, %v937_v43 }
 0x140   :  { %v938_v54 = vmax.f32 %v874_v49, 0.0  ;;  %v805_v55 = vmul.f32 %v5646_v8, %v583_v53 }
 0x141   :  { %v877_v56 = vadd.f32 %v5649_v10, %v806_v52 }
 0x142   :  { %4672 = vmatprep.mubr.msk.f32.mxu1 %vm980_vm1, %v938_v54  ;;  %v876_v57 = vadd.f32 %v5649_v10, %v805_v55  ;;  %v4580_v58 = vpop.f32.mrb[28].mxu0  ;;  %4772 = vmatprep.mubr.msk.f32.mxu0 %vm980_vm1, %v938_v54 }
 0x143   :  { %v941_v59 = vmax.f32 %v877_v56, 0.0  ;;  %4673 = vmatmul.mubr.msk.f32.gmra.mrb[26].mxu1 %vm980_vm1, %v939_v51  ;;  %v808_v60 = vmul.f32 %v4580_v58, %v5646_v8  ;;  %v593_v61 = vpop.f32.mrb[29].mxu0  ;;  %4773 = vmatmul.mubr.msk.f32.gmra.mrb[86].mxu0 %vm980_vm1, %v939_v51  ;;  %v5816_v56 = vpop.f32.mrb[0].mxu1 }
 0x144   :  { %v940_v62 = vmax.f32 %v876_v57, 0.0  ;;  %v807_v63 = vmul.f32 %v5646_v8, %v593_v61 }
 0x145   :  { %v879_v0 = vadd.f32 %v5649_v10, %v808_v60 }
 0x146   :  { %4675 = vmatprep.mubr.msk.f32.mxu1 %vm980_vm1, %v940_v62  ;;  %v878_v1 = vadd.f32 %v5649_v10, %v807_v63  ;;  %v4583_v2 = vpop.f32.mrb[30].mxu0  ;;  %4775 = vmatprep.mubr.msk.f32.mxu0 %vm980_vm1, %v940_v62 }
 0x147   :  { %v943_v3 = vmax.f32 %v879_v0, 0.0  ;;  %4676 = vmatmul.mubr.msk.f32.gmra.mrb[28].mxu1 %vm980_vm1, %v941_v59  ;;  %v810_v4 = vmul.f32 %v4583_v2, %v5646_v8  ;;  %v603_v5 = vpop.f32.mrb[31].mxu0  ;;  %4776 = vmatmul.mubr.msk.f32.gmra.mrb[88].mxu0 %vm980_vm1, %v941_v59  ;;  %v5819_v59 = vpop.f32.mrb[1].mxu1 }
 0x148   :  { %v942_v6 = vmax.f32 %v878_v1, 0.0  ;;  %v809_v7 = vmul.f32 %v5646_v8, %v603_v5 }
 0x149   :  { %v881_v9 = vadd.f32 %v5649_v10, %v810_v4 }
 0x14a   :  { %4678 = vmatprep.mubr.msk.f32.mxu1 %vm980_vm1, %v942_v6  ;;  %v880_v11 = vadd.f32 %v5649_v10, %v809_v7  ;;  %4778 = vmatprep.mubr.msk.f32.mxu0 %vm980_vm1, %v942_v6  ;;  %v4586_v12 = vpop.f32.mrb[32].mxu0 }
 0x14b   :  { %v945_v13 = vmax.f32 %v881_v9, 0.0  ;;  %4679 = vmatmul.mubr.msk.f32.gmra.mrb[30].mxu1 %vm980_vm1, %v943_v3  ;;  %4779 = vmatmul.mubr.msk.f32.gmra.mrb[90].mxu0 %vm980_vm1, %v943_v3  ;;  %v812_v14 = vmul.f32 %v4586_v12, %v5646_v8  ;;  %v613_v15 = vpop.f32.mrb[33].mxu0 }
 0x14c   :  { %v944_v16 = vmax.f32 %v880_v11, 0.0  ;;  %v811_v17 = vmul.f32 %v5646_v8, %v613_v15 }
 0x14d   :  { %v883_v18 = vadd.f32 %v5649_v10, %v812_v14 }
 0x14e   :  { %4681 = vmatprep.mubr.msk.f32.mxu1 %vm980_vm1, %v944_v16  ;;  %4781 = vmatprep.mubr.msk.f32.mxu0 %vm980_vm1, %v944_v16  ;;  %v882_v19 = vadd.f32 %v5649_v10, %v811_v17  ;;  %v4589_v20 = vpop.f32.mrb[34].mxu0 }
 0x14f   :  { %4682 = vmatmul.mubr.msk.f32.gmra.mrb[32].mxu1 %vm980_vm1, %v945_v13  ;;  %4782 = vmatmul.mubr.msk.f32.gmra.mrb[92].mxu0 %vm980_vm1, %v945_v13  ;;  %v947_v21 = vmax.f32 %v883_v18, 0.0  ;;  %v814_v22 = vmul.f32 %v4589_v20, %v5646_v8  ;;  %v623_v23 = vpop.f32.mrb[35].mxu0 }
 0x150   :  { %v946_v24 = vmax.f32 %v882_v19, 0.0  ;;  %v813_v25 = vmul.f32 %v5646_v8, %v623_v23 }
 0x151   :  { %v885_v26 = vadd.f32 %v5649_v10, %v814_v22 }
 0x152   :  { %v884_v27 = vadd.f32 %v5649_v10, %v813_v25  ;;  %v4592_v28 = vpop.f32.mrb[36].mxu0  ;;  %4684 = vmatprep.mubr.msk.f32.mxu1 %vm980_vm1, %v946_v24  ;;  %4784 = vmatprep.mubr.msk.f32.mxu0 %vm980_vm1, %v946_v24 }
 0x153   :  { %v949_v29 = vmax.f32 %v885_v26, 0.0  ;;  %v816_v30 = vmul.f32 %v4592_v28, %v5646_v8  ;;  %v633_v31 = vpop.f32.mrb[37].mxu0  ;;  %4685 = vmatmul.mubr.msk.f32.gmra.mrb[34].mxu1 %vm980_vm1, %v947_v21  ;;  %4785 = vmatmul.mubr.msk.f32.gmra.mrb[94].mxu0 %vm980_vm1, %v947_v21 }
 0x154   :  { %v948_v32 = vmax.f32 %v884_v27, 0.0  ;;  %v815_v33 = vmul.f32 %v5646_v8, %v633_v31 }
 0x155   :  { %v887_v34 = vadd.f32 %v5649_v10, %v816_v30 }
 0x156   :  { %v886_v35 = vadd.f32 %v5649_v10, %v815_v33  ;;  %v4595_v36 = vpop.f32.mrb[38].mxu0  ;;  %4687 = vmatprep.mubr.msk.f32.mxu1 %vm980_vm1, %v948_v32  ;;  %4787 = vmatprep.mubr.msk.f32.mxu0 %vm980_vm1, %v948_v32 }
 0x157   :  { %v951_v37 = vmax.f32 %v887_v34, 0.0  ;;  %v818_v38 = vmul.f32 %v4595_v36, %v5646_v8  ;;  %v643_v39 = vpop.f32.mrb[39].mxu0  ;;  %4688 = vmatmul.mubr.msk.f32.gmra.mrb[36].mxu1 %vm980_vm1, %v949_v29  ;;  %4788 = vmatmul.mubr.msk.f32.gmra.mrb[96].mxu0 %vm980_vm1, %v949_v29 }
 0x158   :  { %v950_v40 = vmax.f32 %v886_v35, 0.0  ;;  %v817_v41 = vmul.f32 %v5646_v8, %v643_v39 }
 0x159   :  { %v889_v42 = vadd.f32 %v5649_v10, %v818_v38 }
 0x15a   :  { %v888_v43 = vadd.f32 %v5649_v10, %v817_v41  ;;  %v4598_v44 = vpop.f32.mrb[40].mxu0  ;;  %4690 = vmatprep.mubr.msk.f32.mxu1 %vm980_vm1, %v950_v40  ;;  %4790 = vmatprep.mubr.msk.f32.mxu0 %vm980_vm1, %v950_v40 }
 0x15b   :  { %v953_v45 = vmax.f32 %v889_v42, 0.0  ;;  %v820_v46 = vmul.f32 %v4598_v44, %v5646_v8  ;;  %v653_v47 = vpop.f32.mrb[41].mxu0  ;;  %4691 = vmatmul.mubr.msk.f32.gmra.mrb[38].mxu1 %vm980_vm1, %v951_v37  ;;  %4791 = vmatmul.mubr.msk.f32.gmra.mrb[98].mxu0 %vm980_vm1, %v951_v37 }
 0x15c   :  { %v952_v48 = vmax.f32 %v888_v43, 0.0  ;;  %v819_v49 = vmul.f32 %v5646_v8, %v653_v47 }
 0x15d   :  { %v891_v50 = vadd.f32 %v5649_v10, %v820_v46 }
 0x15e   :  { %v890_v51 = vadd.f32 %v5649_v10, %v819_v49  ;;  %v4601_v52 = vpop.f32.mrb[42].mxu0  ;;  %4693 = vmatprep.mubr.msk.f32.mxu1 %vm980_vm1, %v952_v48  ;;  %4793 = vmatprep.mubr.msk.f32.mxu0 %vm980_vm1, %v952_v48 }
 0x15f   :  { %v955_v53 = vmax.f32 %v891_v50, 0.0  ;;  %v822_v54 = vmul.f32 %v4601_v52, %v5646_v8  ;;  %v663_v55 = vpop.f32.mrb[43].mxu0  ;;  %4694 = vmatmul.mubr.msk.f32.gmra.mrb[40].mxu1 %vm980_vm1, %v953_v45  ;;  %4794 = vmatmul.mubr.msk.f32.gmra.mrb[100].mxu0 %vm980_vm1, %v953_v45 }
 0x160   :  { %v954_v57 = vmax.f32 %v890_v51, 0.0  ;;  %v821_v58 = vmul.f32 %v5646_v8, %v663_v55 }
 0x161   :  { %v893_v60 = vadd.f32 %v5649_v10, %v822_v54 }
 0x162   :  { %v892_v61 = vadd.f32 %v5649_v10, %v821_v58  ;;  %v4604_v62 = vpop.f32.mrb[44].mxu0  ;;  %4696 = vmatprep.mubr.msk.f32.mxu1 %vm980_vm1, %v954_v57  ;;  %4796 = vmatprep.mubr.msk.f32.mxu0 %vm980_vm1, %v954_v57 }
 0x163   :  { %v957_v63 = vmax.f32 %v893_v60, 0.0  ;;  %v824_v0 = vmul.f32 %v4604_v62, %v5646_v8  ;;  %v673_v1 = vpop.f32.mrb[45].mxu0  ;;  %4697 = vmatmul.mubr.msk.f32.gmra.mrb[42].mxu1 %vm980_vm1, %v955_v53  ;;  %4797 = vmatmul.mubr.msk.f32.gmra.mrb[102].mxu0 %vm980_vm1, %v955_v53 }
 0x164   :  { %v956_v2 = vmax.f32 %v892_v61, 0.0  ;;  %v823_v3 = vmul.f32 %v5646_v8, %v673_v1 }
 0x165   :  { %v895_v4 = vadd.f32 %v5649_v10, %v824_v0  ;;  %v841_v0 = vmul.f32 %v5646_v8, %v5819_v59  ;;  %v842_v59 = vmul.f32 %v5816_v56, %v5646_v8 }
 0x166   :  { %v894_v5 = vadd.f32 %v5649_v10, %v823_v3  ;;  %v4607_v6 = vpop.f32.mrb[46].mxu0  ;;  %4699 = vmatprep.mubr.msk.f32.mxu1 %vm980_vm1, %v956_v2  ;;  %4799 = vmatprep.mubr.msk.f32.mxu0 %vm980_vm1, %v956_v2 }
 0x167   :  { %v959_v7 = vmax.f32 %v895_v4, 0.0  ;;  %v826_v9 = vmul.f32 %v4607_v6, %v5646_v8  ;;  %v683_v11 = vpop.f32.mrb[47].mxu0  ;;  %4700 = vmatmul.mubr.msk.f32.gmra.mrb[44].mxu1 %vm980_vm1, %v957_v63  ;;  %4800 = vmatmul.mubr.msk.f32.gmra.mrb[104].mxu0 %vm980_vm1, %v957_v63 }
 0x168   :  { %v958_v12 = vmax.f32 %v894_v5, 0.0  ;;  %v825_v13 = vmul.f32 %v5646_v8, %v683_v11  ;;  %v912_v11 = vadd.f32 %v5649_v10, %v841_v0 }
 0x169   :  { %v897_v14 = vadd.f32 %v5649_v10, %v826_v9 }
 0x16a   :  { %v896_v15 = vadd.f32 %v5649_v10, %v825_v13  ;;  %v4610_v16 = vpop.f32.mrb[48].mxu0  ;;  %4702 = vmatprep.mubr.msk.f32.mxu1 %vm980_vm1, %v958_v12  ;;  %4802 = vmatprep.mubr.msk.f32.mxu0 %vm980_vm1, %v958_v12  ;;  %v976_v56 = vmax.f32 %v912_v11, 0.0  ;;  %v6030_v11 = vld [vmem:[%s5387_s3 + $0x48] sm:$0xff] }
 0x16b   :  { %v961_v17 = vmax.f32 %v897_v14, 0.0  ;;  %v828_v18 = vmul.f32 %v4610_v16, %v5646_v8  ;;  %v693_v19 = vpop.f32.mrb[49].mxu0  ;;  %4703 = vmatmul.mubr.msk.f32.gmra.mrb[46].mxu1 %vm980_vm1, %v959_v7  ;;  %4803 = vmatmul.mubr.msk.f32.gmra.mrb[106].mxu0 %vm980_vm1, %v959_v7 }
 0x16c   :  { %v960_v20 = vmax.f32 %v896_v15, 0.0  ;;  %v827_v21 = vmul.f32 %v5646_v8, %v693_v19  ;;  %v913_v15 = vadd.f32 %v5649_v10, %v842_v59  ;;  %v5925_v19 = vld [vmem:[%s5382_s29] sm:$0xff] }
 0x16d   :  { %v899_v22 = vadd.f32 %v5649_v10, %v828_v18  ;;  %v5922_v18 = vld [vmem:[%s5387_s3 + $0x8] sm:$0xff] }
 0x16e   :  { %v898_v23 = vadd.f32 %v5649_v10, %v827_v21  ;;  %v4613_v24 = vpop.f32.mrb[50].mxu0  ;;  %4705 = vmatprep.mubr.msk.f32.mxu1 %vm980_vm1, %v960_v20  ;;  %4805 = vmatprep.mubr.msk.f32.mxu0 %vm980_vm1, %v960_v20  ;;  %v977_v16 = vmax.f32 %v913_v15, 0.0  ;;  %v5928_v20 = vld [vmem:[%s5387_s3] sm:$0xff]  ;;  %v6111_v15 = vld [vmem:[%s5382_s29 + $0x78] sm:$0xff] }
 0x16f   :  { %v963_v25 = vmax.f32 %v899_v22, 0.0  ;;  %v830_v26 = vmul.f32 %v4613_v24, %v5646_v8  ;;  %v703_v27 = vpop.f32.mrb[51].mxu0  ;;  %4706 = vmatmul.mubr.msk.f32.gmra.mrb[48].mxu1 %vm980_vm1, %v961_v17  ;;  %4806 = vmatmul.mubr.msk.f32.gmra.mrb[108].mxu0 %vm980_vm1, %v961_v17  ;;  %v5919_v17 = vld [vmem:[%s5382_s29 + $0x8] sm:$0xff] }
 0x170   :  { %v962_v28 = vmax.f32 %v898_v23, 0.0  ;;  %v829_v29 = vmul.f32 %v5646_v8, %v703_v27 }
 0x171   :  { %v901_v30 = vadd.f32 %v5649_v10, %v830_v26 }
 0x172   :  { %v900_v31 = vadd.f32 %v5649_v10, %v829_v29  ;;  %v4616_v32 = vpop.f32.mrb[52].mxu0  ;;  %4708 = vmatprep.mubr.msk.f32.mxu1 %vm980_vm1, %v962_v28  ;;  %4808 = vmatprep.mubr.msk.f32.mxu0 %vm980_vm1, %v962_v28  ;;  %v5943_v29 = vld [vmem:[%s5382_s29 + $0x18] sm:$0xff] }
 0x173   :  { %v965_v33 = vmax.f32 %v901_v30, 0.0  ;;  %v832_v34 = vmul.f32 %v4616_v32, %v5646_v8  ;;  %v713_v35 = vpop.f32.mrb[53].mxu0  ;;  %4709 = vmatmul.mubr.msk.f32.gmra.mrb[50].mxu1 %vm980_vm1, %v963_v25  ;;  %4809 = vmatmul.mubr.msk.f32.gmra.mrb[110].mxu0 %vm980_vm1, %v963_v25  ;;  %v5946_v30 = vld [vmem:[%s5387_s3 + $0x18] sm:$0xff]  ;;  %v5952_v32 = vld [vmem:[%s5387_s3 + $0x10] sm:$0xff] }
 0x174   :  { %v964_v36 = vmax.f32 %v900_v31, 0.0  ;;  %v831_v37 = vmul.f32 %v5646_v8, %v713_v35  ;;  %v5949_v31 = vld [vmem:[%s5382_s29 + $0x10] sm:$0xff] }
 0x175   :  { %v903_v38 = vadd.f32 %v5649_v10, %v832_v34 }
 0x176   :  { %v902_v39 = vadd.f32 %v5649_v10, %v831_v37  ;;  %v4619_v40 = vpop.f32.mrb[54].mxu0  ;;  %4711 = vmatprep.mubr.msk.f32.mxu1 %vm980_vm1, %v964_v36  ;;  %4811 = vmatprep.mubr.msk.f32.mxu0 %vm980_vm1, %v964_v36 }
 0x177   :  { %v967_v41 = vmax.f32 %v903_v38, 0.0  ;;  %v834_v42 = vmul.f32 %v4619_v40, %v5646_v8  ;;  %v723_v43 = vpop.f32.mrb[55].mxu0  ;;  %4712 = vmatmul.mubr.msk.f32.gmra.mrb[52].mxu1 %vm980_vm1, %v965_v33  ;;  %4812 = vmatmul.mubr.msk.f32.gmra.mrb[112].mxu0 %vm980_vm1, %v965_v33  ;;  %v6139_v33 = vld [vmem:[%s5382_s29 + $0x88] sm:$0xff] }
 0x178   :  { %v966_v44 = vmax.f32 %v902_v39, 0.0  ;;  %v833_v45 = vmul.f32 %v5646_v8, %v723_v43  ;;  %v5971_v43 = vld [vmem:[%s5382_s29 + $0x28] sm:$0xff]  ;;  %7016 = vst [vmem:[#allocation44_spill] sm:$0xff] %v6139_v33 }
 0x179   :  { %v905_v46 = vadd.f32 %v5649_v10, %v834_v42 }
 0x17a   :  { %v904_v47 = vadd.f32 %v5649_v10, %v833_v45  ;;  %v4622_v48 = vpop.f32.mrb[56].mxu0  ;;  %4714 = vmatprep.mubr.msk.f32.mxu1 %vm980_vm1, %v966_v44  ;;  %4814 = vmatprep.mubr.msk.f32.mxu0 %vm980_vm1, %v966_v44  ;;  %v5974_v44 = vld [vmem:[%s5387_s3 + $0x28] sm:$0xff]  ;;  %v5977_v45 = vld [vmem:[%s5382_s29 + $0x20] sm:$0xff] }
 0x17b   :  { %v969_v49 = vmax.f32 %v905_v46, 0.0  ;;  %v836_v50 = vmul.f32 %v4622_v48, %v5646_v8  ;;  %v733_v51 = vpop.f32.mrb[57].mxu0  ;;  %4715 = vmatmul.mubr.msk.f32.gmra.mrb[54].mxu1 %vm980_vm1, %v967_v41  ;;  %4815 = vmatmul.mubr.msk.f32.gmra.mrb[114].mxu0 %vm980_vm1, %v967_v41  ;;  %v5980_v46 = vld [vmem:[%s5387_s3 + $0x20] sm:$0xff] }
 0x17c   :  { %v968_v52 = vmax.f32 %v904_v47, 0.0  ;;  %v835_v53 = vmul.f32 %v5646_v8, %v733_v51 }
 0x17d   :  { %v907_v54 = vadd.f32 %v5649_v10, %v836_v50 }
 0x17e   :  { %v906_v55 = vadd.f32 %v5649_v10, %v835_v53  ;;  %v4625_v57 = vpop.f32.mrb[58].mxu0  ;;  %4717 = vmatprep.mubr.msk.f32.mxu1 %vm980_vm1, %v968_v52  ;;  %4817 = vmatprep.mubr.msk.f32.mxu0 %vm980_vm1, %v968_v52 }
 0x17f   :  { %v971_v58 = vmax.f32 %v907_v54, 0.0  ;;  %v838_v60 = vmul.f32 %v4625_v57, %v5646_v8  ;;  %v743_v61 = vpop.f32.mrb[59].mxu0  ;;  %4718 = vmatmul.mubr.msk.f32.gmra.mrb[56].mxu1 %vm980_vm1, %v969_v49  ;;  %4818 = vmatmul.mubr.msk.f32.gmra.mrb[116].mxu0 %vm980_vm1, %v969_v49 }
 0x180   :  { %v970_v62 = vmax.f32 %v906_v55, 0.0  ;;  %v837_v63 = vmul.f32 %v5646_v8, %v743_v61  ;;  %v6005_v61 = vld [vmem:[%s5382_s29 + $0x30] sm:$0xff] }
 0x181   :  { %v909_v1 = vadd.f32 %v5649_v10, %v838_v60  ;;  %v6002_v60 = vld [vmem:[%s5387_s3 + $0x38] sm:$0xff] }
 0x182   :  { %v908_v2 = vadd.f32 %v5649_v10, %v837_v63  ;;  %v4628_v3 = vpop.f32.mrb[60].mxu0  ;;  %4720 = vmatprep.mubr.msk.f32.mxu1 %vm980_vm1, %v970_v62  ;;  %4820 = vmatprep.mubr.msk.f32.mxu0 %vm980_vm1, %v970_v62  ;;  %v6008_v62 = vld [vmem:[%s5387_s3 + $0x30] sm:$0xff] }
 0x183   :  { %v973_v4 = vmax.f32 %v909_v1, 0.0  ;;  %v840_v5 = vmul.f32 %v4628_v3, %v5646_v8  ;;  %v753_v6 = vpop.f32.mrb[61].mxu0  ;;  %4721 = vmatmul.mubr.msk.f32.gmra.mrb[58].mxu1 %vm980_vm1, %v971_v58  ;;  %4821 = vmatmul.mubr.msk.f32.gmra.mrb[118].mxu0 %vm980_vm1, %v971_v58  ;;  %v5999_v58 = vld [vmem:[%s5382_s29 + $0x38] sm:$0xff] }
 0x184   :  { %v972_v7 = vmax.f32 %v908_v2, 0.0  ;;  %v839_v9 = vmul.f32 %v5646_v8, %v753_v6 }
 0x185   :  { %v911_v12 = vadd.f32 %v5649_v10, %v840_v5 }
 0x186   :  { %v910_v13 = vadd.f32 %v5649_v10, %v839_v9  ;;  %4723 = vmatprep.mubr.msk.f32.mxu1 %vm980_vm1, %v972_v7  ;;  %4823 = vmatprep.mubr.msk.f32.mxu0 %vm980_vm1, %v972_v7  ;;  %v5914_v10 = vld [vmem:[%s5392_s8] sm:$0xff]  ;;  %v6027_v9 = vld [vmem:[%s5382_s29 + $0x48] sm:$0xff] }
 0x187   :  { %v975_v14 = vmax.f32 %v911_v12, 0.0  ;;  %4724 = vmatmul.mubr.msk.f32.gmra.mrb[60].mxu1 %vm980_vm1, %v973_v4  ;;  %4824 = vmatmul.mubr.msk.f32.gmra.mrb[120].mxu0 %vm980_vm1, %v973_v4  ;;  %6996 = vst [vmem:[#allocation24_spill] sm:$0xff] %v5914_v10  ;;  %v6033_v12 = vld [vmem:[%s5382_s29 + $0x40] sm:$0xff] }
 0x188   :  { %v974_v8 = vmax.f32 %v910_v13, 0.0  ;;  %v6036_v13 = vld [vmem:[%s5387_s3 + $0x40] sm:$0xff] }
 0x18a   :  { %4726 = vmatprep.mubr.msk.f32.mxu1 %vm980_vm1, %v974_v8  ;;  %4826 = vmatprep.mubr.msk.f32.mxu0 %vm980_vm1, %v974_v8 }
 0x18b   :  { %4727 = vmatmul.mubr.msk.f32.gmra.mrb[62].mxu1 %vm980_vm1, %v975_v14  ;;  %4827 = vmatmul.mubr.msk.f32.gmra.mrb[122].mxu0 %vm980_vm1, %v975_v14 }
 0x18c   :  { %4729 = vmatprep.mubr.msk.f32.mxu1 %vm980_vm1, %v976_v56  ;;  %4829 = vmatprep.mubr.msk.f32.mxu0 %vm980_vm1, %v976_v56 }
 0x18f   :  { %4730 = vmatmul.mubr.msk.f32.gmra.mrb[64].mxu1 %vm980_vm1, %v977_v16  ;;  %4830 = vmatmul.mubr.msk.f32.gmra.mrb[124].mxu0 %vm980_vm1, %v977_v16 }
 0x190   :  { %4378 = vmatprep.mubr.msk.f32.mxu1 %vm980_vm1, %v5914_v10 }
 0x1e6   :  { %v4638_v21 = vpop.f32.mrb[2].mxu1  ;;  %v4738_v22 = vpop.f32.mrb[62].mxu0 }
 0x1e7   :  { %v5931_v23 = vadd.f32 %v4638_v21, %v5919_v17  ;;  %v5934_v24 = vadd.f32 %v4738_v22, %v5922_v18  ;;  %v1239_v25 = vpop.f32.mrb[3].mxu1  ;;  %v1626_v26 = vpop.f32.mrb[63].mxu0 }
 0x1e8   :  { %v5937_v27 = vadd.f32 %v5925_v19, %v1239_v25  ;;  %v5940_v28 = vadd.f32 %v5928_v20, %v1626_v26 }
 0x1e9   :  { %6997 = vst [vmem:[#allocation25_spill] sm:$0xff] %v5934_v24 }
 0x1ea   :  { %6998 = vst [vmem:[#allocation26_spill] sm:$0xff] %v5940_v28  ;;  %v4641_v35 = vpop.f32.mrb[4].mxu1  ;;  %v4741_v36 = vpop.f32.mrb[64].mxu0 }
 0x1eb   :  { %v5959_v37 = vadd.f32 %v4641_v35, %v5943_v29  ;;  %v5962_v38 = vadd.f32 %v4741_v36, %v5946_v30  ;;  %v1249_v39 = vpop.f32.mrb[5].mxu1  ;;  %v1636_v40 = vpop.f32.mrb[65].mxu0  ;;  %v6055_v36 = vld [vmem:[%s5382_s29 + $0x58] sm:$0xff] }
 0x1ec   :  { %v5965_v41 = vadd.f32 %v5949_v31, %v1249_v39  ;;  %v5968_v42 = vadd.f32 %v5952_v32, %v1636_v40  ;;  %v6058_v39 = vld [vmem:[%s5387_s3 + $0x58] sm:$0xff]  ;;  %v6061_v40 = vld [vmem:[%s5382_s29 + $0x50] sm:$0xff] }
 0x1ed   :  { %6999 = vst [vmem:[#allocation27_spill] sm:$0xff] %v5962_v38 }
 0x1ee   :  { %7000 = vst [vmem:[#allocation28_spill] sm:$0xff] %v5968_v42  ;;  %v4644_v49 = vpop.f32.mrb[6].mxu1  ;;  %v4744_v50 = vpop.f32.mrb[66].mxu0 }
 0x1ef   :  { %v5987_v51 = vadd.f32 %v4644_v49, %v5971_v43  ;;  %v5990_v52 = vadd.f32 %v4744_v50, %v5974_v44  ;;  %v1259_v53 = vpop.f32.mrb[7].mxu1  ;;  %v1646_v54 = vpop.f32.mrb[67].mxu0  ;;  %v6064_v49 = vld [vmem:[%s5387_s3 + $0x50] sm:$0xff] }
 0x1f0   :  { %v5993_v55 = vadd.f32 %v5977_v45, %v1259_v53  ;;  %v5996_v57 = vadd.f32 %v5980_v46, %v1646_v54  ;;  %v6086_v53 = vld [vmem:[%s5387_s3 + $0x68] sm:$0xff] }
 0x1f1   :  { %7001 = vst [vmem:[#allocation29_spill] sm:$0xff] %v5990_v52 }
 0x1f2   :  { %7002 = vst [vmem:[#allocation30_spill] sm:$0xff] %v5996_v57  ;;  %v4647_v1 = vpop.f32.mrb[8].mxu1  ;;  %v4747_v2 = vpop.f32.mrb[68].mxu0 }
 0x1f3   :  { %v6015_v3 = vadd.f32 %v4647_v1, %v5999_v58  ;;  %v6018_v4 = vadd.f32 %v4747_v2, %v6002_v60  ;;  %v1269_v5 = vpop.f32.mrb[9].mxu1  ;;  %v1656_v6 = vpop.f32.mrb[69].mxu0 }
 0x1f4   :  { %v6021_v59 = vadd.f32 %v6005_v61, %v1269_v5  ;;  %v6024_v7 = vadd.f32 %v6008_v62, %v1656_v6 }
 0x1f5   :  { %7003 = vst [vmem:[#allocation31_spill] sm:$0xff] %v6018_v4 }
 0x1f6   :  { %7004 = vst [vmem:[#allocation32_spill] sm:$0xff] %v6024_v7  ;;  %v4650_v8 = vpop.f32.mrb[10].mxu1  ;;  %v4750_v56 = vpop.f32.mrb[70].mxu0 }
 0x1f7   :  { %v6043_v16 = vadd.f32 %v4650_v8, %v6027_v9  ;;  %v6046_v21 = vadd.f32 %v4750_v56, %v6030_v11  ;;  %v1279_v22 = vpop.f32.mrb[11].mxu1  ;;  %v1666_v25 = vpop.f32.mrb[71].mxu0 }
 0x1f8   :  { %v6049_v26 = vadd.f32 %v6033_v12, %v1279_v22  ;;  %v6052_v35 = vadd.f32 %v6036_v13, %v1666_v25  ;;  %v6083_v25 = vld [vmem:[%s5382_s29 + $0x68] sm:$0xff] }
 0x1f9   :  { %7005 = vst [vmem:[#allocation33_spill] sm:$0xff] %v6046_v21 }
 0x1fa   :  { %7006 = vst [vmem:[#allocation34_spill] sm:$0xff] %v6052_v35  ;;  %v4653_v54 = vpop.f32.mrb[12].mxu1  ;;  %v4753_v1 = vpop.f32.mrb[72].mxu0 }
 0x1fb   :  { %v6071_v2 = vadd.f32 %v4653_v54, %v6055_v36  ;;  %v6074_v5 = vadd.f32 %v4753_v1, %v6058_v39  ;;  %v1289_v6 = vpop.f32.mrb[13].mxu1  ;;  %v1676_v8 = vpop.f32.mrb[73].mxu0  ;;  %v6089_v54 = vld [vmem:[%s5382_s29 + $0x60] sm:$0xff] }
 0x1fc   :  { %v6077_v56 = vadd.f32 %v6061_v40, %v1289_v6  ;;  %v6080_v22 = vadd.f32 %v6064_v49, %v1676_v8  ;;  %v6092_v1 = vld [vmem:[%s5387_s3 + $0x60] sm:$0xff]  ;;  %v6114_v6 = vld [vmem:[%s5387_s3 + $0x78] sm:$0xff] }
 0x1fd   :  { %7007 = vst [vmem:[#allocation35_spill] sm:$0xff] %v6074_v5 }
 0x1fe   :  { %7008 = vst [vmem:[#allocation36_spill] sm:$0xff] %v6080_v22  ;;  %v4656_v0 = vpop.f32.mrb[14].mxu1  ;;  %v4756_v8 = vpop.f32.mrb[74].mxu0 }
 0x1ff   :  { %v6099_v48 = vadd.f32 %v4656_v0, %v6083_v25  ;;  %v6102_v34 = vadd.f32 %v4756_v8, %v6086_v53  ;;  %v1299_v50 = vpop.f32.mrb[15].mxu1  ;;  %v1686_v14 = vpop.f32.mrb[75].mxu0  ;;  %v6117_v0 = vld [vmem:[%s5382_s29 + $0x70] sm:$0xff] }
 0x200   :  { %v6105_v63 = vadd.f32 %v6089_v54, %v1299_v50  ;;  %v6108_v47 = vadd.f32 %v6092_v1, %v1686_v14  ;;  %7011 = vst [vmem:[#allocation39_spill] sm:$0xff] %v6117_v0  ;;  %v6120_v8 = vld [vmem:[%s5387_s3 + $0x70] sm:$0xff]  ;;  %v6142_v50 = vld [vmem:[%s5387_s3 + $0x88] sm:$0xff] }
 0x201   :  { %7009 = vst [vmem:[#allocation37_spill] sm:$0xff] %v6102_v34  ;;  %7017 = vst [vmem:[#allocation45_spill] sm:$0xff] %v6142_v50 }
 0x202   :  { %7010 = vst [vmem:[#allocation38_spill] sm:$0xff] %v6108_v47  ;;  %v4659_v22 = vpop.f32.mrb[16].mxu1  ;;  %v4759_v14 = vpop.f32.mrb[76].mxu0  ;;  %v6166_v47 = vld [vmem:[%s5387_s3 + $0x98] sm:$0xff] }
 0x203   :  { %v6127_v5 = vadd.f32 %v4659_v22, %v6111_v15  ;;  %v6130_v35 = vadd.f32 %v4759_v14, %v6114_v6  ;;  %v1309_v21 = vpop.f32.mrb[17].mxu1  ;;  %v1696_v7 = vpop.f32.mrb[77].mxu0  ;;  %v6145_v22 = vld [vmem:[%s5382_s29 + $0x80] sm:$0xff]  ;;  %7022 = vst [vmem:[#allocation50_spill] sm:$0xff] %v6166_v47 }
 0x204   :  { %v6133_v4 = vadd.f32 %v6117_v0, %v1309_v21  ;;  %v6136_v57 = vadd.f32 %v6120_v8, %v1696_v7  ;;  %7018 = vst [vmem:[#allocation46_spill] sm:$0xff] %v6145_v22  ;;  %v6148_v14 = vld [vmem:[%s5387_s3 + $0x80] sm:$0xff]  ;;  %v6163_v0 = vld [vmem:[%s5382_s29 + $0x98] sm:$0xff]  ;;  %v6178_v21 = vld [vmem:[%s5387_s3 + $0x90] sm:$0xff] }
 0x205   :  { %7012 = vst [vmem:[#allocation40_spill] sm:$0xff] %v6127_v5  ;;  %7013 = vst [vmem:[#allocation41_spill] sm:$0xff] %v6130_v35 }
 0x206   :  { %7014 = vst [vmem:[#allocation42_spill] sm:$0xff] %v6133_v4  ;;  %7015 = vst [vmem:[#allocation43_spill] sm:$0xff] %v6136_v57  ;;  %v4662_v34 = vpop.f32.mrb[18].mxu1  ;;  %v4762_v7 = vpop.f32.mrb[78].mxu0 }
 0x207   :  { %7019 = vst [vmem:[#allocation47_spill] sm:$0xff] %v6148_v14  ;;  %v2030_v52 = vadd.f32 %v4662_v34, %v6139_v33  ;;  %v6156_v42 = vadd.f32 %v4762_v7, %v6142_v50  ;;  %v1319_v38 = vpop.f32.mrb[19].mxu1  ;;  %v1706_v28 = vpop.f32.mrb[79].mxu0  ;;  %7021 = vst [vmem:[#allocation49_spill] sm:$0xff] %v6163_v0  ;;  %v6175_v7 = vld [vmem:[%s5382_s29 + $0x90] sm:$0xff] }
 0x208   :  { %v2029_v24 = vadd.f32 %v6145_v22, %v1319_v38  ;;  %v6160_v10 = vadd.f32 %v6148_v14, %v1706_v28  ;;  %7025 = vst [vmem:[#allocation51_spill] sm:$0xff] %v6175_v7  ;;  %7026 = vst [vmem:[#allocation52_spill] sm:$0xff] %v6178_v21 }
 0x20a   :  { %7020 = vst [vmem:[#allocation48_spill] sm:$0xff] %v6160_v10  ;;  %v4909_v28 = vpack.c.bf16 %v2030_v52, %v2029_v24  ;;  %v4665_v57 = vpop.f32.mrb[20].mxu1  ;;  %v4765_v35 = vpop.f32.mrb[80].mxu0  ;;  %v6193_v24 = vld [vmem:[%s5382_s29 + $0xa8] sm:$0xff] }
 0x20b   :  { %v2032_v22 = vadd.f32 %v4665_v57, %v6163_v0  ;;  %v1329_v14 = vpop.f32.mrb[21].mxu1  ;;  %v6184_v33 = vadd.f32 %v4765_v35, %v6166_v47  ;;  %v1716_v50 = vpop.f32.mrb[81].mxu0  ;;  %7029 = vst [vmem:[#allocation55_spill] sm:$0xff] %v6193_v24  ;;  %v6196_v52 = vld [vmem:[%s5387_s3 + $0xa8] sm:$0xff]  ;;  %v7031_v57 = vpack.c.bf16 %v5931_v23, %v5937_v27  ;;  %v6204_v35 = vld [vmem:[%s5382_s29 + $0xa0] sm:$0xff]  ;;  %v6219_v47 = vld [vmem:[%s5382_s29 + $0xb8] sm:$0xff] }
 0x20c   :  { %4911 = vmatprep.subr.msk.bf16.mxu1 %vm6170_vm2, %v4909_v28  ;;  %v2031_v4 = vadd.f32 %v6175_v7, %v1329_v14  ;;  %v6190_v5 = vadd.f32 %v6178_v21, %v1716_v50  ;;  %7030 = vst [vmem:[#allocation56_spill] sm:$0xff] %v6196_v52  ;;  %7032 = vst [vmem:[#allocation57_spill] sm:$0xff] %v6204_v35  ;;  %v6207_v14 = vld [vmem:[%s5387_s3 + $0xa0] sm:$0xff] }
 0x20d   :  { %7027 = vst [vmem:[#allocation53_spill] sm:$0xff] %v6184_v33  ;;  %4914 = vmatpush3.bf16.xpose.msk.msra.mxu1 %vm6170_vm2, %v7031_v57  ;;  %7033 = vst [vmem:[#allocation58_spill] sm:$0xff] %v6207_v14  ;;  %v6241_v33 = vld [vmem:[%s5382_s29 + $0xc8] sm:$0xff] }
 0x20e   :  { %7028 = vst [vmem:[#allocation54_spill] sm:$0xff] %v6190_v5  ;;  %v4915_v50 = vpack.c.bf16 %v2032_v22, %v2031_v4  ;;  %v4668_v38 = vpop.f32.mrb[22].mxu1  ;;  %v4768_v7 = vpop.f32.mrb[82].mxu0  ;;  %7034 = vst [vmem:[#allocation59_spill] sm:$0xff] %v6219_v47  ;;  %v6225_v22 = vld [vmem:[%s5387_s3 + $0xb8] sm:$0xff] }
 0x20f   :  { %v2034_v21 = vadd.f32 %v4668_v38, %v6193_v24  ;;  %v1339_v0 = vpop.f32.mrb[23].mxu1  ;;  %v6213_v23 = vadd.f32 %v4768_v7, %v6196_v52  ;;  %v1726_v27 = vpop.f32.mrb[83].mxu0  ;;  %7036 = vst [vmem:[#allocation61_spill] sm:$0xff] %v6225_v22  ;;  %v6228_v38 = vld [vmem:[%s5382_s29 + $0xb0] sm:$0xff]  ;;  %7040 = vst [vmem:[#allocation65_spill] sm:$0xff] %v6241_v33 }
 0x210   :  { %4917 = vmatprep.subr.msk.bf16.mxu1 %vm6170_vm2, %v4915_v50  ;;  %v2033_v57 = vadd.f32 %v6204_v35, %v1339_v0  ;;  %v6222_v4 = vadd.f32 %v6207_v14, %v1726_v27  ;;  %7037 = vst [vmem:[#allocation62_spill] sm:$0xff] %v6228_v38  ;;  %v6231_v7 = vld [vmem:[%s5387_s3 + $0xb0] sm:$0xff] }
 0x211   :  { %7038 = vst [vmem:[#allocation63_spill] sm:$0xff] %v6231_v7 }
 0x212   :  { %7035 = vst [vmem:[#allocation60_spill] sm:$0xff] %v6222_v4  ;;  %v4921_v28 = vpack.c.bf16 %v2034_v21, %v2033_v57  ;;  %v4671_v24 = vpop.f32.mrb[24].mxu1  ;;  %v4771_v0 = vpop.f32.mrb[84].mxu0  ;;  %v6247_v21 = vld [vmem:[%s5387_s3 + $0xc8] sm:$0xff]  ;;  %v7043_v57 = vpack.c.bf16 %v5959_v37, %v5965_v41 }
 0x213   :  { %v2036_v35 = vadd.f32 %v4671_v24, %v6219_v47  ;;  %v1349_v52 = vpop.f32.mrb[25].mxu1  ;;  %v6237_v27 = vadd.f32 %v4771_v0, %v6225_v22  ;;  %v1736_v14 = vpop.f32.mrb[85].mxu0  ;;  %7042 = vst [vmem:[#allocation67_spill] sm:$0xff] %v6247_v21  ;;  %v6255_v24 = vld [vmem:[%s5382_s29 + $0xc0] sm:$0xff]  ;;  %v6270_v22 = vld [vmem:[%s5382_s29 + $0xd8] sm:$0xff] }
 0x214   :  { %v2035_v5 = vadd.f32 %v6228_v38, %v1349_v52  ;;  %v6244_v10 = vadd.f32 %v6231_v7, %v1736_v14  ;;  %7044 = vst [vmem:[#allocation68_spill] sm:$0xff] %v6255_v24  ;;  %v6258_v52 = vld [vmem:[%s5387_s3 + $0xc0] sm:$0xff]  ;;  %7046 = vst [vmem:[#allocation70_spill] sm:$0xff] %v6270_v22 }
 0x215   :  { %7039 = vst [vmem:[#allocation64_spill] sm:$0xff] %v6237_v27  ;;  %4920 = vmatpush3.bf16.xpose.msk.msra.mxu1 %vm6170_vm2, %v7043_v57  ;;  %7045 = vst [vmem:[#allocation69_spill] sm:$0xff] %v6258_v52  ;;  %v6292_v27 = vld [vmem:[%s5382_s29 + $0xe8] sm:$0xff] }
 0x216   :  { %7041 = vst [vmem:[#allocation66_spill] sm:$0xff] %v6244_v10  ;;  %4923 = vmatprep.subr.msk.bf16.mxu1 %vm6170_vm2, %v4921_v28  ;;  %v4927_v14 = vpack.c.bf16 %v2036_v35, %v2035_v5  ;;  %v4674_v0 = vpop.f32.mrb[26].mxu1  ;;  %v4774_v38 = vpop.f32.mrb[86].mxu0  ;;  %v6276_v35 = vld [vmem:[%s5387_s3 + $0xd8] sm:$0xff]  ;;  %v6279_v28 = vld [vmem:[%s5382_s29 + $0xd0] sm:$0xff]  ;;  %7051 = vst [vmem:[#allocation75_spill] sm:$0xff] %v6292_v27 }
 0x217   :  { %v2038_v37 = vadd.f32 %v4674_v0, %v6241_v33  ;;  %v1359_v41 = vpop.f32.mrb[27].mxu1  ;;  %v6266_v57 = vadd.f32 %v4774_v38, %v6247_v21  ;;  %v1746_v7 = vpop.f32.mrb[87].mxu0  ;;  %7047 = vst [vmem:[#allocation71_spill] sm:$0xff] %v6276_v35  ;;  %7048 = vst [vmem:[#allocation72_spill] sm:$0xff] %v6279_v28  ;;  %v6282_v0 = vld [vmem:[%s5387_s3 + $0xd0] sm:$0xff] }
 0x218   :  { %v2037_v47 = vadd.f32 %v6255_v24, %v1359_v41  ;;  %v6273_v5 = vadd.f32 %v6258_v52, %v1746_v7  ;;  %7049 = vst [vmem:[#allocation73_spill] sm:$0xff] %v6282_v0  ;;  %v6335_v33 = vld [vmem:[%s5387_s3 + $0xf0] sm:$0xff] }
 0x21a   :  { %v4933_v38 = vpack.c.bf16 %v2038_v37, %v2037_v47  ;;  %v4677_v50 = vpop.f32.mrb[28].mxu1  ;;  %v4777_v41 = vpop.f32.mrb[88].mxu0  ;;  %v6298_v47 = vld [vmem:[%s5387_s3 + $0xe8] sm:$0xff]  ;;  %v7054_v37 = vpack.c.bf16 %v5987_v51, %v5993_v55 }
 0x21b   :  { %v2040_v24 = vadd.f32 %v4677_v50, %v6270_v22  ;;  %v1369_v21 = vpop.f32.mrb[29].mxu1  ;;  %v6288_v7 = vadd.f32 %v4777_v41, %v6276_v35  ;;  %v1756_v52 = vpop.f32.mrb[89].mxu0  ;;  %7053 = vst [vmem:[#allocation77_spill] sm:$0xff] %v6298_v47  ;;  %v6306_v50 = vld [vmem:[%s5382_s29 + $0xe0] sm:$0xff]  ;;  %v6323_v35 = vld [vmem:[%s5382_s29 + $0xf8] sm:$0xff] }
 0x21c   :  { %v2039_v10 = vadd.f32 %v6279_v28, %v1369_v21  ;;  %v6295_v4 = vadd.f32 %v6282_v0, %v1756_v52  ;;  %7055 = vst [vmem:[#allocation78_spill] sm:$0xff] %v6306_v50  ;;  %v6309_v21 = vld [vmem:[%s5387_s3 + $0xe0] sm:$0xff] }
 0x21d   :  { %7050 = vst [vmem:[#allocation74_spill] sm:$0xff] %v6288_v7  ;;  %4926 = vmatpush3.bf16.xpose.msk.msra.mxu1 %vm6170_vm2, %v7054_v37  ;;  %7056 = vst [vmem:[#allocation79_spill] sm:$0xff] %v6309_v21 }
 0x21e   :  { %7052 = vst [vmem:[#allocation76_spill] sm:$0xff] %v6295_v4  ;;  %4929 = vmatprep.subr.msk.bf16.mxu1 %vm6170_vm2, %v4927_v14  ;;  %v4939_v52 = vpack.c.bf16 %v2040_v24, %v2039_v10  ;;  %v4680_v41 = vpop.f32.mrb[30].mxu1  ;;  %v4780_v28 = vpop.f32.mrb[90].mxu0  ;;  %v6329_v10 = vld [vmem:[%s5387_s3 + $0xf8] sm:$0xff]  ;;  %v6332_v24 = vld [vmem:[%s5382_s29 + $0xf0] sm:$0xff]  ;;  %s7168_s29 = sld [smem:[#allocation21_spill]] }
 0x21f   :  { %v6316_v51 = vadd.f32 %v4680_v41, %v6292_v27  ;;  %v1379_v55 = vpop.f32.mrb[31].mxu1  ;;  %v6319_v37 = vadd.f32 %v4780_v28, %v6298_v47  ;;  %v1766_v0 = vpop.f32.mrb[91].mxu0  ;;  %s7169_s3 = sld [smem:[#allocation16_spill]] }
 0x220   :  { %v2041_v22 = vadd.f32 %v6306_v50, %v1379_v55  ;;  %v6326_v14 = vadd.f32 %v6309_v21, %v1766_v0 }
 0x222   :  { %v4945_v41 = vpack.c.bf16 %v6316_v51, %v2041_v22  ;;  %v4683_v27 = vpop.f32.mrb[32].mxu1  ;;  %v4783_v47 = vpop.f32.mrb[92].mxu0  ;;  %v7058_v22 = vpack.c.bf16 %v6015_v3, %v6021_v59 }
 0x223   :  { %v6341_v55 = vadd.f32 %v4683_v27, %v6323_v35  ;;  %v1389_v50 = vpop.f32.mrb[33].mxu1  ;;  %v6344_v0 = vadd.f32 %v4783_v47, %v6329_v10  ;;  %v1776_v21 = vpop.f32.mrb[93].mxu0 }
 0x224   :  { %v6347_v4 = vadd.f32 %v6332_v24, %v1389_v50  ;;  %v6350_v7 = vadd.f32 %v6335_v33, %v1776_v21 }
 0x225   :  { %4932 = vmatpush3.bf16.xpose.msk.msra.mxu1 %vm6170_vm2, %v7058_v22 }
 0x226   :  { %7057 = vst [vmem:[#allocation80_spill] sm:$0xff] %v6350_v7  ;;  %4935 = vmatprep.subr.msk.bf16.mxu1 %vm6170_vm2, %v4933_v38  ;;  %v4786_v50 = vpop.f32.mrb[94].mxu0  ;;  %v4686_v51 = vpop.f32.mrb[34].mxu1  ;;  %v7070_v7 = vld [vmem:[#allocation44_spill] sm:$0xff] }
 0x227   :  { %v6364_v21 = vadd.f32 %v4786_v50, %v5922_v18  ;;  %v1786_v28 = vpop.f32.mrb[95].mxu0  ;;  %v6367_v3 = vadd.f32 %v4686_v51, %v5919_v17  ;;  %v1399_v59 = vpop.f32.mrb[35].mxu1 }
 0x228   :  { %v6370_v22 = vadd.f32 %v5928_v20, %v1786_v28  ;;  %v6373_v38 = vadd.f32 %v5925_v19, %v1399_v59  ;;  %v7059_v59 = vpack.c.bf16 %v6043_v16, %v6049_v26 }
 0x22a   :  { %v5039_v27 = vpack.c.bf16 %v6364_v21, %v6370_v22  ;;  %v4789_v47 = vpop.f32.mrb[96].mxu0  ;;  %v4689_v18 = vpop.f32.mrb[36].mxu1  ;;  %v7088_v21 = vld [vmem:[#allocation57_spill] sm:$0xff]  ;;  %v7089_v22 = vld [vmem:[#allocation27_spill] sm:$0xff] }
 0x22b   :  { %v6380_v50 = vadd.f32 %v4789_v47, %v5946_v30  ;;  %v1796_v17 = vpop.f32.mrb[97].mxu0  ;;  %v6383_v51 = vadd.f32 %v4689_v18, %v5943_v29  ;;  %v1409_v20 = vpop.f32.mrb[37].mxu1  ;;  %v7079_v29 = vld [vmem:[#allocation26_spill] sm:$0xff] }
 0x22c   :  { %v6386_v28 = vadd.f32 %v5952_v32, %v1796_v17  ;;  %v6389_v19 = vadd.f32 %v5949_v31, %v1409_v20 }
 0x22d   :  { %4938 = vmatpush3.bf16.xpose.msk.msra.mxu1 %vm6170_vm2, %v7059_v59 }
 0x22e   :  { %4941 = vmatprep.subr.msk.bf16.mxu1 %vm6170_vm2, %v4939_v52  ;;  %v4792_v30 = vpop.f32.mrb[98].mxu0  ;;  %v4692_v47 = vpop.f32.mrb[38].mxu1 }
 0x22f   :  { %v6403_v31 = vadd.f32 %v4792_v30, %v5974_v44  ;;  %v1806_v18 = vpop.f32.mrb[99].mxu0  ;;  %v6406_v16 = vadd.f32 %v4692_v47, %v5971_v43  ;;  %v1419_v26 = vpop.f32.mrb[39].mxu1 }
 0x230   :  { %v6409_v17 = vadd.f32 %v5980_v46, %v1806_v18  ;;  %v6412_v52 = vadd.f32 %v5977_v45, %v1419_v26  ;;  %v7060_v26 = vpack.c.bf16 %v6071_v2, %v6077_v56 }
 0x232   :  { %v4795_v59 = vpop.f32.mrb[100].mxu0  ;;  %v4695_v44 = vpop.f32.mrb[40].mxu1 }
 0x233   :  { %v6419_v30 = vadd.f32 %v4795_v59, %v6002_v60  ;;  %v1816_v43 = vpop.f32.mrb[101].mxu0  ;;  %v6422_v47 = vadd.f32 %v4695_v44, %v5999_v58  ;;  %v1429_v46 = vpop.f32.mrb[41].mxu1 }
 0x234   :  { %v6425_v18 = vadd.f32 %v6008_v62, %v1816_v43  ;;  %v6428_v45 = vadd.f32 %v6005_v61, %v1429_v46  ;;  %v7065_v62 = vld [vmem:[#allocation42_spill] sm:$0xff] }
 0x235   :  { %4944 = vmatpush3.bf16.xpose.msk.msra.mxu1 %vm6170_vm2, %v7060_v26 }
 0x236   :  { %4947 = vmatprep.subr.msk.bf16.mxu1 %vm6170_vm2, %v4945_v41  ;;  %v4798_v60 = vpop.f32.mrb[102].mxu0  ;;  %v4698_v59 = vpop.f32.mrb[42].mxu1 }
 0x237   :  { %v6442_v61 = vadd.f32 %v4798_v60, %v6030_v11  ;;  %v1826_v44 = vpop.f32.mrb[103].mxu0  ;;  %v6445_v2 = vadd.f32 %v4698_v59, %v6027_v9  ;;  %v1439_v56 = vpop.f32.mrb[43].mxu1 }
 0x238   :  { %v6448_v43 = vadd.f32 %v6036_v13, %v1826_v44  ;;  %v6451_v41 = vadd.f32 %v6033_v12, %v1439_v56  ;;  %v7061_v56 = vpack.c.bf16 %v6099_v48, %v6105_v63 }
 0x23a   :  { %v4801_v26 = vpop.f32.mrb[104].mxu0  ;;  %v4701_v11 = vpop.f32.mrb[44].mxu1 }
 0x23b   :  { %v6458_v60 = vadd.f32 %v4801_v26, %v6058_v39  ;;  %v1836_v9 = vpop.f32.mrb[105].mxu0  ;;  %v6461_v59 = vadd.f32 %v4701_v11, %v6055_v36  ;;  %v1449_v13 = vpop.f32.mrb[45].mxu1  ;;  %v7062_v39 = vpack.c.bf16 %v6341_v55, %v6347_v4  ;;  %v7072_v36 = vld [vmem:[#allocation46_spill] sm:$0xff] }
 0x23c   :  { %v6464_v44 = vadd.f32 %v6064_v49, %v1836_v9  ;;  %v6467_v12 = vadd.f32 %v6061_v40, %v1449_v13  ;;  %v7064_v40 = vld [vmem:[#allocation40_spill] sm:$0xff] }
 0x23d   :  { %4950 = vmatpush3.bf16.xpose.msk.msra.mxu1 %vm6170_vm2, %v7061_v56  ;;  %v7066_v32 = vpack.c.bf16 %v7064_v40, %v7065_v62 }
 0x23e   :  { %4953 = vmatprep.subr.msk.bf16.mxu1 %vm6170_vm2, %v7062_v39  ;;  %v4804_v49 = vpop.f32.mrb[106].mxu0  ;;  %v4704_v26 = vpop.f32.mrb[46].mxu1 }
 0x23f   :  { %v6484_v11 = vadd.f32 %v4804_v49, %v6086_v53  ;;  %v1846_v48 = vpop.f32.mrb[107].mxu0  ;;  %v6487_v63 = vadd.f32 %v4704_v26, %v6083_v25  ;;  %v1459_v9 = vpop.f32.mrb[47].mxu1 }
 0x240   :  { %v6490_v4 = vadd.f32 %v6092_v1, %v1846_v48  ;;  %v6493_v55 = vadd.f32 %v6089_v54, %v1459_v9  ;;  %v7063_v48 = vld [vmem:[#allocation39_spill] sm:$0xff] }
 0x242   :  { %v4807_v56 = vpop.f32.mrb[108].mxu0  ;;  %v4707_v53 = vpop.f32.mrb[48].mxu1 }
 0x243   :  { %v6500_v49 = vadd.f32 %v4807_v56, %v6114_v6  ;;  %v1856_v25 = vpop.f32.mrb[109].mxu0  ;;  %v6503_v26 = vadd.f32 %v4707_v53, %v6111_v15  ;;  %v1469_v1 = vpop.f32.mrb[49].mxu1  ;;  %v7067_v6 = vld [vmem:[#allocation48_spill] sm:$0xff] }
 0x244   :  { %v6506_v54 = vadd.f32 %v6120_v8, %v1856_v25  ;;  %v6509_v9 = vadd.f32 %v7063_v48, %v1469_v1  ;;  %v7068_v56 = vpack.c.bf16 %v6156_v42, %v7067_v6  ;;  %v7069_v1 = vld [vmem:[#allocation45_spill] sm:$0xff] }
 0x245   :  { %4956 = vmatpush3.bf16.xpose.msk.msra.mxu1 %vm6170_vm2, %v7066_v32  ;;  %v7071_v32 = vld [vmem:[#allocation47_spill] sm:$0xff]  ;;  %v6532_v6 = vld [vmem:[%s5392_s8 + $0x8] sm:$0xff] }
 0x246   :  { %4958 = vmatprep.subr.bf16.mxu1 %v7068_v56  ;;  %v4810_v53 = vpop.f32.mrb[110].mxu0  ;;  %v4710_v25 = vpop.f32.mrb[50].mxu1 }
 0x247   :  { %v2569_v48 = vadd.f32 %v4810_v53, %v7069_v1  ;;  %v1866_v39 = vpop.f32.mrb[111].mxu0  ;;  %v6525_v62 = vadd.f32 %v4710_v25, %v7070_v7  ;;  %v1479_v40 = vpop.f32.mrb[51].mxu1  ;;  %v7073_v53 = vld [vmem:[#allocation50_spill] sm:$0xff]  ;;  %v7074_v7 = vld [vmem:[#allocation49_spill] sm:$0xff] }
 0x248   :  { %v2568_v13 = vadd.f32 %v7071_v32, %v1866_v39  ;;  %v6529_v42 = vadd.f32 %v7072_v36, %v1479_v40  ;;  %v7075_v39 = vld [vmem:[#allocation24_spill] sm:$0xff]  ;;  %v7077_v32 = vld [vmem:[#allocation51_spill] sm:$0xff] }
 0x249   :  { %v7076_v36 = vld [vmem:[#allocation52_spill] sm:$0xff] }
 0x24a   :  { %v5037_v56 = vpack.c.bf16 %v2569_v48, %v2568_v13  ;;  %v4813_v15 = vpop.f32.mrb[112].mxu0  ;;  %v4713_v46 = vpop.f32.mrb[52].mxu1  ;;  %v7078_v48 = vld [vmem:[#allocation25_spill] sm:$0xff] }
 0x24b   :  { %v2571_v1 = vadd.f32 %v4813_v15, %v7073_v53  ;;  %v1876_v58 = vpop.f32.mrb[113].mxu0  ;;  %v6538_v25 = vadd.f32 %v4713_v46, %v7074_v7  ;;  %v1489_v20 = vpop.f32.mrb[53].mxu1  ;;  %v7080_v8 = vpack.c.bf16 %v7078_v48, %v7079_v29  ;;  %v7081_v15 = vld [vmem:[#allocation53_spill] sm:$0xff]  ;;  %v7082_v46 = vld [vmem:[#allocation54_spill] sm:$0xff] }
 0x24c   :  { %4379 = vmatmul.mubr.msk.f32.vlgmr.msra.gmra.mrb[66].mxu1 %vm980_vm1, %v7075_v39  ;;  %v2570_v40 = vadd.f32 %v7076_v36, %v1876_v58  ;;  %5038 = vmatprep.subr.bf16.mxu0 %v5037_v56  ;;  %v6544_v13 = vadd.f32 %v7077_v32, %v1489_v20  ;;  %v7083_v53 = vpack.c.bf16 %v7081_v15, %v7082_v46  ;;  %v6555_v7 = vld [vmem:[%s5392_s8 + $0x10] sm:$0xff]  ;;  %v7086_v32 = vld [vmem:[#allocation55_spill] sm:$0xff]  ;;  %v7090_v46 = vld [vmem:[#allocation28_spill] sm:$0xff] }
 0x24d   :  { %4960 = vmatpush3.bf16.msra.mxu1 %v7080_v8  ;;  %4380 = vmatprep.mubr.msk.f32.mxu1 %vm980_vm1, %v6532_v6  ;;  %7084 = vst [vmem:[#allocation39_spill] sm:$0xff] %v6555_v7  ;;  %v7085_v8 = vld [vmem:[#allocation56_spill] sm:$0xff] }
 0x24e   :  { %4962 = vmatprep.subr.bf16.mxu1 %v7083_v53  ;;  %v5041_v39 = vpack.c.bf16 %v2571_v1, %v2570_v40  ;;  %5040 = vmatpush3.bf16.msra.mxu0 %v5039_v27  ;;  %v4816_v20 = vpop.f32.mrb[114].mxu0  ;;  %v4716_v58 = vpop.f32.mrb[54].mxu1  ;;  %v7087_v1 = vld [vmem:[#allocation58_spill] sm:$0xff]  ;;  %v7091_v53 = vpack.c.bf16 %v7089_v22, %v7090_v46 }
 0x24f   :  { %v2573_v56 = vadd.f32 %v4816_v20, %v7085_v8  ;;  %v1886_v36 = vpop.f32.mrb[115].mxu0  ;;  %v6564_v48 = vadd.f32 %v4716_v58, %v7086_v32  ;;  %v1499_v15 = vpop.f32.mrb[55].mxu1  ;;  %v7092_v20 = vld [vmem:[#allocation60_spill] sm:$0xff]  ;;  %v6581_v8 = vld [vmem:[%s5392_s8 + $0x18] sm:$0xff] }
 0x250   :  { %4381 = vmatmul.mubr.msk.f32.gmra.mrb[68].mxu1 %vm980_vm1, %v6532_v6  ;;  %v2572_v40 = vadd.f32 %v7087_v1, %v1886_v36  ;;  %5042 = vmatprep.subr.bf16.mxu0 %v5041_v39  ;;  %v6570_v27 = vadd.f32 %v7088_v21, %v1499_v15  ;;  %v7093_v58 = vpack.c.bf16 %v6213_v23, %v7092_v20  ;;  %v7095_v21 = vld [vmem:[#allocation61_spill] sm:$0xff] }
 0x251   :  { %4964 = vmatpush3.bf16.msra.mxu1 %v7091_v53  ;;  %4382 = vmatprep.mubr.msk.f32.mxu1 %vm980_vm1, %v6555_v7  ;;  %v7094_v39 = vpack.c.bf16 %v6380_v50, %v6386_v28  ;;  %v7096_v53 = vld [vmem:[#allocation59_spill] sm:$0xff]  ;;  %v7098_v50 = vld [vmem:[#allocation62_spill] sm:$0xff]  ;;  %v7099_v20 = vld [vmem:[#allocation29_spill] sm:$0xff]  ;;  %v7105_v15 = vpack.c.bf16 %v6403_v31, %v6409_v17 }
 0x252   :  { %4966 = vmatprep.subr.bf16.mxu1 %v7093_v58  ;;  %v5045_v32 = vpack.c.bf16 %v2573_v56, %v2572_v40  ;;  %v4819_v36 = vpop.f32.mrb[116].mxu0  ;;  %v4719_v1 = vpop.f32.mrb[56].mxu1  ;;  %v7097_v56 = vld [vmem:[#allocation63_spill] sm:$0xff]  ;;  %v7100_v58 = vld [vmem:[#allocation30_spill] sm:$0xff]  ;;  %v7109_v31 = vld [vmem:[#allocation68_spill] sm:$0xff] }
 0x253   :  { %5044 = vmatpush3.bf16.msra.mxu0 %v7094_v39  ;;  %v2575_v22 = vadd.f32 %v4819_v36, %v7095_v21  ;;  %v1896_v46 = vpop.f32.mrb[117].mxu0  ;;  %v6590_v29 = vadd.f32 %v4719_v1, %v7096_v53  ;;  %v1509_v23 = vpop.f32.mrb[57].mxu1  ;;  %v7101_v39 = vpack.c.bf16 %v7099_v20, %v7100_v58  ;;  %v7102_v36 = vld [vmem:[#allocation64_spill] sm:$0xff]  ;;  %v7103_v1 = vld [vmem:[#allocation66_spill] sm:$0xff]  ;;  %v7107_v58 = vld [vmem:[#allocation65_spill] sm:$0xff] }
 0x254   :  { %4383 = vmatmul.mubr.msk.f32.gmra.mrb[70].mxu1 %vm980_vm1, %v6555_v7  ;;  %v2574_v40 = vadd.f32 %v7097_v56, %v1896_v46  ;;  %5046 = vmatprep.subr.bf16.mxu0 %v5045_v32  ;;  %v6596_v28 = vadd.f32 %v7098_v50, %v1509_v23  ;;  %v7104_v21 = vpack.c.bf16 %v7102_v36, %v7103_v1  ;;  %v7106_v56 = vld [vmem:[#allocation67_spill] sm:$0xff]  ;;  %v7111_v36 = vld [vmem:[#allocation32_spill] sm:$0xff] }
 0x255   :  { %4968 = vmatpush3.bf16.msra.mxu1 %v7101_v39  ;;  %4384 = vmatprep.mubr.msk.f32.mxu1 %vm980_vm1, %v6581_v8 }
 0x256   :  { %4970 = vmatprep.subr.bf16.mxu1 %v7104_v21  ;;  %v5049_v53 = vpack.c.bf16 %v2575_v22, %v2574_v40  ;;  %v4822_v32 = vpop.f32.mrb[118].mxu0  ;;  %v5007_v46 = vpack.c.bf16 %v6590_v29, %v6596_v28  ;;  %v4722_v23 = vpop.f32.mrb[58].mxu1  ;;  %v7108_v22 = vld [vmem:[#allocation69_spill] sm:$0xff]  ;;  %v7113_v21 = vpack.c.bf16 %v6266_v57, %v6273_v5  ;;  %v7118_v5 = vld [vmem:[#allocation72_spill] sm:$0xff] }
 0x257   :  { %5048 = vmatpush3.bf16.msra.mxu0 %v7105_v15  ;;  %v2577_v50 = vadd.f32 %v4822_v32, %v7106_v56  ;;  %v1906_v20 = vpop.f32.mrb[119].mxu0  ;;  %v6613_v39 = vadd.f32 %v4722_v23, %v7107_v58  ;;  %v1519_v7 = vpop.f32.mrb[59].mxu1  ;;  %v7110_v15 = vld [vmem:[#allocation31_spill] sm:$0xff]  ;;  %v7114_v23 = vpack.c.bf16 %v6419_v30, %v6425_v18  ;;  %v7119_v30 = vld [vmem:[#allocation33_spill] sm:$0xff]  ;;  %v7120_v18 = vld [vmem:[#allocation34_spill] sm:$0xff] }
 0x258   :  { %4385 = vmatmul.mubr.msk.f32.gmra.mrb[72].mxu1 %vm980_vm1, %v6581_v8  ;;  %v2576_v40 = vadd.f32 %v7108_v22, %v1906_v20  ;;  %5050 = vmatprep.subr.bf16.mxu0 %v5049_v53  ;;  %v6619_v17 = vadd.f32 %v7109_v31, %v1519_v7  ;;  %v7112_v1 = vpack.c.bf16 %v7110_v15, %v7111_v36  ;;  %v7115_v7 = vld [vmem:[#allocation71_spill] sm:$0xff]  ;;  %v7116_v31 = vld [vmem:[#allocation70_spill] sm:$0xff] }
 0x25a   :  { %4972 = vmatpush3.bf16.msra.mxu1 %v7112_v1  ;;  %v5053_v32 = vpack.c.bf16 %v2577_v50, %v2576_v40  ;;  %v4825_v56 = vpop.f32.mrb[120].mxu0  ;;  %v4725_v20 = vpop.f32.mrb[60].mxu1  ;;  %v7117_v1 = vld [vmem:[#allocation73_spill] sm:$0xff]  ;;  %v7121_v40 = vpack.c.bf16 %v7119_v30, %v7120_v18 }
 0x25b   :  { %4974 = vmatprep.subr.bf16.mxu1 %v7113_v21  ;;  %5052 = vmatpush3.bf16.msra.mxu0 %v7114_v23  ;;  %v2579_v58 = vadd.f32 %v4825_v56, %v7115_v7  ;;  %v1916_v22 = vpop.f32.mrb[121].mxu0  ;;  %v6634_v15 = vadd.f32 %v4725_v20, %v7116_v31  ;;  %v1529_v36 = vpop.f32.mrb[61].mxu1  ;;  %v7122_v21 = vld [vmem:[#allocation74_spill] sm:$0xff]  ;;  %v7123_v23 = vld [vmem:[#allocation76_spill] sm:$0xff]  ;;  %v7125_v7 = vpack.c.bf16 %v6442_v61, %v6448_v43  ;;  %v7126_v31 = vld [vmem:[#allocation75_spill] sm:$0xff] }
 0x25c   :  { %v2578_v57 = vadd.f32 %v7117_v1, %v1916_v22  ;;  %5054 = vmatprep.subr.bf16.mxu0 %v5053_v32  ;;  %v6638_v50 = vadd.f32 %v7118_v5, %v1529_v36  ;;  %v7124_v53 = vpack.c.bf16 %v7122_v21, %v7123_v23  ;;  %v7127_v1 = vld [vmem:[#allocation77_spill] sm:$0xff]  ;;  %v7131_v23 = vld [vmem:[#allocation36_spill] sm:$0xff]  ;;  %v7133_v61 = vpack.c.bf16 %v6319_v37, %v6326_v14 }
 0x25e   :  { %4976 = vmatpush3.bf16.msra.mxu1 %v7121_v40  ;;  %v5057_v56 = vpack.c.bf16 %v2579_v58, %v2578_v57  ;;  %v4728_v32 = vpop.f32.mrb[62].mxu1  ;;  %v4828_v22 = vpop.f32.mrb[122].mxu0  ;;  %v7128_v40 = vld [vmem:[#allocation78_spill] sm:$0xff]  ;;  %v7130_v57 = vld [vmem:[#allocation35_spill] sm:$0xff] }
 0x25f   :  { %4978 = vmatprep.subr.bf16.mxu1 %v7124_v53  ;;  %5056 = vmatpush3.bf16.msra.mxu0 %v7125_v7  ;;  %v6652_v36 = vadd.f32 %v4728_v32, %v7126_v31  ;;  %v2581_v5 = vadd.f32 %v4828_v22, %v7127_v1  ;;  %v1539_v30 = vpop.f32.mrb[63].mxu1  ;;  %v1926_v18 = vpop.f32.mrb[123].mxu0  ;;  %v7129_v53 = vld [vmem:[#allocation79_spill] sm:$0xff]  ;;  %v7132_v20 = vpack.c.bf16 %v7130_v57, %v7131_v23 }
 0x260   :  { %v6656_v21 = vadd.f32 %v7128_v40, %v1539_v30  ;;  %v2580_v58 = vadd.f32 %v7129_v53, %v1926_v18  ;;  %5058 = vmatprep.subr.bf16.mxu0 %v5057_v56  ;;  %v7134_v31 = vpack.c.bf16 %v6458_v60, %v6464_v44  ;;  %v7136_v18 = vld [vmem:[#allocation38_spill] sm:$0xff]  ;;  %v7138_v60 = vld [vmem:[#allocation80_spill] sm:$0xff]  ;;  %v7140_v53 = vpack.c.bf16 %v6484_v11, %v6490_v4 }
 0x261   :  { %v7139_v44 = vpack.c.bf16 %v6344_v0, %v7138_v60  ;;  %v7144_v57 = vpack.c.bf16 %v6500_v49, %v6506_v54 }
 0x262   :  { %4980 = vmatpush3.bf16.msra.mxu1 %v7132_v20  ;;  %v5061_v7 = vpack.c.bf16 %v2581_v5, %v2580_v58  ;;  %v4731_v32 = vpop.f32.mrb[64].mxu1  ;;  %v4831_v22 = vpop.f32.mrb[124].mxu0  ;;  %v7135_v5 = vld [vmem:[#allocation37_spill] sm:$0xff] }
 0x263   :  { %4982 = vmatprep.subr.bf16.mxu1 %v7133_v61  ;;  %5060 = vmatpush3.bf16.msra.mxu0 %v7134_v31  ;;  %v6671_v56 = vadd.f32 %v4731_v32, %v6323_v35  ;;  %v2583_v1 = vadd.f32 %v4831_v22, %v6329_v10  ;;  %v1549_v20 = vpop.f32.mrb[65].mxu1  ;;  %v1936_v30 = vpop.f32.mrb[125].mxu0  ;;  %v7137_v40 = vpack.c.bf16 %v7135_v5, %v7136_v18 }
 0x264   :  { %v6675_v37 = vadd.f32 %v6332_v24, %v1549_v20  ;;  %v2582_v14 = vadd.f32 %v6335_v33, %v1936_v30  ;;  %5062 = vmatprep.subr.bf16.mxu0 %v5061_v7  ;;  %v7141_v24 = vld [vmem:[#allocation41_spill] sm:$0xff]  ;;  %v7142_v33 = vld [vmem:[#allocation43_spill] sm:$0xff] }
 0x265   :  { %v7143_v58 = vpack.c.bf16 %v7141_v24, %v7142_v33 }
 0x266   :  { %4984 = vmatpush3.bf16.msra.mxu1 %v7137_v40  ;;  %v5065_v10 = vpack.c.bf16 %v2583_v1, %v2582_v14 }
 0x267   :  { %4986 = vmatprep.subr.bf16.mxu1 %v7139_v44  ;;  %5064 = vmatpush3.bf16.msra.mxu0 %v7140_v53 }
 0x268   :  { %5066 = vmatprep.subr.bf16.mxu0 %v5065_v10 }
 0x26a   :  { %4988 = vmatpush3.bf16.msra.mxu1 %v7143_v58 }
 0x26b   :  { %5068 = vmatpush3.bf16.msra.mxu0 %v7144_v57 }
 0x31f   :  { %v2251_v23 = vpop.f32.mrb[66].mxu1 }
 0x320   :  { %v2253_v0 = vpop.f32.mrb[67].mxu1 }
 0x321   :  { %v2274_v61 = vmax.f32 %v2251_v23, %v2253_v0 }
 0x323   :  { %2275 = vmax.xlane.f32.xlu0 %v2274_v61  ;;  %v2257_v7 = vpop.f32.mrb[68].mxu1 }
 0x324   :  { %v2259_v32 = vpop.f32.mrb[69].mxu1 }
 0x325   :  { %v2277_v22 = vmax.f32 %v2257_v7, %v2259_v32 }
 0x327   :  { %2278 = vmax.xlane.f32.xlu0 %v2277_v22  ;;  %v2263_v31 = vpop.f32.mrb[70].mxu1 }
 0x328   :  { %v2265_v11 = vpop.f32.mrb[71].mxu1 }
 0x329   :  { %v2280_v4 = vmax.f32 %v2263_v31, %v2265_v11 }
 0x32b   :  { %2281 = vmax.xlane.f32.xlu1 %v2280_v4  ;;  %v2269_v1 = vpop.f32.mrb[72].mxu1 }
 0x32c   :  { %v2271_v20 = vpop.f32.mrb[73].mxu1 }
 0x32d   :  { %v2283_v30 = vmax.f32 %v2269_v1, %v2271_v20 }
 0x32f   :  { %2284 = vmax.xlane.f32.xlu1 %v2283_v30 }
 0x3b0   :  { %v2276_v14 = vpop.xlane.xlu0 %2275 }
 0x3b1   :  { %v2286_v5 = vsub.f32 %v2251_v23, %v2276_v14  ;;  %v2287_v49 = vsub.f32 %v2253_v0, %v2276_v14 }
 0x3b3   :  { %v2294_v54 = vmul.f32 1.442695, %v2286_v5  ;;  %v2296_v18 = vmul.f32 1.442695, %v2287_v49 }
 0x3b4   :  { %v2279_v40 = vpop.xlane.xlu0 %2278 }
 0x3b5   :  { %5166 = vpow2.f32 %v2294_v54  ;;  %v2288_v60 = vsub.f32 %v2257_v7, %v2279_v40  ;;  %v2289_v44 = vsub.f32 %v2259_v32, %v2279_v40 }
 0x3b6   :  { %5168 = vpow2.f32 %v2296_v18 }
 0x3b7   :  { %v2298_v10 = vmul.f32 1.442695, %v2288_v60  ;;  %v2300_v53 = vmul.f32 1.442695, %v2289_v44 }
 0x3b8   :  { %v2282_v24 = vpop.xlane.xlu1 %2281 }
 0x3b9   :  { %5170 = vpow2.f32 %v2298_v10  ;;  %v2290_v33 = vsub.f32 %v2263_v31, %v2282_v24  ;;  %v2291_v58 = vsub.f32 %v2265_v11, %v2282_v24 }
 0x3ba   :  { %5172 = vpow2.f32 %v2300_v53 }
 0x3bb   :  { %v2302_v57 = vmul.f32 1.442695, %v2290_v33  ;;  %v2304_v61 = vmul.f32 1.442695, %v2291_v58 }
 0x3bc   :  { %v2285_v22 = vpop.xlane.xlu1 %2284 }
 0x3bd   :  { %5174 = vpow2.f32 %v2302_v57  ;;  %v2292_v23 = vsub.f32 %v2269_v1, %v2285_v22  ;;  %v2293_v0 = vsub.f32 %v2271_v20, %v2285_v22 }
 0x3be   :  { %5176 = vpow2.f32 %v2304_v61 }
 0x3bf   :  { %v5167_v4 = vpop.eup %5166  ;;  %v2306_v30 = vmul.f32 1.442695, %v2292_v23  ;;  %v2308_v14 = vmul.f32 1.442695, %v2293_v0 }
 0x3c0   :  { %v5169_v7 = vpop.eup %5168 }
 0x3c1   :  { %5178 = vpow2.f32 %v2306_v30  ;;  %v2310_v32 = vadd.f32 %v5169_v7, %v5167_v4 }
 0x3c2   :  { %5180 = vpow2.f32 %v2308_v14 }
 0x3c3   :  { %v5171_v5 = vpop.eup %5170  ;;  %2311 = vadd.xlane.f32.xlu0 %v2310_v32 }
 0x3c4   :  { %v5173_v49 = vpop.eup %5172 }
 0x3c5   :  { %v2313_v31 = vadd.f32 %v5173_v49, %v5171_v5 }
 0x3c7   :  { %v5175_v11 = vpop.eup %5174  ;;  %2314 = vadd.xlane.f32.xlu1 %v2313_v31 }
 0x3c8   :  { %v5177_v54 = vpop.eup %5176 }
 0x3c9   :  { %v2316_v18 = vadd.f32 %v5177_v54, %v5175_v11 }
 0x3cb   :  { %v5179_v40 = vpop.eup %5178  ;;  %2317 = vadd.xlane.f32.xlu0 %v2316_v18 }
 0x3cc   :  { %v5181_v1 = vpop.eup %5180 }
 0x3cd   :  { %v2319_v20 = vadd.f32 %v5181_v1, %v5179_v40 }
 0x3cf   :  { %2320 = vadd.xlane.f32.xlu1 %v2319_v20 }
 0x450   :  { %v2312_v60 = vpop.xlane.xlu0 %2311 }
 0x454   :  { %v2315_v44 = vpop.xlane.xlu1 %2314 }
 0x455   :  { %5182 = vrcp.f32 %v2315_v44 }
 0x456   :  { %5184 = vrcp.f32 %v2312_v60 }
 0x458   :  { %v2318_v10 = vpop.xlane.xlu0 %2317 }
 0x459   :  { %5186 = vrcp.f32 %v2318_v10 }
 0x45c   :  { %v2321_v53 = vpop.xlane.xlu1 %2320 }
 0x45d   :  { %5188 = vrcp.f32 %v2321_v53 }
 0x45f   :  { %v5183_v24 = vpop.eup %5182 }
 0x460   :  { %v5185_v33 = vpop.eup %5184  ;;  %v2328_v58 = vmul.f32 %v5183_v24, %v5171_v5  ;;  %v2329_v57 = vmul.f32 %v5183_v24, %v5173_v49 }
 0x461   :  { %v2326_v22 = vmul.f32 %v5185_v33, %v5167_v4  ;;  %v2327_v23 = vmul.f32 %v5185_v33, %v5169_v7  ;;  %v7145_v33 = vpack.c.bf16 %v6525_v62, %v6529_v42  ;;  %v7148_v62 = vpack.c.bf16 %v6383_v51, %v6389_v19 }
 0x462   :  { %v7151_v51 = vpack.c.bf16 %v6422_v47, %v6428_v45  ;;  %v7152_v19 = vpack.c.bf16 %v6613_v39, %v6619_v17  ;;  %v7155_v47 = vpack.c.bf16 %v6461_v59, %v6467_v12  ;;  %v7156_v45 = vpack.c.bf16 %v6652_v36, %v6656_v21 }
 0x463   :  { %v5187_v61 = vpop.eup %5186  ;;  %v2334_v14 = vadd.f32 %v2328_v58, %v2326_v22  ;;  %v2335_v32 = vadd.f32 %v2329_v57, %v2327_v23  ;;  %v7146_v57 = vpack.c.bf16 %v6367_v3, %v6373_v38  ;;  %v7149_v3 = vpack.c.bf16 %v6564_v48, %v6570_v27 }
 0x464   :  { %v2330_v0 = vmul.f32 %v5187_v61, %v5175_v11  ;;  %v2331_v30 = vmul.f32 %v5187_v61, %v5177_v54  ;;  %v7147_v61 = vpack.c.bf16 %v6538_v25, %v6544_v13  ;;  %v7150_v38 = vpack.c.bf16 %v6406_v16, %v6412_v52 }
 0x465   :  { %v7153_v16 = vpack.c.bf16 %v6445_v2, %v6451_v41  ;;  %v7154_v52 = vpack.c.bf16 %v6634_v15, %v6638_v50  ;;  %v7157_v25 = vpack.c.bf16 %v6487_v63, %v6493_v55  ;;  %v7158_v59 = vpack.c.bf16 %v6671_v56, %v6675_v37  ;;  %v7160_v63 = vld [vmem:[#allocation39_spill] sm:$0xff] }
 0x466   :  { %v2336_v18 = vadd.f32 %v2334_v14, %v2330_v0  ;;  %v2337_v60 = vadd.f32 %v2335_v32, %v2331_v30  ;;  %v7159_v12 = vpack.c.bf16 %v6503_v26, %v6509_v9 }
 0x467   :  { %v5189_v31 = vpop.eup %5188 }
 0x468   :  { %v2332_v20 = vmul.f32 %v5189_v31, %v5179_v40  ;;  %v2333_v44 = vmul.f32 %v5189_v31, %v5181_v1 }
 0x46a   :  { %v2339_v35 = vadd.f32 %v2337_v60, %v2333_v44  ;;  %v2338_v10 = vadd.f32 %v2336_v18, %v2332_v20 }
 0x46c   :  { %v2341_v43 = vmul.f32 0.25, %v2339_v35  ;;  %v2340_v53 = vmul.f32 0.25, %v2338_v10 }
 0x46e   :  { %2406 = vmatprep.mubr.f32.mxu1 %v2341_v43  ;;  %2413 = vst [vmem:[#allocation3 + $0x8] sm:$0xff] %v2341_v43  ;;  %2412 = vst [vmem:[#allocation3] sm:$0xff] %v2340_v53  ;;  %v2414_v5 = vmul.f32 %v2340_v53, %v2340_v53  ;;  %v2415_v49 = vmul.f32 %v2341_v43, %v2341_v43 }
 0x46f   :  { %2407 = vmatmul.mubr.f32.vlgmr.msra.gmra.mrb[74].mxu1 %v2340_v53 }
 0x470   :  { %v2416_v4 = vadd.f32 %v2415_v49, %v2414_v5 }
 0x472   :  { %2417 = vadd.xlane.f32.xlu0 %v2416_v4 }
 0x4ff   :  { %v2418_v7 = vpop.xlane.xlu0 %2417 }
 0x500   :  { %v2419_v11 = vmax.f32 %v2418_v7, 1e-24 }
 0x502   :  { %5190 = vrsqrt.f32 %v2419_v11 }
 0x50c   :  { %v5191_v54 = vpop.eup %5190 }
 0x50d   :  { %v2422_v40 = vmul.f32 %v5191_v54, %v2341_v43  ;;  %v2421_v1 = vmul.f32 %v5191_v54, %v2340_v53  ;;  %v5234_v43 = vld [vmem:[%s5392_s8] sm:$0xff]  ;;  %s7170_s8 = sld [smem:[#allocation17_spill]] }
 0x50f   :  { %2423 = vmatprep.subr.mxu1 %v2422_v40  ;;  %2487 = vmatprep.mubr.f32.mxu1 %v2422_v40  ;;  %v2504_v24 = vmul.f32 %v2421_v1, %v2421_v1  ;;  %v2505_v35 = vmul.f32 %v2422_v40, %v2422_v40 }
 0x510   :  { %2424 = vmatpush1.xpose.msra.mxu1 %v2421_v1 }
 0x511   :  { %4991 = vmatprep.subr.msk.bf16.mxu1 %vm6170_vm2, %v7145_v33  ;;  %v6700_v58 = vadd.f32 %v2505_v35, %v2504_v24 }
 0x513   :  { %2488 = vmatmul.mubr.f32.vlgmr.msra.gmra.mrb[76].mxu1 %v2421_v1 }
 0x514   :  { %4994 = vmatpush3.bf16.xpose.msk.msra.mxu1 %vm6170_vm2, %v7146_v57  ;;  %4453 = vmatprep.mubr.msk.f32.mxu1 %vm980_vm1, %v5234_v43 }
 0x515   :  { %4997 = vmatprep.subr.msk.bf16.mxu1 %vm6170_vm2, %v7147_v61  ;;  %v3019_v61 = vld [vmem:[%s5397_s14] sm:$0xff] }
 0x51c   :  { %5000 = vmatpush3.bf16.xpose.msk.msra.mxu1 %vm6170_vm2, %v7148_v62  ;;  %v3020_v62 = vld [vmem:[%s5397_s14 + $0x8] sm:$0xff] }
 0x51d   :  { %5003 = vmatprep.subr.msk.bf16.mxu1 %vm6170_vm2, %v7149_v3  ;;  %v5069_v3 = vpack.c.bf16 %v3020_v62, %v3019_v61 }
 0x524   :  { %5006 = vmatpush3.bf16.xpose.msk.msra.mxu1 %vm6170_vm2, %v7150_v38 }
 0x525   :  { %5009 = vmatprep.subr.msk.bf16.mxu1 %vm6170_vm2, %v5007_v46 }
 0x52c   :  { %5012 = vmatpush3.bf16.xpose.msk.msra.mxu1 %vm6170_vm2, %v7151_v51 }
 0x52d   :  { %5015 = vmatprep.subr.msk.bf16.mxu1 %vm6170_vm2, %v7152_v19 }
 0x534   :  { %5018 = vmatpush3.bf16.xpose.msk.msra.mxu1 %vm6170_vm2, %v7153_v16 }
 0x535   :  { %5021 = vmatprep.subr.msk.bf16.mxu1 %vm6170_vm2, %v7154_v52 }
 0x53c   :  { %5024 = vmatpush3.bf16.xpose.msk.msra.mxu1 %vm6170_vm2, %v7155_v47 }
 0x53d   :  { %5027 = vmatprep.subr.msk.bf16.mxu1 %vm6170_vm2, %v7156_v45 }
 0x542   :  { %v4418_v2 = vpop.f32.mrb[74].mxu1 }
 0x543   :  { %v4419_v41 = vpop.f32.mrb[75].mxu1 }
 0x544   :  { %v6764_v42 = vadd.f32 %v4419_v41, %v4418_v2  ;;  %5030 = vmatpush3.bf16.xpose.msk.msra.mxu1 %vm6170_vm2, %v7157_v25 }
 0x545   :  { %5033 = vmatprep.subr.msk.bf16.mxu1 %vm6170_vm2, %v7158_v59 }
 0x546   :  { %3017 = vst.msk [vmem:[#allocation5] sm:$0xff] %vm3016_vm3, %v6764_v42 }
 0x54c   :  { %5036 = vmatpush3.bf16.xpose.msk.msra.mxu1 %vm6170_vm2, %v7159_v12 }
 0x54d   :  { %5070 = vmatprep.subr.bf16.mxu1 %v5069_v3 }
 0x553   :  { %4454 = vmatmul.mubr.msk.f32.vlgmr.msra.gmra.mrb[78].mxu1 %vm980_vm1, %v5234_v43 }
 0x554   :  { %4455 = vmatprep.mubr.msk.f32.mxu1 %vm980_vm1, %v6532_v6  ;;  %5072 = vmatpush3.bf16.msra.mxu1 %v5069_v3 }
 0x557   :  { %4456 = vmatmul.mubr.msk.f32.gmra.mrb[80].mxu1 %vm980_vm1, %v6532_v6 }
 0x558   :  { %4457 = vmatprep.mubr.msk.f32.mxu1 %vm980_vm1, %v7160_v63 }
 0x55b   :  { %4458 = vmatmul.mubr.msk.f32.gmra.mrb[82].mxu1 %vm980_vm1, %v7160_v63 }
 0x55c   :  { %4459 = vmatprep.mubr.msk.f32.mxu1 %vm980_vm1, %v6581_v8 }
 0x55f   :  { %4460 = vmatmul.mubr.msk.f32.gmra.mrb[84].mxu1 %vm980_vm1, %v6581_v8 }
 0x560   :  { %4840 = vmatprep.mubr.msk.f32.mxu1 %vm3016_vm3, %v6764_v42 }
 0x5e6   :  { %v6798_v34 = vpop.f32.mrb[76].mxu1 }
 0x5e7   :  { %v2491_v55 = vpop.f32.mrb[77].mxu1 }
 0x626   :  { %v2746_v26 = vpop.f32.mrb[78].mxu1 }
 0x627   :  { %v2748_v9 = vpop.f32.mrb[79].mxu1 }
 0x628   :  { %v2769_v6 = vmax.f32 %v2746_v26, %v2748_v9 }
 0x62a   :  { %2770 = vmax.xlane.f32.xlu1 %v2769_v6  ;;  %v2752_v13 = vpop.f32.mrb[80].mxu1 }
 0x62b   :  { %v2754_v29 = vpop.f32.mrb[81].mxu1 }
 0x62c   :  { %v2772_v48 = vmax.f32 %v2752_v13, %v2754_v29 }
 0x62e   :  { %2773 = vmax.xlane.f32.xlu0 %v2772_v48  ;;  %v2758_v27 = vpop.f32.mrb[82].mxu1 }
 0x62f   :  { %v2760_v28 = vpop.f32.mrb[83].mxu1 }
 0x630   :  { %v2775_v46 = vmax.f32 %v2758_v27, %v2760_v28 }
 0x632   :  { %2776 = vmax.xlane.f32.xlu1 %v2775_v46  ;;  %v2764_v39 = vpop.f32.mrb[84].mxu1 }
 0x633   :  { %v2766_v8 = vpop.f32.mrb[85].mxu1 }
 0x634   :  { %v2778_v17 = vmax.f32 %v2764_v39, %v2766_v8 }
 0x636   :  { %2779 = vmax.xlane.f32.xlu0 %v2778_v17  ;;  %v3022_v17 = vld [vmem:[%s5397_s14 + $0x18] sm:$0xff] }
 0x6b7   :  { %v2771_v15 = vpop.xlane.xlu1 %2770 }
 0x6b8   :  { %v2781_v50 = vsub.f32 %v2746_v26, %v2771_v15  ;;  %v2782_v36 = vsub.f32 %v2748_v9, %v2771_v15 }
 0x6ba   :  { %v2789_v21 = vmul.f32 1.442695, %v2781_v50  ;;  %v2791_v56 = vmul.f32 1.442695, %v2782_v36 }
 0x6bb   :  { %v2774_v37 = vpop.xlane.xlu0 %2773 }
 0x6bc   :  { %5192 = vpow2.f32 %v2789_v21  ;;  %v2783_v22 = vsub.f32 %v2752_v13, %v2774_v37  ;;  %v2784_v23 = vsub.f32 %v2754_v29, %v2774_v37 }
 0x6bd   :  { %5194 = vpow2.f32 %v2791_v56  ;;  %v4122_v56 = vld [vmem:[%s5402_s19] ss:$0 sm:$0xff] }
 0x6be   :  { %v2793_v0 = vmul.f32 1.442695, %v2783_v22  ;;  %v2795_v30 = vmul.f32 1.442695, %v2784_v23 }
 0x6bf   :  { %v2777_v14 = vpop.xlane.xlu1 %2776 }
 0x6c0   :  { %5196 = vpow2.f32 %v2793_v0  ;;  %v2785_v32 = vsub.f32 %v2758_v27, %v2777_v14  ;;  %v2786_v31 = vsub.f32 %v2760_v28, %v2777_v14 }
 0x6c1   :  { %5198 = vpow2.f32 %v2795_v30 }
 0x6c2   :  { %v2797_v18 = vmul.f32 1.442695, %v2785_v32  ;;  %v2799_v20 = vmul.f32 1.442695, %v2786_v31 }
 0x6c3   :  { %v2780_v44 = vpop.xlane.xlu0 %2779 }
 0x6c4   :  { %5200 = vpow2.f32 %v2797_v18  ;;  %v2787_v60 = vsub.f32 %v2764_v39, %v2780_v44  ;;  %v2788_v10 = vsub.f32 %v2766_v8, %v2780_v44  ;;  %v3021_v8 = vld [vmem:[%s5397_s14 + $0x10] sm:$0xff]  ;;  %s7171_s14 = sld [smem:[#allocation20_spill]] }
 0x6c5   :  { %5202 = vpow2.f32 %v2799_v20  ;;  %v5073_v15 = vpack.c.bf16 %v3022_v17, %v3021_v8  ;;  %v3342_v8 = vld [vmem:[%s7163_s9] sm:$0xff]  ;;  %v3343_v17 = vld [vmem:[%s7163_s9 + $0x8] sm:$0xff] }
 0x6c6   :  { %v5193_v53 = vpop.eup %5192  ;;  %v2801_v5 = vmul.f32 1.442695, %v2787_v60  ;;  %v2803_v49 = vmul.f32 1.442695, %v2788_v10 }
 0x6c7   :  { %v5195_v4 = vpop.eup %5194  ;;  %5074 = vmatprep.subr.bf16.mxu1 %v5073_v15 }
 0x6c8   :  { %5204 = vpow2.f32 %v2801_v5  ;;  %v2805_v7 = vadd.f32 %v5195_v4, %v5193_v53  ;;  %5076 = vmatpush3.bf16.msra.mxu1 %v5073_v15  ;;  %v5089_v15 = vpack.c.bf16 %v3343_v17, %v3342_v8 }
 0x6c9   :  { %5206 = vpow2.f32 %v2803_v49 }
 0x6ca   :  { %v5197_v11 = vpop.eup %5196  ;;  %2806 = vadd.xlane.f32.xlu1 %v2805_v7 }
 0x6cb   :  { %v5199_v54 = vpop.eup %5198 }
 0x6cc   :  { %v2808_v40 = vadd.f32 %v5199_v54, %v5197_v11 }
 0x6ce   :  { %v5201_v1 = vpop.eup %5200  ;;  %2809 = vadd.xlane.f32.xlu0 %v2808_v40  ;;  %v3159_v40 = vld [vmem:[%s5417_s6 + $0x8] sm:$0xff] }
 0x6cf   :  { %v5203_v24 = vpop.eup %5202 }
 0x6d0   :  { %v2811_v35 = vadd.f32 %v5203_v24, %v5201_v1 }
 0x6d2   :  { %v5205_v33 = vpop.eup %5204  ;;  %2812 = vadd.xlane.f32.xlu1 %v2811_v35  ;;  %v3161_v35 = vld [vmem:[%s5417_s6 + $0x18] sm:$0xff] }
 0x6d3   :  { %v5207_v57 = vpop.eup %5206 }
 0x6d4   :  { %v2814_v43 = vadd.f32 %v5207_v57, %v5205_v33 }
 0x6d6   :  { %2815 = vadd.xlane.f32.xlu0 %v2814_v43 }
 0x757   :  { %v2807_v38 = vpop.xlane.xlu1 %2806 }
 0x75b   :  { %v2810_v51 = vpop.xlane.xlu0 %2809 }
 0x75c   :  { %5208 = vrcp.f32 %v2810_v51 }
 0x75d   :  { %5210 = vrcp.f32 %v2807_v38 }
 0x75f   :  { %v2813_v19 = vpop.xlane.xlu1 %2812 }
 0x760   :  { %5212 = vrcp.f32 %v2813_v19 }
 0x763   :  { %v2816_v16 = vpop.xlane.xlu0 %2815 }
 0x764   :  { %5214 = vrcp.f32 %v2816_v16 }
 0x766   :  { %v5209_v52 = vpop.eup %5208 }
 0x767   :  { %v5211_v47 = vpop.eup %5210  ;;  %v2823_v45 = vmul.f32 %v5209_v52, %v5197_v11  ;;  %v2824_v2 = vmul.f32 %v5209_v52, %v5199_v54  ;;  %v3158_v54 = vld [vmem:[%s5417_s6] sm:$0xff] }
 0x768   :  { %v2821_v25 = vmul.f32 %v5211_v47, %v5193_v53  ;;  %v2822_v59 = vmul.f32 %v5211_v47, %v5195_v4  ;;  %v4125_v52 = vld [vmem:[%s5407_s24] ss:$0 sm:$0xff] }
 0x76a   :  { %v5213_v41 = vpop.eup %5212  ;;  %v2829_v55 = vadd.f32 %v2823_v45, %v2821_v25  ;;  %v2830_v26 = vadd.f32 %v2824_v2, %v2822_v59 }
 0x76b   :  { %v2825_v12 = vmul.f32 %v5213_v41, %v5201_v1  ;;  %v2826_v63 = vmul.f32 %v5213_v41, %v5203_v24  ;;  %v5077_v1 = vpack.c.bf16 %v3159_v40, %v3158_v54  ;;  %v3160_v24 = vld [vmem:[%s5417_s6 + $0x10] sm:$0xff]  ;;  %v4126_v41 = vld [vmem:[%s7161_s0] ss:$0 sm:$0xff]  ;;  %s7172_s6 = sld [smem:[#allocation19_spill]] }
 0x76d   :  { %v2831_v6 = vadd.f32 %v2829_v55, %v2825_v12  ;;  %v2832_v48 = vadd.f32 %v2830_v26, %v2826_v63  ;;  %5078 = vmatprep.subr.bf16.mxu1 %v5077_v1 }
 0x76e   :  { %v5215_v9 = vpop.eup %5214 }
 0x76f   :  { %v2827_v13 = vmul.f32 %v5215_v9, %v5205_v33  ;;  %v2828_v29 = vmul.f32 %v5215_v9, %v5207_v57  ;;  %v5081_v33 = vpack.c.bf16 %v3161_v35, %v3160_v24 }
 0x771   :  { %v2834_v27 = vadd.f32 %v2832_v48, %v2828_v29  ;;  %v2833_v28 = vadd.f32 %v2831_v6, %v2827_v13 }
 0x773   :  { %v6802_v46 = vmul.f32 0.25, %v2834_v27  ;;  %v6804_v39 = vmul.f32 0.25, %v2833_v28  ;;  %v3252_v28 = vld [vmem:[%s7162_s5] sm:$0xff] }
 0x775   :  { %2901 = vmatprep.mubr.f32.mxu0 %v6802_v46  ;;  %2909 = vst [vmem:[#allocation3 + $0x18] sm:$0xff] %v6802_v46  ;;  %2908 = vst [vmem:[#allocation3 + $0x10] sm:$0xff] %v6804_v39  ;;  %v2910_v49 = vmul.f32 %v6804_v39, %v6804_v39  ;;  %v2911_v4 = vmul.f32 %v6802_v46, %v6802_v46 }
 0x776   :  { %2902 = vmatmul.mubr.f32.vlgmr.msra.gmra.mrb[126].mxu0 %v6804_v39 }
 0x777   :  { %v2912_v11 = vadd.f32 %v2911_v4, %v2910_v49 }
 0x849   :  { %v4493_v50 = vpop.f32.mrb[126].mxu0 }
 0x84a   :  { %v4494_v36 = vpop.f32.mrb[127].mxu0 }
 0x84b   :  { %v6812_v21 = vadd.f32 %v4494_v36, %v4493_v50  ;;  %v4127_v50 = vld [vmem:[%s7164_s13] ss:$0 sm:$0xff] }
 0x84d   :  { %3018 = vst.msk [vmem:[#allocation5 + $0x8] sm:$0xff] %vm3016_vm3, %v6812_v21  ;;  %4841 = vmatmul.mubr.msk.f32.vlgmr.msra.gmra.mrb[86].mxu1 %vm3016_vm3, %v6812_v21 }
 0x84e   :  { %5080 = vmatpush3.bf16.msra.mxu1 %v5077_v1 }
 0x84f   :  { %5082 = vmatprep.subr.bf16.mxu1 %v5081_v33 }
 0x852   :  { %5084 = vmatpush3.bf16.msra.mxu1 %v5081_v33 }
 0x920   :  { %v4842_v37 = vpop.f32.mrb[86].mxu1 }
 0x921   :  { %v3108_v22 = vadd.f32 %v4842_v37, %v4122_v56  ;;  %v3102_v23 = vpop.f32.mrb[87].mxu1 }
 0x922   :  { %v3103_v0 = vadd.f32 %v4122_v56, %v3102_v23 }
 0x923   :  { %v3114_v30 = vsel %vm3016_vm3, %v3108_v22, 0.0 }
 0x924   :  { %3115 = vadd.xlane.f32.xlu0 %v3114_v30  ;;  %v3111_v14 = vsel %vm3016_vm3, %v3103_v0, 0.0  ;;  %v3344_v30 = vld [vmem:[%s7163_s9 + $0x10] sm:$0xff] }
 0x925   :  { %3112 = vadd.xlane.f32.xlu1 %v3111_v14  ;;  %v3345_v14 = vld [vmem:[%s7163_s9 + $0x18] sm:$0xff] }
 0x9b1   :  { %v3116_v32 = vpop.xlane.xlu0 %3115 }
 0x9b2   :  { %v3119_v31 = vmul.f32 0.03125, %v3116_v32  ;;  %v3113_v18 = vpop.xlane.xlu1 %3112 }
 0x9b3   :  { %v3118_v20 = vmul.f32 0.03125, %v3113_v18  ;;  %v5093_v18 = vpack.c.bf16 %v3345_v14, %v3344_v30 }
 0x9b4   :  { %v3121_v44 = vsub.f32 %v3108_v22, %v3119_v31 }
 0x9b5   :  { %v3120_v60 = vsub.f32 %v3103_v0, %v3118_v20  ;;  %v4130_v20 = vld [vmem:[%s7165_s17] ss:$0 sm:$0xff] }
 0x9b6   :  { %v3123_v10 = vmul.f32 %v3121_v44, %v3121_v44 }
 0x9b7   :  { %v3122_v53 = vmul.f32 %v3120_v60, %v3120_v60 }
 0x9b8   :  { %v3127_v5 = vsel %vm3016_vm3, %v3123_v10, 0.0 }
 0x9b9   :  { %3128 = vadd.xlane.f32.xlu0 %v3127_v5  ;;  %v3124_v7 = vsel %vm3016_vm3, %v3122_v53, 0.0  ;;  %v4133_v5 = vld [vmem:[%s7166_s21] ss:$0 sm:$0xff] }
 0x9ba   :  { %3125 = vadd.xlane.f32.xlu1 %v3124_v7 }
 0x9be   :  { %2913 = vadd.xlane.f32.xlu1 %v2912_v11 }
 0xa46   :  { %v3129_v57 = vpop.xlane.xlu0 %3128 }
 0xa47   :  { %v3131_v43 = vmul.f32 0.03125, %v3129_v57  ;;  %v3126_v61 = vpop.xlane.xlu1 %3125 }
 0xa48   :  { %v3130_v62 = vmul.f32 0.03125, %v3126_v61 }
 0xa49   :  { %v3133_v3 = vadd.f32 1e-05, %v3131_v43 }
 0xa4a   :  { %v3132_v38 = vadd.f32 1e-05, %v3130_v62 }
 0xa4b   :  { %5216 = vrsqrt.f32 %v3133_v3  ;;  %v2914_v51 = vpop.xlane.xlu1 %2913 }
 0xa4c   :  { %5218 = vrsqrt.f32 %v3132_v38  ;;  %v2915_v19 = vmax.f32 %v2914_v51, 1e-24  ;;  %v2493_v51 = vsel %vm194_vm0, %v6798_v34, 0.0 }
 0xa4e   :  { %5220 = vrsqrt.f32 %v2915_v19 }
 0xa55   :  { %v5217_v16 = vpop.eup %5216 }
 0xa56   :  { %v5219_v47 = vpop.eup %5218  ;;  %v3137_v45 = vmul.f32 %v5217_v16, %v3121_v44  ;;  %v3474_v16 = vld [vmem:[%s7167_s25] sm:$0xff] }
 0xa57   :  { %v3136_v2 = vmul.f32 %v5219_v47, %v3120_v60 }
 0xa58   :  { %v5221_v25 = vpop.eup %5220  ;;  %v3146_v59 = vmul.f32 %v4125_v52, %v3137_v45  ;;  %v3476_v45 = vld [vmem:[%s7167_s25 + $0x10] sm:$0xff] }
 0xa59   :  { %v2918_v12 = vmul.f32 %v5221_v25, %v6802_v46  ;;  %v2917_v63 = vmul.f32 %v5221_v25, %v6804_v39  ;;  %v3145_v55 = vmul.f32 %v4125_v52, %v3136_v2  ;;  %v3253_v46 = vld [vmem:[%s7162_s5 + $0x8] sm:$0xff]  ;;  %v3477_v2 = vld [vmem:[%s7167_s25 + $0x18] sm:$0xff] }
 0xa5a   :  { %v3155_v26 = vadd.f32 %v4126_v41, %v3146_v59  ;;  %v5085_v39 = vpack.c.bf16 %v3253_v46, %v3252_v28  ;;  %v3475_v52 = vld [vmem:[%s7167_s25 + $0x8] sm:$0xff] }
 0xa5b   :  { %2919 = vmatprep.subr.mxu0 %v2918_v12  ;;  %2983 = vmatprep.mubr.f32.mxu0 %v2918_v12  ;;  %v3154_v9 = vadd.f32 %v4126_v41, %v3145_v55  ;;  %v3000_v6 = vmul.f32 %v2917_v63, %v2917_v63  ;;  %v3001_v13 = vmul.f32 %v2918_v12, %v2918_v12  ;;  %v3659_v25 = vld [vmem:[%s7168_s29 + $0x8] sm:$0xff] }
 0xa5c   :  { %2920 = vmatpush1.xpose.msra.mxu0 %v2917_v63  ;;  %v3157_v27 = vmax.f32 %v3155_v26, 0.0  ;;  %v5097_v47 = vpack.c.bf16 %v3475_v52, %v3474_v16  ;;  %v5101_v41 = vpack.c.bf16 %v3477_v2, %v3476_v45  ;;  %v3568_v52 = vld [vmem:[%s7171_s14] sm:$0xff] }
 0xa5d   :  { %v3156_v29 = vmax.f32 %v3154_v9, 0.0  ;;  %v6835_v48 = vadd.f32 %v3001_v13, %v3000_v6  ;;  %5086 = vmatprep.subr.bf16.mxu0 %v5085_v39 }
 0xa5e   :  { %5098 = vmatprep.subr.bf16.mxu1 %v5097_v47 }
 0xa5f   :  { %2984 = vmatmul.mubr.f32.vlgmr.msra.gmra.mrb[128].mxu0 %v2917_v63  ;;  %4851 = vmatprep.mubr.msk.f32.mxu1 %vm3016_vm3, %v3156_v29 }
 0xa60   :  { %4852 = vmatmul.mubr.msk.f32.vlgmr.msra.gmra.mrb[88].mxu1 %vm3016_vm3, %v3157_v27  ;;  %5088 = vmatpush3.bf16.msra.mxu0 %v5085_v39 }
 0xa61   :  { %5090 = vmatprep.subr.bf16.mxu0 %v5089_v15  ;;  %5100 = vmatpush3.bf16.msra.mxu1 %v5097_v47  ;;  %v3569_v47 = vld [vmem:[%s7171_s14 + $0x8] sm:$0xff] }
 0xa62   :  { %5102 = vmatprep.subr.bf16.mxu1 %v5101_v41  ;;  %v5105_v45 = vpack.c.bf16 %v3569_v47, %v3568_v52 }
 0xa65   :  { %5104 = vmatpush3.bf16.msra.mxu1 %v5101_v41 }
 0xb32   :  { %v2985_v36 = vpop.f32.mrb[128].mxu0 }
 0xb33   :  { %v2987_v56 = vpop.f32.mrb[129].mxu0  ;;  %v4853_v37 = vpop.f32.mrb[88].mxu1  ;;  %v2989_v19 = vsel %vm194_vm0, %v2985_v36, 0.0 }
 0xb34   :  { %v3247_v22 = vadd.f32 %v4853_v37, %v4127_v50  ;;  %v3241_v23 = vpop.f32.mrb[89].mxu1 }
 0xb35   :  { %v3242_v0 = vadd.f32 %v4127_v50, %v3241_v23 }
 0xb36   :  { %v3251_v31 = vmax.f32 %v3247_v22, 0.0 }
 0xb37   :  { %v3250_v32 = vmax.f32 %v3242_v0, 0.0 }
 0xb39   :  { %4858 = vmatprep.mubr.msk.f32.mxu0 %vm980_vm1, %v3250_v32 }
 0xb3a   :  { %4859 = vmatmul.mubr.msk.f32.vlgmr.msra.gmra.mrb[130].mxu0 %vm980_vm1, %v3251_v31 }
 0xb3b   :  { %5092 = vmatpush3.bf16.msra.mxu0 %v5089_v15  ;;  %4869 = vmatprep.mubr.msk.f32.mxu0 %vm3016_vm3, %v6764_v42 }
 0xb3c   :  { %5094 = vmatprep.subr.bf16.mxu0 %v5093_v18 }
 0xb3f   :  { %5096 = vmatpush3.bf16.msra.mxu0 %v5093_v18 }
 0xb40   :  { %5106 = vmatprep.subr.bf16.mxu0 %v5105_v45 }
 0xb42   :  { %4870 = vmatmul.mubr.msk.f32.vlgmr.msra.gmra.mrb[132].mxu0 %vm3016_vm3, %v6812_v21 }
 0xb43   :  { %5108 = vmatpush3.bf16.msra.mxu0 %v5105_v45 }
 0xc0d   :  { %v4860_v44 = vpop.f32.mrb[130].mxu0 }
 0xc0e   :  { %v3339_v60 = vadd.f32 %v4860_v44, %v4130_v20  ;;  %v3333_v10 = vpop.f32.mrb[131].mxu0 }
 0xc0f   :  { %v3334_v53 = vadd.f32 %v4130_v20, %v3333_v10  ;;  %v4136_v20 = vld [vmem:[%s7169_s3] ss:$0 sm:$0xff] }
 0xc10   :  { %3746 = vst.msk [vmem:[%s5500_s12 + $0x8] sm:$0xff] %vm3744_vm4, %v3339_v60 }
 0xc11   :  { %3745 = vst.msk [vmem:[%s5500_s12] sm:$0xff] %vm3744_vm4, %v3334_v53 }
 0xc15   :  { %v4871_v49 = vpop.f32.mrb[132].mxu0 }
 0xc16   :  { %v3425_v4 = vadd.f32 %v4871_v49, %v4133_v5  ;;  %v3419_v7 = vpop.f32.mrb[133].mxu0 }
 0xc17   :  { %v3420_v11 = vadd.f32 %v4133_v5, %v3419_v7 }
 0xc18   :  { %v3431_v54 = vsel %vm3016_vm3, %v3425_v4, 0.0 }
 0xc19   :  { %3432 = vadd.xlane.f32.xlu1 %v3431_v54  ;;  %v3428_v40 = vsel %vm3016_vm3, %v3420_v11, 0.0 }
 0xc1a   :  { %3429 = vadd.xlane.f32.xlu0 %v3428_v40 }
 0xca6   :  { %v3433_v1 = vpop.xlane.xlu1 %3432 }
 0xca7   :  { %v3435_v24 = vmul.f32 0.03125, %v3433_v1  ;;  %v3430_v35 = vpop.xlane.xlu0 %3429 }
 0xca8   :  { %v3434_v33 = vmul.f32 0.03125, %v3430_v35 }
 0xca9   :  { %v3437_v57 = vsub.f32 %v3425_v4, %v3435_v24  ;;  %v4137_v4 = vld [vmem:[%s7170_s8] ss:$0 sm:$0xff] }
 0xcaa   :  { %v6858_v43 = vsub.f32 %v3420_v11, %v3434_v33  ;;  %v3660_v33 = vld [vmem:[%s7168_s29 + $0x10] sm:$0xff] }
 0xcab   :  { %v3439_v61 = vmul.f32 %v3437_v57, %v3437_v57 }
 0xcac   :  { %v3438_v62 = vmul.f32 %v6858_v43, %v6858_v43 }
 0xcad   :  { %v3443_v3 = vsel %vm3016_vm3, %v3439_v61, 0.0  ;;  %v3661_v61 = vld [vmem:[%s7168_s29 + $0x18] sm:$0xff] }
 0xcae   :  { %3444 = vadd.xlane.f32.xlu1 %v3443_v3  ;;  %v3440_v38 = vsel %vm3016_vm3, %v3438_v62, 0.0  ;;  %v5113_v3 = vpack.c.bf16 %v3661_v61, %v3660_v33 }
 0xcaf   :  { %3441 = vadd.xlane.f32.xlu0 %v3440_v38 }
 0xcb2   :  { %2507 = vadd.xlane.f32.xlu1 %v6700_v58  ;;  %v3658_v58 = vld [vmem:[%s7168_s29] sm:$0xff] }
 0xcb3   :  { %2494 = vadd.xlane.f32.xlu0 %v2493_v51  ;;  %v5109_v34 = vpack.c.bf16 %v3659_v25, %v3658_v58 }
 0xcb5   :  { %5110 = vmatprep.subr.bf16.mxu1 %v5109_v34 }
 0xcb6   :  { %3003 = vadd.xlane.f32.xlu1 %v6835_v48 }
 0xcb7   :  { %2990 = vadd.xlane.f32.xlu0 %v2989_v19 }
 0xd3b   :  { %v3445_v59 = vpop.xlane.xlu1 %3444 }
 0xd3c   :  { %v3447_v12 = vmul.f32 0.03125, %v3445_v59  ;;  %v3442_v63 = vpop.xlane.xlu0 %3441 }
 0xd3d   :  { %v3446_v55 = vmul.f32 0.03125, %v3442_v63 }
 0xd3e   :  { %v3449_v26 = vadd.f32 1e-05, %v3447_v12  ;;  %v4144_v12 = vld [vmem:[%s7173_s27] ss:$0 sm:$0xff] }
 0xd3f   :  { %v3448_v9 = vadd.f32 1e-05, %v3446_v55  ;;  %v2508_v6 = vpop.xlane.xlu1 %2507 }
 0xd40   :  { %5222 = vrsqrt.f32 %v3449_v26  ;;  %v2509_v13 = vrot.slane %v2508_v6, 4  ;;  %v2495_v29 = vpop.xlane.xlu0 %2494 }
 0xd41   :  { %5224 = vrsqrt.f32 %v3448_v9  ;;  %v2496_v48 = vrot.slane %v2495_v29, 4 }
 0xd42   :  { %v2510_v27 = vadd.f32 %v2509_v13, %v2508_v6 }
 0xd43   :  { %v2497_v28 = vadd.f32 %v2496_v48, %v2495_v29  ;;  %v3004_v46 = vpop.xlane.xlu1 %3003 }
 0xd44   :  { %v2511_v39 = vrot.slane %v2510_v27, 2  ;;  %v3005_v8 = vrot.slane %v3004_v46, 4  ;;  %v2991_v17 = vpop.xlane.xlu0 %2990 }
 0xd45   :  { %v2498_v15 = vrot.slane %v2497_v28, 2  ;;  %v2992_v50 = vrot.slane %v2991_v17, 4 }
 0xd46   :  { %v3006_v36 = vadd.f32 %v3005_v8, %v3004_v46  ;;  %v2512_v56 = vadd.f32 %v2511_v39, %v2510_v27 }
 0xd47   :  { %v2993_v37 = vadd.f32 %v2992_v50, %v2991_v17  ;;  %v2499_v22 = vadd.f32 %v2498_v15, %v2497_v28 }
 0xd48   :  { %v3007_v23 = vrot.slane %v3006_v36, 2  ;;  %v2513_v0 = vrot.slane %v2512_v56, 1 }
 0xd49   :  { %v2994_v30 = vrot.slane %v2993_v37, 2  ;;  %v2500_v14 = vrot.slane %v2499_v22, 1 }
 0xd4a   :  { %v5223_v32 = vpop.eup %5222  ;;  %v3008_v31 = vadd.f32 %v3007_v23, %v3006_v36  ;;  %v2514_v18 = vadd.f32 %v2513_v0, %v2512_v56 }
 0xd4b   :  { %v5225_v44 = vpop.eup %5224  ;;  %v3453_v60 = vmul.f32 %v5223_v32, %v3437_v57  ;;  %v2995_v10 = vadd.f32 %v2994_v30, %v2993_v37  ;;  %v2501_v53 = vadd.f32 %v2500_v14, %v2499_v22 }
 0xd4c   :  { %v3009_v5 = vrot.slane %v3008_v31, 1  ;;  %v3452_v49 = vmul.f32 %v5225_v44, %v6858_v43 }
 0xd4d   :  { %5119 = vpush %v2501_v53  ;;  %v2996_v7 = vrot.slane %v2995_v10, 1  ;;  %v3462_v11 = vmul.f32 %v4136_v20, %v3453_v60 }
 0xd4e   :  { %5121 = vpush %v2514_v18  ;;  %v3010_v54 = vadd.f32 %v3009_v5, %v3008_v31  ;;  %v3461_v40 = vmul.f32 %v4136_v20, %v3452_v49 }
 0xd4f   :  { %v2997_v1 = vadd.f32 %v2996_v7, %v2995_v10  ;;  %v3471_v24 = vadd.f32 %v4137_v4, %v3462_v11 }
 0xd50   :  { %v3470_v35 = vadd.f32 %v4137_v4, %v3461_v40 }
 0xd51   :  { %5123 = vpush %v2997_v1  ;;  %v3473_v62 = vmax.f32 %v3471_v24, 0.0 }
 0xd52   :  { %5125 = vpush %v3010_v54  ;;  %v3472_v57 = vmax.f32 %v3470_v35, 0.0 }
 0xd54   :  { %4880 = vmatprep.mubr.msk.f32.mxu1 %vm3016_vm3, %v3472_v57 }
 0xd55   :  { %4881 = vmatmul.mubr.msk.f32.vlgmr.msra.gmra.mrb[90].mxu1 %vm3016_vm3, %v3473_v62 }
 0xd56   :  { %5112 = vmatpush3.bf16.msra.mxu1 %v5109_v34  ;;  %4898 = vmatprep.mubr.msk.f32.mxu1 %vm3016_vm3, %v6764_v42 }
 0xd57   :  { %5114 = vmatprep.subr.bf16.mxu1 %v5113_v3 }
 0xd5a   :  { %5116 = vmatpush3.bf16.msra.mxu1 %v5113_v3 }
 0xd5d   :  { %4899 = vmatmul.mubr.msk.f32.vlgmr.msra.gmra.mrb[92].mxu1 %vm3016_vm3, %v6812_v21  ;;  %v4138_v21 = vld [vmem:[%s7172_s6] ss:$0 sm:$0xff] }
 0xd7e   :  { %s5120_s19 = spop %5119 }
 0xd7f   :  { %v2503_v43 = vstv %s5120_s19  ;;  %s5122_s24 = spop %5121 }
 0xd80   :  { %v2516_v38 = vstv %s5122_s24 }
 0xd81   :  { %v2517_v51 = vsub.f32 %v2503_v43, %v2516_v38 }
 0xd82   :  { %s5124_s12 = spop %5123 }
 0xd83   :  { %2519 = vst.msk [vmem:[%s5495_s4] sm:$0x1] %vm2518_vm5, %v2517_v51  ;;  %v2999_v19 = vstv %s5124_s12  ;;  %s5126_s20 = spop %5125 }
 0xd84   :  { %v3012_v42 = vstv %s5126_s20 }
 0xd85   :  { %v3013_v16 = vsub.f32 %v2999_v19, %v3012_v42 }
 0xd87   :  { %4121 = vst.msk [vmem:[%s5495_s4 + $0x1] sm:$0x1] %vm2518_vm5, %v3013_v16  ;;  %s5337_s4 = smov [#allocation5]  }
 0xd88   :  { %s3781_s28 = sshll.u32 %s5337_s4, 4  ;;  %s3782_s28 = int_to_ptr.vmem [resolvable:$true] %s3781_s28 }
 0xd89   :  { %s5235_s7 = scalar_lea.vmem %s3782_s28, 256  ;;  %p5240_p1 = scmp.lt.s32.totalorder %s3782_s28, %s3782_s28 }
 0xd8a   :  { %p5236_p0 = scmp.ne.s32.totalorder %s3782_s28, %s5235_s7  ;;  %p5241_p2 = scmp.lt.s32.totalorder %s5235_s7, %s5235_s7 }
 0xd8c   :  { %p5242_p3 = por %p5241_p2, %p5240_p1 }
 0xd8e   :  { %p5243_p4 = pnand %p5242_p3, %p5236_p0 }
 0xe28   :  { %v4882_v2 = vpop.f32.mrb[90].mxu1 }
 0xe29   :  { %v3563_v41 = vadd.f32 %v4882_v2, %v4138_v21  ;;  %v3557_v58 = vpop.f32.mrb[91].mxu1 }
 0xe2a   :  { %v3558_v25 = vadd.f32 %v4138_v21, %v3557_v58 }
 0xe2b   :  { %v3567_v59 = vmax.f32 %v3563_v41, 0.0 }
 0xe2c   :  { %v3566_v34 = vmax.f32 %v3558_v25, 0.0 }
 0xe2e   :  { %4887 = vmatprep.mubr.msk.f32.mxu0 %vm980_vm1, %v3566_v34 }
 0xe2f   :  { %4888 = vmatmul.mubr.msk.f32.vlgmr.msra.gmra.mrb[134].mxu0 %vm980_vm1, %v3567_v59 }
 0xe30   :  { %v4900_v63 = vpop.f32.mrb[92].mxu1 }
 0xe31   :  { %v3741_v55 = vadd.f32 %v4900_v63, %v4144_v12  ;;  %v3735_v26 = vpop.f32.mrb[93].mxu1 }
 0xe32   :  { %v3736_v9 = vadd.f32 %v4144_v12, %v3735_v26 }
 0xe33   :  { %3763 = vst.msk [vmem:[#allocation7 + $0x8] sm:$0xff] %vm194_vm0, %v3741_v55 }
 0xe34   :  { %3762 = vst.msk [vmem:[#allocation7] sm:$0xff] %vm194_vm0, %v3736_v9 }
 0xe35   :  { %5246 = shalt.err (!%p5243_p4)
}
 0xe36   :  { %s5247_s11 = scalar_lea.hbm %s5490_s30, 256 }
 0xe37   :  { %p5248_p5 = scmp.ne.s32.totalorder %s5490_s30, %s5247_s11  ;;  %p5251_p6 = scmp.lt.u32.totalorder %s5247_s11, %s5490_s30 }
 0xe39   :  { %p5253_p7 = pnand %p5251_p6, %p5248_p5 }
 0xe3b   :  { %5256 = shalt.err (!%p5253_p7)
}
 0xe3c   :  { %s5339_s16 = smov 128   ;;  %s5340_s15 = smov 8  }
 0xe3d   :  { %3787 = dma.vmem_to_hbm [thread:$0]  %s3782_s28, 256, %s5490_s30, [#allocation6], %s5339_s16, %s5339_s16, %s5340_s15  }
 0xe3e   :  { %s5257_s18 = scalar_lea.vmem %s3770_s10, 512  ;;  %p5262_p9 = scmp.lt.s32.totalorder %s3770_s10, %s3770_s10 }
 0xe3f   :  { %p5258_p8 = scmp.ne.s32.totalorder %s3770_s10, %s5257_s18  ;;  %p5263_p10 = scmp.lt.s32.totalorder %s5257_s18, %s5257_s18 }
 0xe41   :  { %p5264_p11 = por %p5263_p10, %p5262_p9 }
 0xe43   :  { %p5265_p12 = pnand %p5264_p11, %p5258_p8 }
 0xe45   :  { %5268 = shalt.err (!%p5265_p12)
}
 0xe46   :  { %s7174_s23 = sld [smem:[#allocation23_spill]] }
 0xe4c   :  { %s5269_s26 = scalar_lea.hbm %s7174_s23, 512 }
 0xe4d   :  { %p5270_p13 = scmp.ne.s32.totalorder %s7174_s23, %s5269_s26  ;;  %p5273_p0 = scmp.lt.u32.totalorder %s5269_s26, %s7174_s23 }
 0xe4f   :  { %p5275_p1 = pnand %p5273_p0, %p5270_p13 }
 0xe51   :  { %5278 = shalt.err (!%p5275_p1)
}
 0xe52   :  { %s5341_s0 = smov 256   ;;  %s5342_s5 = smov 16  }
 0xe53   :  { %3775 = dma.vmem_to_hbm [thread:$0]  %s3770_s10, 512, %s7174_s23, [#allocation4], %s5341_s0, %s5341_s0, %s5342_s5  }
 0xe54   :  { %s5343_s30 = smov [#allocation7]  }
 0xe55   :  { %s3799_s9 = sshll.u32 %s5343_s30, 4  ;;  %s3800_s9 = int_to_ptr.vmem [resolvable:$true] %s3799_s9 }
 0xe56   :  { %s5279_s13 = scalar_lea.vmem %s3800_s9, 256  ;;  %p5284_p3 = scmp.lt.s32.totalorder %s3800_s9, %s3800_s9 }
 0xe57   :  { %p5280_p2 = scmp.ne.s32.totalorder %s3800_s9, %s5279_s13  ;;  %p5285_p4 = scmp.lt.s32.totalorder %s5279_s13, %s5279_s13 }
 0xe59   :  { %p5286_p5 = por %p5285_p4, %p5284_p3 }
 0xe5b   :  { %p5287_p6 = pnand %p5286_p5, %p5280_p2 }
 0xe5d   :  { %5290 = shalt.err (!%p5287_p6)
}
 0xe5e   :  { %s5291_s17 = scalar_lea.hbm %s5510_s1, 256 }
 0xe5f   :  { %p5292_p7 = scmp.ne.s32.totalorder %s5510_s1, %s5291_s17  ;;  %p5295_p8 = scmp.lt.u32.totalorder %s5291_s17, %s5510_s1 }
 0xe61   :  { %p5297_p9 = pnand %p5295_p8, %p5292_p7 }
 0xe63   :  { %5300 = shalt.err (!%p5297_p9)
}
 0xe64   :  { %3805 = dma.vmem_to_hbm [thread:$0]  %s3800_s9, 256, %s5510_s1, [#allocation6], %s5339_s16, %s5339_s16, %s5340_s15   ;;  %v4141_v6 = vld [vmem:[#allocation2] ss:$0 sm:$0xff]  ;;  %vm3759_vm6 = vcmask 7168  }
 0xf02   :  { %v4889_v13 = vpop.f32.mrb[134].mxu0 }
 0xf03   :  { %v3655_v29 = vadd.f32 %v4889_v13, %v4141_v6  ;;  %v3649_v48 = vpop.f32.mrb[135].mxu0 }
 0xf04   :  { %v3650_v27 = vadd.f32 %v4141_v6, %v3649_v48 }
 0xf05   :  { %v4148_v28 = vmul.f32 -1.442695, %v3655_v29 }
 0xf06   :  { %v4147_v46 = vmul.f32 -1.442695, %v3650_v27 }
 0xf07   :  { %5226 = vpow2.f32 %v4148_v28 }
 0xf08   :  { %5228 = vpow2.f32 %v4147_v46 }
 0xf11   :  { %v5227_v39 = vpop.eup %5226 }
 0xf12   :  { %v5229_v8 = vpop.eup %5228  ;;  %v3754_v17 = vadd.f32 1.0, %v5227_v39 }
 0xf13   :  { %v3753_v15 = vadd.f32 1.0, %v5229_v8 }
 0xf14   :  { %5230 = vrcp.f32 %v3754_v17 }
 0xf15   :  { %5232 = vrcp.f32 %v3753_v15 }
 0xf1e   :  { %v5231_v50 = vpop.eup %5230 }
 0xf1f   :  { %v5233_v36 = vpop.eup %5232  ;;  %3761 = vst.msk [vmem:[%s5505_s22 + $0x8] sm:$0xff] %vm3759_vm6, %v5231_v50 }
 0xf20   :  { %3760 = vst.msk [vmem:[%s5505_s22] sm:$0xff] %vm3759_vm6, %v5233_v36 }
 0xf21   :  { %5301 = dma.done.wait [#allocation4], 512  }
 0xf22   :  { %5302 = vsyncadd [#allocation4], 4294966784 }
 0xf23   :  { %5303 = dma.done.wait [#allocation6], 512  }
 0xf24   :  { %5304 = vsyncadd [#allocation6], 4294966784 }
 0xf25   :  { %3821 = vsyncpa [#allocation4], 1 }
 0xf26   :  { %3822 = vsyncpa [#allocation6], 1 }

</bundles_post_ra>
